<compile_context>
chip_gen: v7x
topology: tpu7x:2x2x1
jax: 0.10.0
libtpu: 0.0.40
codegen_flags: <defaults>
</compile_context>

<pallas_src>
import functools

import jax
import jax.numpy as jnp
from jax.experimental import pallas as pl
from jax.experimental.pallas import tpu as pltpu


def boundary_refine_kernel(x_ref, mask_ref, w1_ref, b1_ref, w2_ref, b2_ref, o_ref,
                           *, H, W):
    # Block shapes:
    #   x_ref    : (1, C, S)      one image, channels on sublanes, S = H*W on lanes
    #   mask_ref : (9, 1, S)      per-tap SAME-padding validity masks (1.0 / 0.0)
    #   w*_ref   : (9, C, C, 1)   3x3 weights as [tap, c_out, c_in, 1]
    #   b*_ref   : (C, 1)
    #   o_ref    : (1, C, S)
    S = H * W
    x = x_ref[0].astype(jnp.float32)        # (C, S)
    masks = mask_ref[...]                   # (9, 1, S)

    # Flat-index shift for each tap (dy, dx) of the 3x3 stencil (row-major, W fast).
    shifts = [dy * W + dx for dy in (-1, 0, 1) for dx in (-1, 0, 1)]

    def conv3x3(src, w_ref, b_ref):
        # src: (C_in, S) f32. 3x3 SAME conv via 9 lane rolls + masks + VPU FMAs.
        w = w_ref[...].astype(jnp.float32)  # (9, C_out, C_in, 1)
        acc = None
        for t, k in enumerate(shifts):
            # shifted[s] = src[s + k]  (wrap-around killed by the mask below)
            shifted = pltpu.roll(src, shift=(-k) % S, axis=1) if k else src
            plane = shifted * masks[t]                       # (C_in, S)
            # Broadcast-FMA over output channels, all on the VPU (no tiny-K MXU dots):
            #   (C_out, C_in, 1) * (1, C_in, S) --sum over C_in--> (C_out, S)
            contrib = jnp.sum(w[t] * plane[None, :, :], axis=1)
            acc = contrib if acc is None else acc + contrib  # init from first tap
        return acc + b_ref[...]                              # (C,1) broadcasts over S

    r1 = jnp.maximum(conv3x3(x, w1_ref, b1_ref), 0.0)        # conv1 + ReLU
    r2 = conv3x3(r1, w2_ref, b2_ref)                         # conv2 (SAME again)
    o_ref[0] = (x + r2).astype(o_ref.dtype)                  # residual add


def _make_tap_masks(H, W):
    """(9, 1, H*W) float masks: 1.0 where the shifted pixel is inside the image."""
    y = jnp.arange(H)[:, None]
    x = jnp.arange(W)[None, :]
    masks = []
    for dy in (-1, 0, 1):
        for dx in (-1, 0, 1):
            m = (y + dy >= 0) & (y + dy < H) & (x + dx >= 0) & (x + dx < W)
            masks.append(m.reshape(1, H * W))
    return jnp.concatenate(masks, axis=0).astype(jnp.float32).reshape(9, 1, H * W)


def boundary_refine_nchw(x_nchw, w1_oihw, b1, w2_oihw, b2):
    """PyTorch-convention entry point: x (N,C,H,W), weights (O,I,3,3), biases (C,)."""
    N, C, H, W = x_nchw.shape
    S = H * W

    # Contiguous reshape only -- no transpose, no spatial pad, no extra HBM pass.
    x_flat = x_nchw.reshape(N, C, S)

    # OIHW -> (kH, kW, O, I) -> (9, C_out, C_in, 1); tiny, one-time host prep.
    w1_k = jnp.transpose(w1_oihw, (2, 3, 0, 1)).reshape(9, C, C)[..., None]
    w2_k = jnp.transpose(w2_oihw, (2, 3, 0, 1)).reshape(9, C, C)[..., None]
    masks = _make_tap_masks(H, W)

    kern = functools.partial(boundary_refine_kernel, H=H, W=W)
    out_flat = pl.pallas_call(
        kern,
        out_shape=jax.ShapeDtypeStruct((N, C, S), x_nchw.dtype),
        grid=(N,),
        in_specs=[
            pl.BlockSpec((1, C, S), lambda b: (b, 0, 0)),
            pl.BlockSpec((9, 1, S), lambda b: (0, 0, 0)),
            pl.BlockSpec((9, C, C, 1), lambda b: (0, 0, 0, 0)),
            pl.BlockSpec((C, 1), lambda b: (0, 0)),
            pl.BlockSpec((9, C, C, 1), lambda b: (0, 0, 0, 0)),
            pl.BlockSpec((C, 1), lambda b: (0, 0)),
        ],
        out_specs=pl.BlockSpec((1, C, S), lambda b: (b, 0, 0)),
        compiler_params=pltpu.CompilerParams(dimension_semantics=("parallel",)),
        cost_estimate=pl.CostEstimate(
            flops=2 * 2 * 9 * N * S * C * C,
            transcendentals=0,
            bytes_accessed=4 * (2 * N * C * S + 9 * S + 2 * 9 * C * C + 2 * C),
        ),
    )(x_flat, masks, w1_k, b1.reshape(C, 1), w2_k, b2.reshape(C, 1))

    return out_flat.reshape(N, C, H, W)


def _reference_nchw(x, w1, b1, w2, b2):
    dn = ("NCHW", "OIHW", "NCHW")
    r1 = jax.lax.conv_general_dilated(x, w1, (1, 1), "SAME", dimension_numbers=dn)
    r1 = jnp.maximum(r1 + b1[None, :, None, None], 0.0)
    r2 = jax.lax.conv_general_dilated(r1, w2, (1, 1), "SAME", dimension_numbers=dn)
    r2 = r2 + b2[None, :, None, None]
    return x + r2


if __name__ == "__main__":
    key = jax.random.PRNGKey(0)
    k_x, k_w1, k_b1, k_w2, k_b2 = jax.random.split(key, 5)

    N, C, H, W = 2, 4, 16, 16  # small shapes consistent with the module (dim=C)
    x = jax.random.normal(k_x, (N, C, H, W), jnp.float32)

    # PyTorch Conv2d weight layout: (O, I, kH, kW)
    w1 = jax.random.normal(k_w1, (C, C, 3, 3), jnp.float32) * 0.1
    b1 = jax.random.normal(k_b1, (C,), jnp.float32) * 0.1
    w2 = jax.random.normal(k_w2, (C, C, 3, 3), jnp.float32) * 0.1
    b2 = jax.random.normal(k_b2, (C,), jnp.float32) * 0.1

    out = jax.block_until_ready(boundary_refine_nchw(x, w1, b1, w2, b2))
    ref = jax.block_until_ready(_reference_nchw(x, w1, b1, w2, b2))

    assert out.shape == ref.shape
    assert jnp.allclose(out, ref, atol=1e-4, rtol=1e-4), "mismatch vs XLA conv reference"
    print("KERNEL_OK")
</pallas_src>

<mosaic_0001>
module attributes {stable_mosaic.version = 11 : i64} {
  func.func @boundary_refine_kernel(%arg0: i32, %arg1: memref<1x4x256xf32, #tpu.memory_space<vmem>>, %arg2: memref<9x1x256xf32, #tpu.memory_space<vmem>>, %arg3: memref<9x4x4x1xf32, #tpu.memory_space<vmem>>, %arg4: memref<4x1xf32, #tpu.memory_space<vmem>>, %arg5: memref<9x4x4x1xf32, #tpu.memory_space<vmem>>, %arg6: memref<4x1xf32, #tpu.memory_space<vmem>>, %arg7: memref<1x4x256xf32, #tpu.memory_space<vmem>>) attributes {dimension_semantics = [#tpu.dimension_semantics<parallel>], iteration_bounds = array<i64: 2>, scalar_prefetch = 0 : i64, scratch_operands = 0 : i64, tpu.core_type = #tpu.core_type<tc>, window_params = [{transform_indices = @transform_0, window_bounds = array<i64: 1, 4, 256>}, {pipeline_mode = #tpu.pipeline_mode<synchronous>, transform_indices = @transform_1, window_bounds = array<i64: 9, 1, 256>}, {pipeline_mode = #tpu.pipeline_mode<synchronous>, transform_indices = @transform_2, window_bounds = array<i64: 9, 4, 4, 1>}, {pipeline_mode = #tpu.pipeline_mode<synchronous>, transform_indices = @transform_3, window_bounds = array<i64: 4, 1>}, {pipeline_mode = #tpu.pipeline_mode<synchronous>, transform_indices = @transform_4, window_bounds = array<i64: 9, 4, 4, 1>}, {pipeline_mode = #tpu.pipeline_mode<synchronous>, transform_indices = @transform_5, window_bounds = array<i64: 4, 1>}, {transform_indices = @transform_6, window_bounds = array<i64: 1, 4, 256>}]} {
    %c0 = arith.constant 0 : index
    %c0_0 = arith.constant 0 : index
    %c0_1 = arith.constant 0 : index
    %0 = vector.load %arg1[%c0, %c0_0, %c0_1] : memref<1x4x256xf32, #tpu.memory_space<vmem>>, vector<1x4x256xf32>
    %1 = vector.shape_cast %0 : vector<1x4x256xf32> to vector<4x256xf32>
    %c0_2 = arith.constant 0 : index
    %c0_3 = arith.constant 0 : index
    %c0_4 = arith.constant 0 : index
    %2 = vector.load %arg2[%c0_2, %c0_3, %c0_4] : memref<9x1x256xf32, #tpu.memory_space<vmem>>, vector<9x1x256xf32>
    %c0_5 = arith.constant 0 : index
    %c0_6 = arith.constant 0 : index
    %c0_7 = arith.constant 0 : index
    %c0_8 = arith.constant 0 : index
    %3 = vector.load %arg3[%c0_5, %c0_6, %c0_7, %c0_8] : memref<9x4x4x1xf32, #tpu.memory_space<vmem>>, vector<9x4x4x1xf32>
    %c17_i32 = arith.constant 17 : i32
    %4 = tpu.dynamic_rotate %1 by %c17_i32 dim 1 : vector<4x256xf32>, i32 -> vector<4x256xf32>
    %5 = vector.extract_strided_slice %2 {offsets = [0, 0, 0], sizes = [1, 1, 256], strides = [1, 1, 1]} : vector<9x1x256xf32> to vector<1x1x256xf32>
    %6 = vector.shape_cast %5 : vector<1x1x256xf32> to vector<1x256xf32>
    %7 = vector.broadcast %6 : vector<1x256xf32> to vector<4x256xf32>
    %8 = arith.mulf %4, %7 : vector<4x256xf32>
    %9 = vector.extract_strided_slice %3 {offsets = [0, 0, 0, 0], sizes = [1, 4, 4, 1], strides = [1, 1, 1, 1]} : vector<9x4x4x1xf32> to vector<1x4x4x1xf32>
    %10 = vector.shape_cast %9 : vector<1x4x4x1xf32> to vector<4x4x1xf32>
    %11 = vector.shape_cast %8 : vector<4x256xf32> to vector<1x4x256xf32>
    %12 = vector.broadcast %10 : vector<4x4x1xf32> to vector<4x4x256xf32>
    %13 = vector.broadcast %11 : vector<1x4x256xf32> to vector<4x4x256xf32>
    %14 = arith.mulf %12, %13 : vector<4x4x256xf32>
    %cst = arith.constant dense<0.000000e+00> : vector<4x256xf32>
    %15 = vector.multi_reduction <add>, %14, %cst [1] : vector<4x4x256xf32> to vector<4x256xf32>
    %c16_i32 = arith.constant 16 : i32
    %16 = tpu.dynamic_rotate %1 by %c16_i32 dim 1 : vector<4x256xf32>, i32 -> vector<4x256xf32>
    %17 = vector.extract_strided_slice %2 {offsets = [1, 0, 0], sizes = [1, 1, 256], strides = [1, 1, 1]} : vector<9x1x256xf32> to vector<1x1x256xf32>
    %18 = vector.shape_cast %17 : vector<1x1x256xf32> to vector<1x256xf32>
    %19 = vector.broadcast %18 : vector<1x256xf32> to vector<4x256xf32>
    %20 = arith.mulf %16, %19 : vector<4x256xf32>
    %21 = vector.extract_strided_slice %3 {offsets = [1, 0, 0, 0], sizes = [1, 4, 4, 1], strides = [1, 1, 1, 1]} : vector<9x4x4x1xf32> to vector<1x4x4x1xf32>
    %22 = vector.shape_cast %21 : vector<1x4x4x1xf32> to vector<4x4x1xf32>
    %23 = vector.shape_cast %20 : vector<4x256xf32> to vector<1x4x256xf32>
    %24 = vector.broadcast %22 : vector<4x4x1xf32> to vector<4x4x256xf32>
    %25 = vector.broadcast %23 : vector<1x4x256xf32> to vector<4x4x256xf32>
    %26 = arith.mulf %24, %25 : vector<4x4x256xf32>
    %cst_9 = arith.constant dense<0.000000e+00> : vector<4x256xf32>
    %27 = vector.multi_reduction <add>, %26, %cst_9 [1] : vector<4x4x256xf32> to vector<4x256xf32>
    %28 = arith.addf %15, %27 : vector<4x256xf32>
    %c15_i32 = arith.constant 15 : i32
    %29 = tpu.dynamic_rotate %1 by %c15_i32 dim 1 : vector<4x256xf32>, i32 -> vector<4x256xf32>
    %30 = vector.extract_strided_slice %2 {offsets = [2, 0, 0], sizes = [1, 1, 256], strides = [1, 1, 1]} : vector<9x1x256xf32> to vector<1x1x256xf32>
    %31 = vector.shape_cast %30 : vector<1x1x256xf32> to vector<1x256xf32>
    %32 = vector.broadcast %31 : vector<1x256xf32> to vector<4x256xf32>
    %33 = arith.mulf %29, %32 : vector<4x256xf32>
    %34 = vector.extract_strided_slice %3 {offsets = [2, 0, 0, 0], sizes = [1, 4, 4, 1], strides = [1, 1, 1, 1]} : vector<9x4x4x1xf32> to vector<1x4x4x1xf32>
    %35 = vector.shape_cast %34 : vector<1x4x4x1xf32> to vector<4x4x1xf32>
    %36 = vector.shape_cast %33 : vector<4x256xf32> to vector<1x4x256xf32>
    %37 = vector.broadcast %35 : vector<4x4x1xf32> to vector<4x4x256xf32>
    %38 = vector.broadcast %36 : vector<1x4x256xf32> to vector<4x4x256xf32>
    %39 = arith.mulf %37, %38 : vector<4x4x256xf32>
    %cst_10 = arith.constant dense<0.000000e+00> : vector<4x256xf32>
    %40 = vector.multi_reduction <add>, %39, %cst_10 [1] : vector<4x4x256xf32> to vector<4x256xf32>
    %41 = arith.addf %28, %40 : vector<4x256xf32>
    %c1_i32 = arith.constant 1 : i32
    %42 = tpu.dynamic_rotate %1 by %c1_i32 dim 1 : vector<4x256xf32>, i32 -> vector<4x256xf32>
    %43 = vector.extract_strided_slice %2 {offsets = [3, 0, 0], sizes = [1, 1, 256], strides = [1, 1, 1]} : vector<9x1x256xf32> to vector<1x1x256xf32>
    %44 = vector.shape_cast %43 : vector<1x1x256xf32> to vector<1x256xf32>
    %45 = vector.broadcast %44 : vector<1x256xf32> to vector<4x256xf32>
    %46 = arith.mulf %42, %45 : vector<4x256xf32>
    %47 = vector.extract_strided_slice %3 {offsets = [3, 0, 0, 0], sizes = [1, 4, 4, 1], strides = [1, 1, 1, 1]} : vector<9x4x4x1xf32> to vector<1x4x4x1xf32>
    %48 = vector.shape_cast %47 : vector<1x4x4x1xf32> to vector<4x4x1xf32>
    %49 = vector.shape_cast %46 : vector<4x256xf32> to vector<1x4x256xf32>
    %50 = vector.broadcast %48 : vector<4x4x1xf32> to vector<4x4x256xf32>
    %51 = vector.broadcast %49 : vector<1x4x256xf32> to vector<4x4x256xf32>
    %52 = arith.mulf %50, %51 : vector<4x4x256xf32>
    %cst_11 = arith.constant dense<0.000000e+00> : vector<4x256xf32>
    %53 = vector.multi_reduction <add>, %52, %cst_11 [1] : vector<4x4x256xf32> to vector<4x256xf32>
    %54 = arith.addf %41, %53 : vector<4x256xf32>
    %55 = vector.extract_strided_slice %2 {offsets = [4, 0, 0], sizes = [1, 1, 256], strides = [1, 1, 1]} : vector<9x1x256xf32> to vector<1x1x256xf32>
    %56 = vector.shape_cast %55 : vector<1x1x256xf32> to vector<1x256xf32>
    %57 = vector.broadcast %56 : vector<1x256xf32> to vector<4x256xf32>
    %58 = arith.mulf %1, %57 : vector<4x256xf32>
    %59 = vector.extract_strided_slice %3 {offsets = [4, 0, 0, 0], sizes = [1, 4, 4, 1], strides = [1, 1, 1, 1]} : vector<9x4x4x1xf32> to vector<1x4x4x1xf32>
    %60 = vector.shape_cast %59 : vector<1x4x4x1xf32> to vector<4x4x1xf32>
    %61 = vector.shape_cast %58 : vector<4x256xf32> to vector<1x4x256xf32>
    %62 = vector.broadcast %60 : vector<4x4x1xf32> to vector<4x4x256xf32>
    %63 = vector.broadcast %61 : vector<1x4x256xf32> to vector<4x4x256xf32>
    %64 = arith.mulf %62, %63 : vector<4x4x256xf32>
    %cst_12 = arith.constant dense<0.000000e+00> : vector<4x256xf32>
    %65 = vector.multi_reduction <add>, %64, %cst_12 [1] : vector<4x4x256xf32> to vector<4x256xf32>
    %66 = arith.addf %54, %65 : vector<4x256xf32>
    %c255_i32 = arith.constant 255 : i32
    %67 = tpu.dynamic_rotate %1 by %c255_i32 dim 1 : vector<4x256xf32>, i32 -> vector<4x256xf32>
    %68 = vector.extract_strided_slice %2 {offsets = [5, 0, 0], sizes = [1, 1, 256], strides = [1, 1, 1]} : vector<9x1x256xf32> to vector<1x1x256xf32>
    %69 = vector.shape_cast %68 : vector<1x1x256xf32> to vector<1x256xf32>
    %70 = vector.broadcast %69 : vector<1x256xf32> to vector<4x256xf32>
    %71 = arith.mulf %67, %70 : vector<4x256xf32>
    %72 = vector.extract_strided_slice %3 {offsets = [5, 0, 0, 0], sizes = [1, 4, 4, 1], strides = [1, 1, 1, 1]} : vector<9x4x4x1xf32> to vector<1x4x4x1xf32>
    %73 = vector.shape_cast %72 : vector<1x4x4x1xf32> to vector<4x4x1xf32>
    %74 = vector.shape_cast %71 : vector<4x256xf32> to vector<1x4x256xf32>
    %75 = vector.broadcast %73 : vector<4x4x1xf32> to vector<4x4x256xf32>
    %76 = vector.broadcast %74 : vector<1x4x256xf32> to vector<4x4x256xf32>
    %77 = arith.mulf %75, %76 : vector<4x4x256xf32>
    %cst_13 = arith.constant dense<0.000000e+00> : vector<4x256xf32>
    %78 = vector.multi_reduction <add>, %77, %cst_13 [1] : vector<4x4x256xf32> to vector<4x256xf32>
    %79 = arith.addf %66, %78 : vector<4x256xf32>
    %c241_i32 = arith.constant 241 : i32
    %80 = tpu.dynamic_rotate %1 by %c241_i32 dim 1 : vector<4x256xf32>, i32 -> vector<4x256xf32>
    %81 = vector.extract_strided_slice %2 {offsets = [6, 0, 0], sizes = [1, 1, 256], strides = [1, 1, 1]} : vector<9x1x256xf32> to vector<1x1x256xf32>
    %82 = vector.shape_cast %81 : vector<1x1x256xf32> to vector<1x256xf32>
    %83 = vector.broadcast %82 : vector<1x256xf32> to vector<4x256xf32>
    %84 = arith.mulf %80, %83 : vector<4x256xf32>
    %85 = vector.extract_strided_slice %3 {offsets = [6, 0, 0, 0], sizes = [1, 4, 4, 1], strides = [1, 1, 1, 1]} : vector<9x4x4x1xf32> to vector<1x4x4x1xf32>
    %86 = vector.shape_cast %85 : vector<1x4x4x1xf32> to vector<4x4x1xf32>
    %87 = vector.shape_cast %84 : vector<4x256xf32> to vector<1x4x256xf32>
    %88 = vector.broadcast %86 : vector<4x4x1xf32> to vector<4x4x256xf32>
    %89 = vector.broadcast %87 : vector<1x4x256xf32> to vector<4x4x256xf32>
    %90 = arith.mulf %88, %89 : vector<4x4x256xf32>
    %cst_14 = arith.constant dense<0.000000e+00> : vector<4x256xf32>
    %91 = vector.multi_reduction <add>, %90, %cst_14 [1] : vector<4x4x256xf32> to vector<4x256xf32>
    %92 = arith.addf %79, %91 : vector<4x256xf32>
    %c240_i32 = arith.constant 240 : i32
    %93 = tpu.dynamic_rotate %1 by %c240_i32 dim 1 : vector<4x256xf32>, i32 -> vector<4x256xf32>
    %94 = vector.extract_strided_slice %2 {offsets = [7, 0, 0], sizes = [1, 1, 256], strides = [1, 1, 1]} : vector<9x1x256xf32> to vector<1x1x256xf32>
    %95 = vector.shape_cast %94 : vector<1x1x256xf32> to vector<1x256xf32>
    %96 = vector.broadcast %95 : vector<1x256xf32> to vector<4x256xf32>
    %97 = arith.mulf %93, %96 : vector<4x256xf32>
    %98 = vector.extract_strided_slice %3 {offsets = [7, 0, 0, 0], sizes = [1, 4, 4, 1], strides = [1, 1, 1, 1]} : vector<9x4x4x1xf32> to vector<1x4x4x1xf32>
    %99 = vector.shape_cast %98 : vector<1x4x4x1xf32> to vector<4x4x1xf32>
    %100 = vector.shape_cast %97 : vector<4x256xf32> to vector<1x4x256xf32>
    %101 = vector.broadcast %99 : vector<4x4x1xf32> to vector<4x4x256xf32>
    %102 = vector.broadcast %100 : vector<1x4x256xf32> to vector<4x4x256xf32>
    %103 = arith.mulf %101, %102 : vector<4x4x256xf32>
    %cst_15 = arith.constant dense<0.000000e+00> : vector<4x256xf32>
    %104 = vector.multi_reduction <add>, %103, %cst_15 [1] : vector<4x4x256xf32> to vector<4x256xf32>
    %105 = arith.addf %92, %104 : vector<4x256xf32>
    %c239_i32 = arith.constant 239 : i32
    %106 = tpu.dynamic_rotate %1 by %c239_i32 dim 1 : vector<4x256xf32>, i32 -> vector<4x256xf32>
    %107 = vector.extract_strided_slice %2 {offsets = [8, 0, 0], sizes = [1, 1, 256], strides = [1, 1, 1]} : vector<9x1x256xf32> to vector<1x1x256xf32>
    %108 = vector.shape_cast %107 : vector<1x1x256xf32> to vector<1x256xf32>
    %109 = vector.broadcast %108 : vector<1x256xf32> to vector<4x256xf32>
    %110 = arith.mulf %106, %109 : vector<4x256xf32>
    %111 = vector.extract_strided_slice %3 {offsets = [8, 0, 0, 0], sizes = [1, 4, 4, 1], strides = [1, 1, 1, 1]} : vector<9x4x4x1xf32> to vector<1x4x4x1xf32>
    %112 = vector.shape_cast %111 : vector<1x4x4x1xf32> to vector<4x4x1xf32>
    %113 = vector.shape_cast %110 : vector<4x256xf32> to vector<1x4x256xf32>
    %114 = vector.broadcast %112 : vector<4x4x1xf32> to vector<4x4x256xf32>
    %115 = vector.broadcast %113 : vector<1x4x256xf32> to vector<4x4x256xf32>
    %116 = arith.mulf %114, %115 : vector<4x4x256xf32>
    %cst_16 = arith.constant dense<0.000000e+00> : vector<4x256xf32>
    %117 = vector.multi_reduction <add>, %116, %cst_16 [1] : vector<4x4x256xf32> to vector<4x256xf32>
    %118 = arith.addf %105, %117 : vector<4x256xf32>
    %c0_17 = arith.constant 0 : index
    %c0_18 = arith.constant 0 : index
    %119 = vector.load %arg4[%c0_17, %c0_18] : memref<4x1xf32, #tpu.memory_space<vmem>>, vector<4x1xf32>
    %120 = vector.broadcast %119 : vector<4x1xf32> to vector<4x256xf32>
    %121 = arith.addf %118, %120 : vector<4x256xf32>
    %cst_19 = arith.constant 0.000000e+00 : f32
    %122 = vector.broadcast %cst_19 : f32 to vector<4x256xf32>
    %123 = arith.maximumf %121, %122 : vector<4x256xf32>
    %c0_20 = arith.constant 0 : index
    %c0_21 = arith.constant 0 : index
    %c0_22 = arith.constant 0 : index
    %c0_23 = arith.constant 0 : index
    %124 = vector.load %arg5[%c0_20, %c0_21, %c0_22, %c0_23] : memref<9x4x4x1xf32, #tpu.memory_space<vmem>>, vector<9x4x4x1xf32>
    %c17_i32_24 = arith.constant 17 : i32
    %125 = tpu.dynamic_rotate %123 by %c17_i32_24 dim 1 : vector<4x256xf32>, i32 -> vector<4x256xf32>
    %126 = vector.extract_strided_slice %2 {offsets = [0, 0, 0], sizes = [1, 1, 256], strides = [1, 1, 1]} : vector<9x1x256xf32> to vector<1x1x256xf32>
    %127 = vector.shape_cast %126 : vector<1x1x256xf32> to vector<1x256xf32>
    %128 = vector.broadcast %127 : vector<1x256xf32> to vector<4x256xf32>
    %129 = arith.mulf %125, %128 : vector<4x256xf32>
    %130 = vector.extract_strided_slice %124 {offsets = [0, 0, 0, 0], sizes = [1, 4, 4, 1], strides = [1, 1, 1, 1]} : vector<9x4x4x1xf32> to vector<1x4x4x1xf32>
    %131 = vector.shape_cast %130 : vector<1x4x4x1xf32> to vector<4x4x1xf32>
    %132 = vector.shape_cast %129 : vector<4x256xf32> to vector<1x4x256xf32>
    %133 = vector.broadcast %131 : vector<4x4x1xf32> to vector<4x4x256xf32>
    %134 = vector.broadcast %132 : vector<1x4x256xf32> to vector<4x4x256xf32>
    %135 = arith.mulf %133, %134 : vector<4x4x256xf32>
    %cst_25 = arith.constant dense<0.000000e+00> : vector<4x256xf32>
    %136 = vector.multi_reduction <add>, %135, %cst_25 [1] : vector<4x4x256xf32> to vector<4x256xf32>
    %c16_i32_26 = arith.constant 16 : i32
    %137 = tpu.dynamic_rotate %123 by %c16_i32_26 dim 1 : vector<4x256xf32>, i32 -> vector<4x256xf32>
    %138 = vector.extract_strided_slice %2 {offsets = [1, 0, 0], sizes = [1, 1, 256], strides = [1, 1, 1]} : vector<9x1x256xf32> to vector<1x1x256xf32>
    %139 = vector.shape_cast %138 : vector<1x1x256xf32> to vector<1x256xf32>
    %140 = vector.broadcast %139 : vector<1x256xf32> to vector<4x256xf32>
    %141 = arith.mulf %137, %140 : vector<4x256xf32>
    %142 = vector.extract_strided_slice %124 {offsets = [1, 0, 0, 0], sizes = [1, 4, 4, 1], strides = [1, 1, 1, 1]} : vector<9x4x4x1xf32> to vector<1x4x4x1xf32>
    %143 = vector.shape_cast %142 : vector<1x4x4x1xf32> to vector<4x4x1xf32>
    %144 = vector.shape_cast %141 : vector<4x256xf32> to vector<1x4x256xf32>
    %145 = vector.broadcast %143 : vector<4x4x1xf32> to vector<4x4x256xf32>
    %146 = vector.broadcast %144 : vector<1x4x256xf32> to vector<4x4x256xf32>
    %147 = arith.mulf %145, %146 : vector<4x4x256xf32>
    %cst_27 = arith.constant dense<0.000000e+00> : vector<4x256xf32>
    %148 = vector.multi_reduction <add>, %147, %cst_27 [1] : vector<4x4x256xf32> to vector<4x256xf32>
    %149 = arith.addf %136, %148 : vector<4x256xf32>
    %c15_i32_28 = arith.constant 15 : i32
    %150 = tpu.dynamic_rotate %123 by %c15_i32_28 dim 1 : vector<4x256xf32>, i32 -> vector<4x256xf32>
    %151 = vector.extract_strided_slice %2 {offsets = [2, 0, 0], sizes = [1, 1, 256], strides = [1, 1, 1]} : vector<9x1x256xf32> to vector<1x1x256xf32>
    %152 = vector.shape_cast %151 : vector<1x1x256xf32> to vector<1x256xf32>
    %153 = vector.broadcast %152 : vector<1x256xf32> to vector<4x256xf32>
    %154 = arith.mulf %150, %153 : vector<4x256xf32>
    %155 = vector.extract_strided_slice %124 {offsets = [2, 0, 0, 0], sizes = [1, 4, 4, 1], strides = [1, 1, 1, 1]} : vector<9x4x4x1xf32> to vector<1x4x4x1xf32>
    %156 = vector.shape_cast %155 : vector<1x4x4x1xf32> to vector<4x4x1xf32>
    %157 = vector.shape_cast %154 : vector<4x256xf32> to vector<1x4x256xf32>
    %158 = vector.broadcast %156 : vector<4x4x1xf32> to vector<4x4x256xf32>
    %159 = vector.broadcast %157 : vector<1x4x256xf32> to vector<4x4x256xf32>
    %160 = arith.mulf %158, %159 : vector<4x4x256xf32>
    %cst_29 = arith.constant dense<0.000000e+00> : vector<4x256xf32>
    %161 = vector.multi_reduction <add>, %160, %cst_29 [1] : vector<4x4x256xf32> to vector<4x256xf32>
    %162 = arith.addf %149, %161 : vector<4x256xf32>
    %c1_i32_30 = arith.constant 1 : i32
    %163 = tpu.dynamic_rotate %123 by %c1_i32_30 dim 1 : vector<4x256xf32>, i32 -> vector<4x256xf32>
    %164 = vector.extract_strided_slice %2 {offsets = [3, 0, 0], sizes = [1, 1, 256], strides = [1, 1, 1]} : vector<9x1x256xf32> to vector<1x1x256xf32>
    %165 = vector.shape_cast %164 : vector<1x1x256xf32> to vector<1x256xf32>
    %166 = vector.broadcast %165 : vector<1x256xf32> to vector<4x256xf32>
    %167 = arith.mulf %163, %166 : vector<4x256xf32>
    %168 = vector.extract_strided_slice %124 {offsets = [3, 0, 0, 0], sizes = [1, 4, 4, 1], strides = [1, 1, 1, 1]} : vector<9x4x4x1xf32> to vector<1x4x4x1xf32>
    %169 = vector.shape_cast %168 : vector<1x4x4x1xf32> to vector<4x4x1xf32>
    %170 = vector.shape_cast %167 : vector<4x256xf32> to vector<1x4x256xf32>
    %171 = vector.broadcast %169 : vector<4x4x1xf32> to vector<4x4x256xf32>
    %172 = vector.broadcast %170 : vector<1x4x256xf32> to vector<4x4x256xf32>
    %173 = arith.mulf %171, %172 : vector<4x4x256xf32>
    %cst_31 = arith.constant dense<0.000000e+00> : vector<4x256xf32>
    %174 = vector.multi_reduction <add>, %173, %cst_31 [1] : vector<4x4x256xf32> to vector<4x256xf32>
    %175 = arith.addf %162, %174 : vector<4x256xf32>
    %176 = vector.extract_strided_slice %2 {offsets = [4, 0, 0], sizes = [1, 1, 256], strides = [1, 1, 1]} : vector<9x1x256xf32> to vector<1x1x256xf32>
    %177 = vector.shape_cast %176 : vector<1x1x256xf32> to vector<1x256xf32>
    %178 = vector.broadcast %177 : vector<1x256xf32> to vector<4x256xf32>
    %179 = arith.mulf %123, %178 : vector<4x256xf32>
    %180 = vector.extract_strided_slice %124 {offsets = [4, 0, 0, 0], sizes = [1, 4, 4, 1], strides = [1, 1, 1, 1]} : vector<9x4x4x1xf32> to vector<1x4x4x1xf32>
    %181 = vector.shape_cast %180 : vector<1x4x4x1xf32> to vector<4x4x1xf32>
    %182 = vector.shape_cast %179 : vector<4x256xf32> to vector<1x4x256xf32>
    %183 = vector.broadcast %181 : vector<4x4x1xf32> to vector<4x4x256xf32>
    %184 = vector.broadcast %182 : vector<1x4x256xf32> to vector<4x4x256xf32>
    %185 = arith.mulf %183, %184 : vector<4x4x256xf32>
    %cst_32 = arith.constant dense<0.000000e+00> : vector<4x256xf32>
    %186 = vector.multi_reduction <add>, %185, %cst_32 [1] : vector<4x4x256xf32> to vector<4x256xf32>
    %187 = arith.addf %175, %186 : vector<4x256xf32>
    %c255_i32_33 = arith.constant 255 : i32
    %188 = tpu.dynamic_rotate %123 by %c255_i32_33 dim 1 : vector<4x256xf32>, i32 -> vector<4x256xf32>
    %189 = vector.extract_strided_slice %2 {offsets = [5, 0, 0], sizes = [1, 1, 256], strides = [1, 1, 1]} : vector<9x1x256xf32> to vector<1x1x256xf32>
    %190 = vector.shape_cast %189 : vector<1x1x256xf32> to vector<1x256xf32>
    %191 = vector.broadcast %190 : vector<1x256xf32> to vector<4x256xf32>
    %192 = arith.mulf %188, %191 : vector<4x256xf32>
    %193 = vector.extract_strided_slice %124 {offsets = [5, 0, 0, 0], sizes = [1, 4, 4, 1], strides = [1, 1, 1, 1]} : vector<9x4x4x1xf32> to vector<1x4x4x1xf32>
    %194 = vector.shape_cast %193 : vector<1x4x4x1xf32> to vector<4x4x1xf32>
    %195 = vector.shape_cast %192 : vector<4x256xf32> to vector<1x4x256xf32>
    %196 = vector.broadcast %194 : vector<4x4x1xf32> to vector<4x4x256xf32>
    %197 = vector.broadcast %195 : vector<1x4x256xf32> to vector<4x4x256xf32>
    %198 = arith.mulf %196, %197 : vector<4x4x256xf32>
    %cst_34 = arith.constant dense<0.000000e+00> : vector<4x256xf32>
    %199 = vector.multi_reduction <add>, %198, %cst_34 [1] : vector<4x4x256xf32> to vector<4x256xf32>
    %200 = arith.addf %187, %199 : vector<4x256xf32>
    %c241_i32_35 = arith.constant 241 : i32
    %201 = tpu.dynamic_rotate %123 by %c241_i32_35 dim 1 : vector<4x256xf32>, i32 -> vector<4x256xf32>
    %202 = vector.extract_strided_slice %2 {offsets = [6, 0, 0], sizes = [1, 1, 256], strides = [1, 1, 1]} : vector<9x1x256xf32> to vector<1x1x256xf32>
    %203 = vector.shape_cast %202 : vector<1x1x256xf32> to vector<1x256xf32>
    %204 = vector.broadcast %203 : vector<1x256xf32> to vector<4x256xf32>
    %205 = arith.mulf %201, %204 : vector<4x256xf32>
    %206 = vector.extract_strided_slice %124 {offsets = [6, 0, 0, 0], sizes = [1, 4, 4, 1], strides = [1, 1, 1, 1]} : vector<9x4x4x1xf32> to vector<1x4x4x1xf32>
    %207 = vector.shape_cast %206 : vector<1x4x4x1xf32> to vector<4x4x1xf32>
    %208 = vector.shape_cast %205 : vector<4x256xf32> to vector<1x4x256xf32>
    %209 = vector.broadcast %207 : vector<4x4x1xf32> to vector<4x4x256xf32>
    %210 = vector.broadcast %208 : vector<1x4x256xf32> to vector<4x4x256xf32>
    %211 = arith.mulf %209, %210 : vector<4x4x256xf32>
    %cst_36 = arith.constant dense<0.000000e+00> : vector<4x256xf32>
    %212 = vector.multi_reduction <add>, %211, %cst_36 [1] : vector<4x4x256xf32> to vector<4x256xf32>
    %213 = arith.addf %200, %212 : vector<4x256xf32>
    %c240_i32_37 = arith.constant 240 : i32
    %214 = tpu.dynamic_rotate %123 by %c240_i32_37 dim 1 : vector<4x256xf32>, i32 -> vector<4x256xf32>
    %215 = vector.extract_strided_slice %2 {offsets = [7, 0, 0], sizes = [1, 1, 256], strides = [1, 1, 1]} : vector<9x1x256xf32> to vector<1x1x256xf32>
    %216 = vector.shape_cast %215 : vector<1x1x256xf32> to vector<1x256xf32>
    %217 = vector.broadcast %216 : vector<1x256xf32> to vector<4x256xf32>
    %218 = arith.mulf %214, %217 : vector<4x256xf32>
    %219 = vector.extract_strided_slice %124 {offsets = [7, 0, 0, 0], sizes = [1, 4, 4, 1], strides = [1, 1, 1, 1]} : vector<9x4x4x1xf32> to vector<1x4x4x1xf32>
    %220 = vector.shape_cast %219 : vector<1x4x4x1xf32> to vector<4x4x1xf32>
    %221 = vector.shape_cast %218 : vector<4x256xf32> to vector<1x4x256xf32>
    %222 = vector.broadcast %220 : vector<4x4x1xf32> to vector<4x4x256xf32>
    %223 = vector.broadcast %221 : vector<1x4x256xf32> to vector<4x4x256xf32>
    %224 = arith.mulf %222, %223 : vector<4x4x256xf32>
    %cst_38 = arith.constant dense<0.000000e+00> : vector<4x256xf32>
    %225 = vector.multi_reduction <add>, %224, %cst_38 [1] : vector<4x4x256xf32> to vector<4x256xf32>
    %226 = arith.addf %213, %225 : vector<4x256xf32>
    %c239_i32_39 = arith.constant 239 : i32
    %227 = tpu.dynamic_rotate %123 by %c239_i32_39 dim 1 : vector<4x256xf32>, i32 -> vector<4x256xf32>
    %228 = vector.extract_strided_slice %2 {offsets = [8, 0, 0], sizes = [1, 1, 256], strides = [1, 1, 1]} : vector<9x1x256xf32> to vector<1x1x256xf32>
    %229 = vector.shape_cast %228 : vector<1x1x256xf32> to vector<1x256xf32>
    %230 = vector.broadcast %229 : vector<1x256xf32> to vector<4x256xf32>
    %231 = arith.mulf %227, %230 : vector<4x256xf32>
    %232 = vector.extract_strided_slice %124 {offsets = [8, 0, 0, 0], sizes = [1, 4, 4, 1], strides = [1, 1, 1, 1]} : vector<9x4x4x1xf32> to vector<1x4x4x1xf32>
    %233 = vector.shape_cast %232 : vector<1x4x4x1xf32> to vector<4x4x1xf32>
    %234 = vector.shape_cast %231 : vector<4x256xf32> to vector<1x4x256xf32>
    %235 = vector.broadcast %233 : vector<4x4x1xf32> to vector<4x4x256xf32>
    %236 = vector.broadcast %234 : vector<1x4x256xf32> to vector<4x4x256xf32>
    %237 = arith.mulf %235, %236 : vector<4x4x256xf32>
    %cst_40 = arith.constant dense<0.000000e+00> : vector<4x256xf32>
    %238 = vector.multi_reduction <add>, %237, %cst_40 [1] : vector<4x4x256xf32> to vector<4x256xf32>
    %239 = arith.addf %226, %238 : vector<4x256xf32>
    %c0_41 = arith.constant 0 : index
    %c0_42 = arith.constant 0 : index
    %240 = vector.load %arg6[%c0_41, %c0_42] : memref<4x1xf32, #tpu.memory_space<vmem>>, vector<4x1xf32>
    %241 = vector.broadcast %240 : vector<4x1xf32> to vector<4x256xf32>
    %242 = arith.addf %239, %241 : vector<4x256xf32>
    %243 = arith.addf %1, %242 : vector<4x256xf32>
    %c0_43 = arith.constant 0 : index
    %c0_44 = arith.constant 0 : index
    %c0_45 = arith.constant 0 : index
    %244 = vector.load %arg7[%c0_43, %c0_44, %c0_45] : memref<1x4x256xf32, #tpu.memory_space<vmem>>, vector<1x4x256xf32>
    %245 = vector.shape_cast %244 : vector<1x4x256xf32> to vector<4x256xf32>
    %246 = vector.shape_cast %243 : vector<4x256xf32> to vector<1x4x256xf32>
    tpu.vector_store %arg7[%c0_43, %c0_44, %c0_45], %246 {strides = array<i32>} : memref<1x4x256xf32, #tpu.memory_space<vmem>>, vector<1x4x256xf32>,
    return
  }
  func.func @transform_0(%arg0: i32) -> (i32, i32, i32) {
    %c0_i32 = arith.constant 0 : i32
    %c0_i32_0 = arith.constant 0 : i32
    %c0_i32_1 = arith.constant 0 : i32
    return %arg0, %c0_i32, %c0_i32_0 : i32, i32, i32
  }
  func.func @transform_1(%arg0: i32) -> (i32, i32, i32) {
    %c0_i32 = arith.constant 0 : i32
    %c0_i32_0 = arith.constant 0 : i32
    %c0_i32_1 = arith.constant 0 : i32
    %c0_i32_2 = arith.constant 0 : i32
    return %c0_i32, %c0_i32_0, %c0_i32_1 : i32, i32, i32
  }
  func.func @transform_2(%arg0: i32) -> (i32, i32, i32, i32) {
    %c0_i32 = arith.constant 0 : i32
    %c0_i32_0 = arith.constant 0 : i32
    %c0_i32_1 = arith.constant 0 : i32
    %c0_i32_2 = arith.constant 0 : i32
    %c0_i32_3 = arith.constant 0 : i32
    return %c0_i32, %c0_i32_0, %c0_i32_1, %c0_i32_2 : i32, i32, i32, i32
  }
  func.func @transform_3(%arg0: i32) -> (i32, i32) {
    %c0_i32 = arith.constant 0 : i32
    %c0_i32_0 = arith.constant 0 : i32
    %c0_i32_1 = arith.constant 0 : i32
    return %c0_i32, %c0_i32_0 : i32, i32
  }
  func.func @transform_4(%arg0: i32) -> (i32, i32, i32, i32) {
    %c0_i32 = arith.constant 0 : i32
    %c0_i32_0 = arith.constant 0 : i32
    %c0_i32_1 = arith.constant 0 : i32
    %c0_i32_2 = arith.constant 0 : i32
    %c0_i32_3 = arith.constant 0 : i32
    return %c0_i32, %c0_i32_0, %c0_i32_1, %c0_i32_2 : i32, i32, i32, i32
  }
  func.func @transform_5(%arg0: i32) -> (i32, i32) {
    %c0_i32 = arith.constant 0 : i32
    %c0_i32_0 = arith.constant 0 : i32
    %c0_i32_1 = arith.constant 0 : i32
    return %c0_i32, %c0_i32_0 : i32, i32
  }
  func.func @transform_6(%arg0: i32) -> (i32, i32, i32) {
    %c0_i32 = arith.constant 0 : i32
    %c0_i32_0 = arith.constant 0 : i32
    %c0_i32_1 = arith.constant 0 : i32
    return %arg0, %c0_i32, %c0_i32_0 : i32, i32, i32
  }
}

</mosaic_0001>

<bundles_post_ra>
// kernel: tpu_custom_call.1
= control target key start
LH: loop header
LB: loop body
LE: loop exit
PB: predicated region body
PF: predicated region fallthrough
CT: control target
= control target key end

     0   :  { %11 = vsyncpa [#allocation3], 0  ;;  %s4008_s0 = inlined_call_operand.vmem [shape: f32[2,4,256], index: 0, kind: input, shape index: {}]   ;;  %s4009_s1 = inlined_call_operand.vmem [shape: f32[9,1,256], index: 1, kind: input, shape index: {}]   ;;  %s4010_s2 = inlined_call_operand.vmem [shape: f32[9,4,4,1], index: 2, kind: input, shape index: {}]   ;;  %s4011_s3 = inlined_call_operand.vmem [shape: f32[4,1], index: 3, kind: input, shape index: {}]   ;;  %s4012_s4 = inlined_call_operand.vmem [shape: f32[9,4,4,1], index: 4, kind: input, shape index: {}]   ;;  %s4013_s5 = inlined_call_operand.vmem [shape: f32[4,1], index: 5, kind: input, shape index: {}]   ;;  %s4014_s6 = inlined_call_operand.hbm [shape: f32[2,4,256], index: 6, kind: output, shape index: {}]  }
   0x1   :  { %13 = vsyncpa [#allocation3 + $0x1], 0  ;;  %s2599_s21 = smov 0   ;;  %s2601_s22 = smov 0  }
   0x2   :  { %s2603_s23 = smov 0   ;;  %s2605_s24 = smov 0  }
   0x3 LB: > { %s2620_s25 = sadd.s32 4294967295, %s2552_s24   ;;  %s2423_s26 = sadd.s32 4294967294, %s2552_s24   ;;  %s2552_s24 = sphi %s2605_s24, %s4107_s24   ;;  %s2548_s23 = sphi %s2603_s23, %s4106_s23   ;;  %s2544_s22 = sphi %s2601_s22, %s4105_s22   ;;  %s2540_s21 = sphi %s2599_s21, %s4104_s21  }
   0x4   : > { %s2624_s27 = sadd.s32 1, %s2552_s24   ;;  %s157_s28 = sadd.s32 1, %s2548_s23 }
   0x5   : > { %s154_s29 = ssub.s32 %s2552_s24, %s2624_s27  ;;  %p167_p0 = scmp.ne.s32.totalorder %s2548_s23, %s2544_s22 }
   0x6   : > { %p155_p1 = scmp.eq.s32.totalorder %s154_s29, 0  ;;  %p168_p2 = scmp.eq.s32.totalorder %s2620_s25, 1 }
   0x7   : > { %p173_p3 = scmp.ne.s32.totalorder %s2544_s22, %s2540_s21  ;;  %p174_p4 = scmp.eq.s32.totalorder %s2423_s26, 1 }
   0x8   : > { %s2635_s30 = scalar_select %p155_p1, %s2548_s23, %s157_s28  }
   0x9   : > { %p2637_p5 = por %p168_p2, %p167_p0  ;;  %p2641_p6 = por %p174_p4, %p173_p3 }
   0xa   : > { %p2426_p7 = scmp.ge.s32.totalorder %s2552_s24, 1  ;;  %p215_p8 = scmp.lt.s32.totalorder %s2552_s24, 3 }
   0xc   : > { %p216_p9 = pnand %p2426_p7, %p215_p8 }
   0xe   : > { %219 = sbr.rel (%p216_p9) target bundleno = 643 (0x283), region = 44 }
  0x15   : > { %v260_v0 = vld [vmem:[%s4010_s2] sm:$0xf]  ;;  %p245_p10 = scmp.lt.s32.totalorder %s2620_s25, 1  ;;  %v2554_v1 = vmov 0   ;;  %v261_v2 = vld [vmem:[%s4010_s2 + $0x4] sm:$0xf]  ;;  %v303_v43 = vlaneseq }
  0x16   : > { %2485 = vset.pattern.permute.xlu1 %v2554_v1  ;;  %2486 = vset.pattern.permute.xlu0 %v2554_v1  ;;  %s2555_s18 = smov 17   ;;  %v263_v4 = vld [vmem:[%s4010_s2 + $0xc] sm:$0xf]  ;;  %v262_v6 = vld [vmem:[%s4010_s2 + $0x8] sm:$0xf]  ;;  %s2556_s29 = smov 16  }
  0x17   : > { %323 = vperm.xlu1 %2485, %v260_v0   ;;  %s246_s11 = scalar_select %p245_p10, %s2620_s25, 1  ;;  %v264_v7 = vld [vmem:[%s4010_s2 + $0x10] sm:$0xf]  ;;  %v266_v8 = vld [vmem:[%s4010_s2 + $0x18] sm:$0xf]  ;;  %v310_v46 = vshrl.u32 %v303_v43, 7 }
  0x18   : > { %v265_v9 = vld [vmem:[%s4010_s2 + $0x14] sm:$0xf]  ;;  %v267_v10 = vld [vmem:[%s4010_s2 + $0x1c] sm:$0xf]  ;;  %s2557_s19 = smov 15   ;;  %s4021_s10 = smov 127  }
  0x19   : > { %s2435_s14 = sshll.u32 %s246_s11, 3  ;;  %v268_v11 = vld [vmem:[%s4010_s2 + $0x20] sm:$0xf]  ;;  %v270_v12 = vld [vmem:[%s4010_s2 + $0x28] sm:$0xf]  ;;  %s4015_s9 = smov 113  }
  0x1a   : > { %s2658_s17 = scalar_lea.vmem %s4008_s0, %s2435_s14  ;;  %v269_v13 = vld [vmem:[%s4010_s2 + $0x24] sm:$0xf]  ;;  %v271_v14 = vld [vmem:[%s4010_s2 + $0x2c] sm:$0xf]  ;;  %s2558_s14 = smov 1   ;;  %v2825_v49 = vand.u32 127, %v303_v43 }
  0x1b   : > { %328 = vperm.xlu1 %2485, %v261_v2   ;;  %v2661_v3 = vld [vmem:[%s2658_s17] sm:$0xff]  ;;  %v272_v15 = vld [vmem:[%s4010_s2 + $0x30] sm:$0xf]  ;;  %v274_v16 = vld [vmem:[%s4010_s2 + $0x38] sm:$0xf]  ;;  %s4017_s11 = smov 112  }
  0x1c   : > { %299 = vrot.lane.b32.xlu0 %v2661_v3, %s2555_s18  ;;  %v2670_v5 = vcombine.high %v2661_v3, %v2661_v3  ;;  %v273_v17 = vld [vmem:[%s4010_s2 + $0x34] sm:$0xf]  ;;  %v276_v18 = vld [vmem:[%s4010_s2 + $0x40] sm:$0xf]  ;;  %v275_v19 = vld [vmem:[%s4010_s2 + $0x3c] sm:$0xf] }
  0x1d   : > { %v278_v20 = vld [vmem:[%s4010_s2 + $0x48] sm:$0xf]  ;;  %v277_v21 = vld [vmem:[%s4010_s2 + $0x44] sm:$0xf]  ;;  %v279_v22 = vld [vmem:[%s4010_s2 + $0x4c] sm:$0xf] }
  0x1e   : > { %v280_v23 = vld [vmem:[%s4010_s2 + $0x50] sm:$0xf]  ;;  %v282_v24 = vld [vmem:[%s4010_s2 + $0x58] sm:$0xf]  ;;  %v281_v25 = vld [vmem:[%s4010_s2 + $0x54] sm:$0xf] }
  0x1f   : > { %338 = vperm.xlu1 %2485, %v263_v4   ;;  %v283_v26 = vld [vmem:[%s4010_s2 + $0x5c] sm:$0xf]  ;;  %v284_v27 = vld [vmem:[%s4010_s2 + $0x60] sm:$0xf]  ;;  %v286_v28 = vld [vmem:[%s4010_s2 + $0x68] sm:$0xf] }
  0x20   : > { %301 = vrot.lane.b32.xlu0 %v2670_v5, %s2555_s18  ;;  %v285_v29 = vld [vmem:[%s4010_s2 + $0x64] sm:$0xf]  ;;  %v287_v30 = vld [vmem:[%s4010_s2 + $0x6c] sm:$0xf]  ;;  %v288_v31 = vld [vmem:[%s4010_s2 + $0x70] sm:$0xf] }
  0x21   : > { %v290_v32 = vld [vmem:[%s4010_s2 + $0x78] sm:$0xf]  ;;  %v289_v33 = vld [vmem:[%s4010_s2 + $0x74] sm:$0xf]  ;;  %v291_v34 = vld [vmem:[%s4010_s2 + $0x7c] sm:$0xf] }
  0x22   : > { %v292_v35 = vld [vmem:[%s4010_s2 + $0x80] sm:$0xf]  ;;  %v294_v36 = vld [vmem:[%s4010_s2 + $0x88] sm:$0xf]  ;;  %v293_v37 = vld [vmem:[%s4010_s2 + $0x84] sm:$0xf] }
  0x23   : > { %406 = vrot.lane.b32.xlu1 %v2661_v3, %s2556_s29  ;;  %v1299_v38 = vld [vmem:[%s4011_s3] sm:$0xf]  ;;  %v295_v39 = vld [vmem:[%s4010_s2 + $0x8c] sm:$0xf]  ;;  %v1328_v40 = vld [vmem:[%s4012_s4 + $0x4] sm:$0xf] }
  0x24   : > { %333 = vperm.xlu0 %2486, %v262_v6   ;;  %v1327_v41 = vld [vmem:[%s4012_s4] sm:$0xf]  ;;  %v1330_v42 = vld [vmem:[%s4012_s4 + $0xc] sm:$0xf]  ;;  %v1329_v44 = vld [vmem:[%s4012_s4 + $0x8] sm:$0xf] }
  0x25   : > { %v1332_v45 = vld [vmem:[%s4012_s4 + $0x14] sm:$0xf]  ;;  %v1331_v47 = vld [vmem:[%s4012_s4 + $0x10] sm:$0xf]  ;;  %v1334_v48 = vld [vmem:[%s4012_s4 + $0x1c] sm:$0xf] }
  0x26   : > { %v2827_v50 = vsub.s32 0, %v310_v46  ;;  %v2829_v51 = vsub.s32 1, %v310_v46  ;;  %v1333_v52 = vld [vmem:[%s4012_s4 + $0x18] sm:$0xf]  ;;  %v251_v53 = vld [vmem:[%s4009_s1] sm:$0x3] }
  0x27   : > { %428 = vperm.xlu1 %2485, %v264_v7   ;;  %vm305_vm0 = vcmp.lt.s32.totalorder %v2825_v49, 17  ;;  %v1336_v57 = vld [vmem:[%s4012_s4 + $0x24] sm:$0xf]  ;;  %v1335_v58 = vld [vmem:[%s4012_s4 + $0x20] sm:$0xf]  ;;  %vm349_vm1 = vcmask 1043456  }
  0x28   : > { %408 = vrot.lane.b32.xlu0 %v2670_v5, %s2556_s29  ;;  %v2839_v55 = vrot.slane %v251_v53, %v2827_v50  ;;  %v2842_v56 = vrot.slane %v251_v53, %v2829_v51  ;;  %v1338_v0 = vld [vmem:[%s4012_s4 + $0x2c] sm:$0xf]  ;;  %v1337_v1 = vld [vmem:[%s4012_s4 + $0x28] sm:$0xf]  ;;  %v1340_v7 = vld [vmem:[%s4012_s4 + $0x34] sm:$0xf] }
  0x29   : > { %v255_v2 = vld [vmem:[%s4009_s1 + $0x8] sm:$0x3]  ;;  %vm410_vm2 = vcmp.lt.s32.totalorder %v2825_v49, 16  ;;  %v1342_v43 = vld [vmem:[%s4012_s4 + $0x3c] sm:$0xf]  ;;  %vm522_vm3 = vcmp.lt.s32.totalorder %v2825_v49, 15 }
  0x2a   : > { %4042 = vst [vmem:[#allocation5_spill] sm:$0xff] %v2839_v55  ;;  %4043 = vst [vmem:[#allocation6_spill] sm:$0xff] %v2842_v56  ;;  %v256_v46 = vld [vmem:[%s4009_s1 + $0xa] sm:$0x3]  ;;  %vm634_vm4 = vcmp.lt.s32.totalorder %v2825_v49, 1  ;;  %vm855_vm5 = vcmp.lt.s32.totalorder %v2825_v49, 127 }
  0x2b   : > { %438 = vperm.xlu1 %2485, %v266_v8   ;;  %v2875_v8 = vrot.slane %v255_v2, %v2827_v50  ;;  %vm967_vm6 = vcmp.lt.s32.totalorder %v2825_v49, 113  ;;  %vm1079_vm7 = vcmp.lt.s32.totalorder %v2825_v49, 112  ;;  %vm1191_vm8 = vcmp.lt.s32.totalorder %v2825_v49, 111  ;;  %s4059_s15 = smov 113   ;;  %s4060_s12 = smov 112  }
  0x2c   : > { %433 = vperm.xlu0 %2486, %v265_v9   ;;  %v2878_v9 = vrot.slane %v255_v2, %v2829_v51  ;;  %vm1372_vm9 = vcmask 1041409   ;;  %vm1375_vm10 = vcmask 1042434   ;;  %vm1378_vm11 = vcmask 1043459   ;;  %s4061_s20 = smov 111  }
  0x2d   : > { %vm2336_vm12 = vcmask 1045509   ;;  %vm2340_vm13 = vcmask 1046534   ;;  %vm2344_vm14 = vcmask 1047559  }
  0x2f   : > { %518 = vrot.lane.b32.xlu1 %v2661_v3, %s2557_s19 }
  0x30   : > { %443 = vperm.xlu0 %2486, %v267_v10  }
  0x33   : > { %540 = vperm.xlu1 %2485, %v268_v11  }
  0x34   : > { %520 = vrot.lane.b32.xlu0 %v2670_v5, %s2557_s19 }
  0x37   : > { %550 = vperm.xlu1 %2485, %v270_v12   ;;  %v1339_v12 = vld [vmem:[%s4012_s4 + $0x30] sm:$0xf] }
  0x38   : > { %545 = vperm.xlu0 %2486, %v269_v13  }
  0x3b   : > { %630 = vrot.lane.b32.xlu1 %v2661_v3, %s2558_s14 }
  0x3c   : > { %555 = vperm.xlu0 %2486, %v271_v14  }
  0x3f   : > { %652 = vperm.xlu1 %2485, %v272_v15  }
  0x40   : > { %632 = vrot.lane.b32.xlu0 %v2670_v5, %s2558_s14 }
  0x43   : > { %662 = vperm.xlu1 %2485, %v274_v16  }
  0x44   : > { %657 = vperm.xlu0 %2486, %v273_v17  }
  0x47   : > { %758 = vperm.xlu1 %2485, %v276_v18  }
  0x48   : > { %667 = vperm.xlu0 %2486, %v275_v19  }
  0x4b   : > { %768 = vperm.xlu1 %2485, %v278_v20   ;;  %v1344_v20 = vld [vmem:[%s4012_s4 + $0x44] sm:$0xf] }
  0x4c   : > { %763 = vperm.xlu0 %2486, %v277_v21   ;;  %v252_v21 = vld [vmem:[%s4009_s1 + $0x2] sm:$0x3] }
  0x4f   : > { %851 = vrot.lane.b32.xlu1 %v2661_v3, %s4021_s10 }
  0x50   : > { %773 = vperm.xlu0 %2486, %v279_v22   ;;  %v753_v22 = vcombine.low %v2875_v8, %v2878_v9 }
  0x53   : > { %873 = vperm.xlu1 %2485, %v280_v23  }
  0x54   : > { %853 = vrot.lane.b32.xlu0 %v2670_v5, %s4021_s10 }
  0x57   : > { %883 = vperm.xlu1 %2485, %v282_v24  }
  0x58   : > { %878 = vperm.xlu0 %2486, %v281_v25   ;;  %v1341_v25 = vld [vmem:[%s4012_s4 + $0x38] sm:$0xf] }
  0x5b   : > { %963 = vrot.lane.b32.xlu1 %v2661_v3, %s4015_s9 }
  0x5c   : > { %888 = vperm.xlu0 %2486, %v283_v26  }
  0x5f   : > { %985 = vperm.xlu1 %2485, %v284_v27  }
  0x60   : > { %965 = vrot.lane.b32.xlu0 %v2670_v5, %s4015_s9  ;;  %s4019_s9 = smov 111  }
  0x63   : > { %995 = vperm.xlu1 %2485, %v286_v28  }
  0x64   : > { %990 = vperm.xlu0 %2486, %v285_v29  }
  0x67   : > { %1075 = vrot.lane.b32.xlu1 %v2661_v3, %s4017_s11 }
  0x68   : > { %1000 = vperm.xlu0 %2486, %v287_v30  }
  0x6b   : > { %1097 = vperm.xlu1 %2485, %v288_v31   ;;  %v253_v31 = vld [vmem:[%s4009_s1 + $0x4] sm:$0x3] }
  0x6c   : > { %1077 = vrot.lane.b32.xlu0 %v2670_v5, %s4017_s11  ;;  %s4058_s11 = smov 127  }
  0x6f   : > { %1107 = vperm.xlu1 %2485, %v290_v32  }
  0x70   : > { %1102 = vperm.xlu0 %2486, %v289_v33  }
  0x73   : > { %1187 = vrot.lane.b32.xlu1 %v2661_v3, %s4019_s9 }
  0x74   : > { %1112 = vperm.xlu0 %2486, %v291_v34   ;;  %v2907_v34 = vrot.slane %v252_v21, %v2827_v50 }
  0x76   : > { %4044 = vst [vmem:[#allocation7_spill] sm:$0xff] %v2907_v34 }
  0x77   : > { %1209 = vperm.xlu1 %2485, %v292_v35   ;;  %v254_v35 = vld [vmem:[%s4009_s1 + $0x6] sm:$0x3] }
  0x78   : > { %1189 = vrot.lane.b32.xlu0 %v2670_v5, %s4019_s9  ;;  %v2936_v53 = vrot.slane %v254_v35, %v2827_v50  ;;  %s242_s9 = sand.u32 1, %s2544_s22  }
  0x7a   : > { %4048 = vst [vmem:[#allocation11_spill] sm:$0xff] %v2936_v53 }
  0x7b   : > { %1219 = vperm.xlu1 %2485, %v294_v36  }
  0x7c   : > { %1214 = vperm.xlu0 %2486, %v293_v37  }
  0x7f   : > { %1302 = vperm.xlu1 %2485, %v1299_v38   ;;  %v1343_v38 = vld [vmem:[%s4012_s4 + $0x40] sm:$0xf] }
  0x80   : > { %1224 = vperm.xlu0 %2486, %v295_v39   ;;  %v2916_v39 = vrot.slane %v252_v21, %v2829_v51 }
  0x82   : > { %4045 = vst [vmem:[#allocation8_spill] sm:$0xff] %v2916_v39 }
  0x83   : > { %1403 = vperm.xlu1 %2485, %v1328_v40   ;;  %v2919_v40 = vmul.f32 %v753_v22, %v2661_v3 }
  0x84   : > { %1398 = vperm.xlu0 %2486, %v1327_v41  }
  0x85   : > { %v2949_v2 = vcombine.high %v2919_v40, %v2919_v40 }
  0x87   : > { %1413 = vperm.xlu1 %2485, %v1330_v42  }
  0x88   : > { %1408 = vperm.xlu0 %2486, %v1329_v44   ;;  %v2927_v44 = vrot.slane %v253_v31, %v2827_v50 }
  0x8a   : > { %4046 = vst [vmem:[#allocation9_spill] sm:$0xff] %v2927_v44 }
  0x8b   : > { %1495 = vperm.xlu1 %2485, %v1332_v45   ;;  %v2930_v45 = vrot.slane %v253_v31, %v2829_v51  ;;  %v1346_v31 = vld [vmem:[%s4012_s4 + $0x4c] sm:$0xf] }
  0x8c   : > { %1490 = vperm.xlu0 %2486, %v1331_v47  }
  0x8d   : > { %4047 = vst [vmem:[#allocation10_spill] sm:$0xff] %v2930_v45 }
  0x8e   : > { %v300_v54 = vpop.permute.xlu0 %299 }
  0x8f   : > { %1505 = vperm.xlu1 %2485, %v1334_v48  }
  0x90   : > { %1500 = vperm.xlu0 %2486, %v1333_v52  }
  0x92   : > { %v302_v59 = vpop.permute.xlu0 %301 }
  0x93   : > { %v306_v60 = vsel %vm305_vm0, %v300_v54, %v302_v59  ;;  %v307_v61 = vsel %vm305_vm0, %v302_v59, %v300_v54  ;;  %1595 = vperm.xlu1 %2485, %v1336_v57  }
  0x94   : > { %v2855_v62 = vmul.f32 %v2839_v55, %v307_v61  ;;  %v2858_v63 = vmul.f32 %v2842_v56, %v306_v60  ;;  %1590 = vperm.xlu0 %2486, %v1335_v58   ;;  %v2939_v60 = vrot.slane %v254_v35, %v2829_v51  ;;  %v257_v61 = vld [vmem:[%s4009_s1 + $0xc] sm:$0x3] }
  0x96   : > { %v324_v4 = vpop.permute.xlu1 %323  ;;  %4049 = vst [vmem:[#allocation12_spill] sm:$0xff] %v2939_v60 }
  0x97   : > { %v341_v5 = vmul.f32 %v324_v4, %v2855_v62  ;;  %v342_v6 = vmul.f32 %v324_v4, %v2858_v63  ;;  %1605 = vperm.xlu1 %2485, %v1338_v0   ;;  %v2952_v4 = vrot.slane %v256_v46, %v2827_v50 }
  0x98   : > { %1600 = vperm.xlu0 %2486, %v1337_v1   ;;  %v1348_v1 = vld [vmem:[%s4012_s4 + $0x54] sm:$0xf] }
  0x99   : > { %v350_v10 = vsel %vm349_vm1, %v341_v5, 0.0  ;;  %v357_v11 = vsel %vm349_vm1, %v342_v6, 0.0  ;;  %v2955_v5 = vrot.slane %v256_v46, %v2829_v51 }
  0x9a   : > { %v351_v13 = vrot.slane %v350_v10, 4  ;;  %v358_v14 = vrot.slane %v357_v11, 4  ;;  %v329_v15 = vpop.permute.xlu1 %328 }
  0x9b   : > { %v343_v16 = vmul.f32 %v329_v15, %v2855_v62  ;;  %v344_v17 = vmul.f32 %v329_v15, %v2858_v63  ;;  %1695 = vperm.xlu1 %2485, %v1340_v7  }
  0x9c   : > { %v352_v18 = vadd.f32 %v351_v13, %v350_v10  ;;  %v359_v19 = vadd.f32 %v358_v14, %v357_v11  ;;  %1690 = vperm.xlu0 %2486, %v1339_v12   ;;  %v1345_v12 = vld [vmem:[%s4012_s4 + $0x48] sm:$0xf]  ;;  %v258_v13 = vld [vmem:[%s4009_s1 + $0xe] sm:$0x3] }
  0x9d   : > { %v364_v23 = vsel %vm349_vm1, %v343_v16, 0.0  ;;  %v371_v24 = vsel %vm349_vm1, %v344_v17, 0.0  ;;  %v2966_v17 = vrot.slane %v257_v61, %v2827_v50 }
  0x9e   : > { %v353_v26 = vrot.slane %v352_v18, 2  ;;  %v360_v27 = vrot.slane %v359_v19, 2  ;;  %v365_v28 = vrot.slane %v364_v23, 4  ;;  %v372_v29 = vrot.slane %v371_v24, 4  ;;  %v339_v30 = vpop.permute.xlu1 %338 }
  0x9f   : > { %v347_v32 = vmul.f32 %v339_v30, %v2855_v62  ;;  %v348_v33 = vmul.f32 %v339_v30, %v2858_v63  ;;  %1795 = vperm.xlu1 %2485, %v1344_v20   ;;  %4050 = vst [vmem:[#allocation13_spill] sm:$0xff] %v2966_v17 }
  0xa0   : > { %v366_v36 = vadd.f32 %v365_v28, %v364_v23  ;;  %v373_v37 = vadd.f32 %v372_v29, %v371_v24  ;;  %1700 = vperm.xlu0 %2486, %v1341_v25   ;;  %v354_v3 = vadd.f32 %v353_v26, %v352_v18  ;;  %v361_v47 = vadd.f32 %v360_v27, %v359_v19  ;;  %v1347_v24 = vld [vmem:[%s4012_s4 + $0x50] sm:$0xf] }
  0xa1   : > { %v392_v41 = vsel %vm349_vm1, %v347_v32, 0.0  ;;  %v399_v42 = vsel %vm349_vm1, %v348_v33, 0.0  ;;  %v2969_v18 = vrot.slane %v257_v61, %v2829_v51  ;;  %v2977_v25 = vrot.slane %v258_v13, %v2827_v50 }
  0xa2   : > { %v367_v48 = vrot.slane %v366_v36, 2  ;;  %v407_v52 = vpop.permute.xlu1 %406  ;;  %v374_v54 = vrot.slane %v373_v37, 2  ;;  %v393_v57 = vrot.slane %v392_v41, 4  ;;  %v400_v58 = vrot.slane %v399_v42, 4 }
  0xa3   : > { %1790 = vperm.xlu1 %2485, %v1343_v38   ;;  %v334_v59 = vpop.permute.xlu0 %333  ;;  %v355_v14 = vrot.slane %v354_v3, 1  ;;  %v362_v15 = vrot.slane %v361_v47, 1  ;;  %4051 = vst [vmem:[#allocation14_spill] sm:$0xff] %v2969_v18  ;;  %4052 = vst [vmem:[#allocation15_spill] sm:$0xff] %v2977_v25  ;;  %v2980_v26 = vrot.slane %v258_v13, %v2829_v51 }
  0xa4   : > { %v368_v0 = vadd.f32 %v367_v48, %v366_v36  ;;  %1705 = vperm.xlu0 %2486, %v1342_v43   ;;  %v394_v6 = vadd.f32 %v393_v57, %v392_v41  ;;  %v401_v7 = vadd.f32 %v400_v58, %v399_v42  ;;  %v345_v10 = vmul.f32 %v334_v59, %v2855_v62  ;;  %v1352_v58 = vld [vmem:[%s4012_s4 + $0x64] sm:$0xf] }
  0xa5   : > { %v346_v11 = vmul.f32 %v334_v59, %v2858_v63  ;;  %v375_v62 = vadd.f32 %v374_v54, %v373_v37  ;;  %4053 = vst [vmem:[#allocation16_spill] sm:$0xff] %v2980_v26  ;;  %v2991_v38 = vadd.f32 %v355_v14, %v354_v3  ;;  %v2993_v41 = vadd.f32 %v362_v15, %v361_v47  ;;  %v1349_v47 = vld [vmem:[%s4012_s4 + $0x58] sm:$0xf] }
  0xa6   : > { %v429_v16 = vpop.permute.xlu1 %428  ;;  %v395_v19 = vrot.slane %v394_v6, 2  ;;  %v378_v63 = vsel %vm349_vm1, %v345_v10, 0.0  ;;  %v369_v27 = vrot.slane %v368_v0, 1  ;;  %v402_v28 = vrot.slane %v401_v7, 2 }
  0xa7   : > { %v385_v20 = vsel %vm349_vm1, %v346_v11, 0.0  ;;  %1917 = vperm.xlu1 %2485, %v1348_v1   ;;  %v409_v21 = vpop.permute.xlu0 %408  ;;  %v379_v22 = vrot.slane %v378_v63, 4  ;;  %v376_v42 = vrot.slane %v375_v62, 1 }
  0xa8   : > { %v386_v23 = vrot.slane %v385_v20, 4  ;;  %1800 = vperm.xlu0 %2486, %v1345_v12   ;;  %v411_v29 = vsel %vm410_vm2, %v407_v52, %v409_v21  ;;  %v412_v30 = vsel %vm410_vm2, %v409_v21, %v407_v52  ;;  %v396_v43 = vadd.f32 %v395_v19, %v394_v6 }
  0xa9   : > { %v380_v32 = vadd.f32 %v379_v22, %v378_v63  ;;  %v424_v35 = vmul.f32 %v2907_v34, %v412_v30  ;;  %v425_v36 = vmul.f32 %v2916_v39, %v411_v29  ;;  %v2998_v59 = vadd.f32 %v369_v27, %v368_v0  ;;  %v259_v0 = vld [vmem:[%s4009_s1 + $0x10] sm:$0x3] }
  0xaa   : > { %v387_v33 = vadd.f32 %v386_v23, %v385_v20  ;;  %v439_v37 = vpop.permute.xlu1 %438  ;;  %v403_v61 = vadd.f32 %v402_v28, %v401_v7  ;;  %v3011_v19 = vadd.f32 %v376_v42, %v375_v62  ;;  %v397_v63 = vrot.slane %v396_v43, 1 }
  0xab   : > { %1912 = vperm.xlu1 %2485, %v1347_v24   ;;  %v434_v46 = vpop.permute.xlu0 %433  ;;  %v381_v48 = vrot.slane %v380_v32, 2  ;;  %v446_v54 = vmul.f32 %v429_v16, %v424_v35  ;;  %v447_v57 = vmul.f32 %v429_v16, %v425_v36  ;;  %v450_v3 = vmul.f32 %v439_v37, %v424_v35 }
  0xac   : > { %v388_v52 = vrot.slane %v387_v33, 2  ;;  %1805 = vperm.xlu0 %2486, %v1346_v31   ;;  %v451_v1 = vmul.f32 %v439_v37, %v425_v36  ;;  %v404_v23 = vrot.slane %v403_v61, 1  ;;  %v448_v24 = vmul.f32 %v434_v46, %v424_v35 }
  0xad   : > { %v382_v6 = vadd.f32 %v381_v48, %v380_v32  ;;  %v454_v11 = vsel %vm349_vm1, %v446_v54, 0.0  ;;  %v461_v12 = vsel %vm349_vm1, %v447_v57, 0.0  ;;  %v482_v14 = vsel %vm349_vm1, %v450_v3, 0.0 }
  0xae   : > { %v389_v10 = vadd.f32 %v388_v52, %v387_v33  ;;  %v455_v13 = vrot.slane %v454_v11, 4  ;;  %v462_v7 = vrot.slane %v461_v12, 4  ;;  %v489_v15 = vsel %vm349_vm1, %v451_v1, 0.0  ;;  %v519_v16 = vpop.permute.xlu1 %518 }
  0xaf   : > { %2017 = vperm.xlu1 %2485, %v1352_v58   ;;  %v483_v20 = vrot.slane %v482_v14, 4  ;;  %v490_v21 = vrot.slane %v489_v15, 4  ;;  %v444_v22 = vpop.permute.xlu0 %443  ;;  %v449_v27 = vmul.f32 %v434_v46, %v425_v36  ;;  %v3014_v28 = vrot.slane %v259_v0, %v2827_v50 }
  0xb0   : > { %1922 = vperm.xlu0 %2486, %v1349_v47   ;;  %v383_v29 = vrot.slane %v382_v6, 1  ;;  %v390_v30 = vrot.slane %v389_v10, 1  ;;  %v456_v33 = vadd.f32 %v455_v13, %v454_v11  ;;  %v463_v37 = vadd.f32 %v462_v7, %v461_v12 }
  0xb1   : > { %4054 = vst [vmem:[#allocation17_spill] sm:$0xff] %v3014_v28  ;;  %v484_v31 = vadd.f32 %v483_v20, %v482_v14  ;;  %v491_v32 = vadd.f32 %v490_v21, %v489_v15  ;;  %v468_v62 = vsel %vm349_vm1, %v448_v24, 0.0  ;;  %v475_v42 = vsel %vm349_vm1, %v449_v27, 0.0 }
  0xb2   : > { %v469_v54 = vrot.slane %v468_v62, 4  ;;  %v476_v57 = vrot.slane %v475_v42, 4  ;;  %v3018_v58 = vadd.f32 %v397_v63, %v396_v43  ;;  %v3020_v46 = vadd.f32 %v404_v23, %v403_v61  ;;  %v541_v1 = vpop.permute.xlu1 %540 }
  0xb3   : > { %v485_v48 = vrot.slane %v484_v31, 2  ;;  %v492_v52 = vrot.slane %v491_v32, 2  ;;  %v452_v50 = vmul.f32 %v444_v22, %v424_v35  ;;  %v453_v3 = vmul.f32 %v444_v22, %v425_v36  ;;  %v521_v12 = vpop.permute.xlu0 %520 }
  0xb4   : > { %v470_v14 = vadd.f32 %v469_v54, %v468_v62  ;;  %v477_v11 = vadd.f32 %v476_v57, %v475_v42  ;;  %v384_v13 = vadd.f32 %v383_v29, %v382_v6  ;;  %v391_v7 = vadd.f32 %v390_v30, %v389_v10 }
  0xb5   : > { %v486_v47 = vadd.f32 %v485_v48, %v484_v31  ;;  %v493_v0 = vadd.f32 %v492_v52, %v491_v32  ;;  %v496_v15 = vsel %vm349_vm1, %v452_v50, 0.0  ;;  %v503_v20 = vsel %vm349_vm1, %v453_v3, 0.0 }
  0xb6   : > { %v457_v21 = vrot.slane %v456_v33, 2  ;;  %v464_v24 = vrot.slane %v463_v37, 2  ;;  %v471_v43 = vrot.slane %v470_v14, 2  ;;  %v478_v63 = vrot.slane %v477_v11, 2  ;;  %v551_v62 = vpop.permute.xlu1 %550 }
  0xb7   : > { %v497_v61 = vrot.slane %v496_v15, 4  ;;  %v504_v23 = vrot.slane %v503_v20, 4  ;;  %v523_v35 = vsel %vm522_vm3, %v519_v16, %v521_v12  ;;  %v524_v36 = vsel %vm522_vm3, %v521_v12, %v519_v16  ;;  %v546_v57 = vpop.permute.xlu0 %545 }
  0xb8   : > { %v487_v22 = vrot.slane %v486_v47, 1  ;;  %v494_v27 = vrot.slane %v493_v0, 1  ;;  %v472_v6 = vadd.f32 %v471_v43, %v470_v14  ;;  %v479_v10 = vadd.f32 %v478_v63, %v477_v11 }
  0xb9   : > { %v498_v29 = vadd.f32 %v497_v61, %v496_v15  ;;  %v505_v30 = vadd.f32 %v504_v23, %v503_v20  ;;  %v536_v31 = vmul.f32 %v2927_v44, %v524_v36  ;;  %v537_v32 = vmul.f32 %v2930_v45, %v523_v35 }
  0xba   : > { %v3030_v42 = vadd.f32 %v457_v21, %v456_v33  ;;  %v3032_v48 = vadd.f32 %v464_v24, %v463_v37  ;;  %v473_v52 = vrot.slane %v472_v6, 1  ;;  %v480_v54 = vrot.slane %v479_v10, 1  ;;  %v631_v36 = vpop.permute.xlu1 %630 }
  0xbb   : > { %v499_v50 = vrot.slane %v498_v29, 2  ;;  %v506_v16 = vrot.slane %v505_v30, 2  ;;  %v558_v3 = vmul.f32 %v541_v1, %v536_v31  ;;  %v559_v12 = vmul.f32 %v541_v1, %v537_v32 }
  0xbc   : > { %v488_v14 = vadd.f32 %v487_v22, %v486_v47  ;;  %v495_v11 = vadd.f32 %v494_v27, %v493_v0  ;;  %v562_v15 = vmul.f32 %v551_v62, %v536_v31  ;;  %v563_v20 = vmul.f32 %v551_v62, %v537_v32  ;;  %v556_v62 = vpop.permute.xlu0 %555 }
  0xbd   : > { %v500_v43 = vadd.f32 %v499_v50, %v498_v29  ;;  %v507_v63 = vadd.f32 %v506_v16, %v505_v30  ;;  %v566_v61 = vsel %vm349_vm1, %v558_v3, 0.0  ;;  %v573_v33 = vsel %vm349_vm1, %v559_v12, 0.0 }
  0xbe   : > { %v567_v24 = vrot.slane %v566_v61, 4  ;;  %v574_v23 = vrot.slane %v573_v33, 4  ;;  %v474_v35 = vadd.f32 %v473_v52, %v472_v6  ;;  %v481_v1 = vadd.f32 %v480_v54, %v479_v10 }
  0xbf   : > { %v594_v47 = vsel %vm349_vm1, %v562_v15, 0.0  ;;  %v601_v0 = vsel %vm349_vm1, %v563_v20, 0.0  ;;  %v501_v22 = vrot.slane %v500_v43, 1  ;;  %v508_v27 = vrot.slane %v507_v63, 1 }
  0xc0   : > { %v595_v29 = vrot.slane %v594_v47, 4  ;;  %v602_v30 = vrot.slane %v601_v0, 4  ;;  %v3041_v50 = vadd.f32 %v488_v14, %v384_v13  ;;  %v3043_v16 = vadd.f32 %v495_v11, %v391_v7 }
  0xc1   : > { %v560_v3 = vmul.f32 %v546_v57, %v536_v31  ;;  %v561_v12 = vmul.f32 %v546_v57, %v537_v32  ;;  %v568_v21 = vadd.f32 %v567_v24, %v566_v61  ;;  %v575_v37 = vadd.f32 %v574_v23, %v573_v33  ;;  %v653_v24 = vpop.permute.xlu1 %652 }
  0xc2   : > { %v596_v6 = vadd.f32 %v595_v29, %v594_v47  ;;  %v603_v10 = vadd.f32 %v602_v30, %v601_v0  ;;  %v3046_v52 = vadd.f32 %v474_v35, %v2998_v59  ;;  %v3049_v54 = vadd.f32 %v481_v1, %v3011_v19  ;;  %v633_v0 = vpop.permute.xlu0 %632 }
  0xc3   : > { %v580_v15 = vsel %vm349_vm1, %v560_v3, 0.0  ;;  %v587_v20 = vsel %vm349_vm1, %v561_v12, 0.0  ;;  %v502_v13 = vadd.f32 %v501_v22, %v500_v43  ;;  %v509_v14 = vadd.f32 %v508_v27, %v507_v63 }
  0xc4   : > { %v597_v7 = vrot.slane %v596_v6, 2  ;;  %v604_v11 = vrot.slane %v603_v10, 2  ;;  %v581_v45 = vrot.slane %v580_v15, 4  ;;  %v588_v57 = vrot.slane %v587_v20, 4 }
  0xc5   : > { %v564_v61 = vmul.f32 %v556_v62, %v536_v31  ;;  %v565_v33 = vmul.f32 %v556_v62, %v537_v32  ;;  %v569_v23 = vrot.slane %v568_v21, 2  ;;  %v576_v47 = vrot.slane %v575_v37, 2 }
  0xc6   : > { %v598_v59 = vadd.f32 %v597_v7, %v596_v6  ;;  %v605_v35 = vadd.f32 %v604_v11, %v603_v10  ;;  %v582_v19 = vadd.f32 %v581_v45, %v580_v15  ;;  %v589_v1 = vadd.f32 %v588_v57, %v587_v20  ;;  %v663_v57 = vpop.permute.xlu1 %662 }
  0xc7   : > { %v608_v29 = vsel %vm349_vm1, %v564_v61, 0.0  ;;  %v615_v30 = vsel %vm349_vm1, %v565_v33, 0.0  ;;  %v635_v31 = vsel %vm634_vm4, %v631_v36, %v633_v0  ;;  %v636_v32 = vsel %vm634_vm4, %v633_v0, %v631_v36 }
  0xc8   : > { %v599_v43 = vrot.slane %v598_v59, 1  ;;  %v606_v63 = vrot.slane %v605_v35, 1  ;;  %v609_v22 = vrot.slane %v608_v29, 4  ;;  %v616_v27 = vrot.slane %v615_v30, 4 }
  0xc9   : > { %v583_v3 = vrot.slane %v582_v19, 2  ;;  %v590_v12 = vrot.slane %v589_v1, 2  ;;  %v3060_v62 = vadd.f32 %v502_v13, %v3018_v58  ;;  %v3063_v45 = vadd.f32 %v509_v14, %v3020_v46 }
  0xca   : > { %v610_v6 = vadd.f32 %v609_v22, %v608_v29  ;;  %v617_v10 = vadd.f32 %v616_v27, %v615_v30  ;;  %v570_v15 = vadd.f32 %v569_v23, %v568_v21  ;;  %v577_v20 = vadd.f32 %v576_v47, %v575_v37 }
  0xcb   : > { %v3066_v7 = vmul.f32 %v2936_v53, %v636_v32  ;;  %v3069_v11 = vmul.f32 %v2939_v60, %v635_v31  ;;  %v584_v61 = vadd.f32 %v583_v3, %v582_v19  ;;  %v591_v33 = vadd.f32 %v590_v12, %v589_v1 }
  0xcc   : > { %v611_v36 = vrot.slane %v610_v6, 2  ;;  %v618_v0 = vrot.slane %v617_v10, 2  ;;  %v600_v58 = vadd.f32 %v599_v43, %v598_v59  ;;  %v607_v13 = vadd.f32 %v606_v63, %v605_v35  ;;  %v658_v43 = vpop.permute.xlu0 %657 }
  0xcd   : > { %v670_v46 = vmul.f32 %v653_v24, %v3066_v7  ;;  %v671_v14 = vmul.f32 %v653_v24, %v3069_v11  ;;  %v674_v37 = vmul.f32 %v663_v57, %v3066_v7  ;;  %v675_v23 = vmul.f32 %v663_v57, %v3069_v11 }
  0xce   : > { %v612_v29 = vadd.f32 %v611_v36, %v610_v6  ;;  %v619_v21 = vadd.f32 %v618_v0, %v617_v10  ;;  %v571_v47 = vrot.slane %v570_v15, 1  ;;  %v578_v30 = vrot.slane %v577_v20, 1 }
  0xcf   : > { %v678_v22 = vsel %vm349_vm1, %v670_v46, 0.0  ;;  %v685_v19 = vsel %vm349_vm1, %v671_v14, 0.0  ;;  %v585_v1 = vrot.slane %v584_v61, 1  ;;  %v592_v27 = vrot.slane %v591_v33, 1 }
  0xd0   : > { %v679_v59 = vrot.slane %v678_v22, 4  ;;  %v686_v35 = vrot.slane %v685_v19, 4  ;;  %v3078_v63 = vadd.f32 %v600_v58, %v3041_v50  ;;  %v3081_v24 = vadd.f32 %v607_v13, %v3043_v16  ;;  %v668_v56 = vpop.permute.xlu0 %667 }
  0xd1   : > { %v706_v3 = vsel %vm349_vm1, %v674_v37, 0.0  ;;  %v713_v12 = vsel %vm349_vm1, %v675_v23, 0.0  ;;  %v613_v31 = vrot.slane %v612_v29, 1  ;;  %v620_v32 = vrot.slane %v619_v21, 1 }
  0xd2   : > { %v680_v6 = vadd.f32 %v679_v59, %v678_v22  ;;  %v687_v10 = vadd.f32 %v686_v35, %v685_v19  ;;  %v707_v57 = vrot.slane %v706_v3, 4  ;;  %v714_v36 = vrot.slane %v713_v12, 4 }
  0xd3   : > { %v672_v0 = vmul.f32 %v658_v43, %v3066_v7  ;;  %v673_v46 = vmul.f32 %v658_v43, %v3069_v11  ;;  %v586_v14 = vadd.f32 %v585_v1, %v584_v61  ;;  %v593_v50 = vadd.f32 %v592_v27, %v591_v33  ;;  %v759_v33 = vpop.permute.xlu1 %758 }
  0xd4   : > { %v681_v58 = vrot.slane %v680_v6, 2  ;;  %v688_v60 = vrot.slane %v687_v10, 2  ;;  %v708_v16 = vadd.f32 %v707_v57, %v706_v3  ;;  %v715_v13 = vadd.f32 %v714_v36, %v713_v12 }
  0xd5   : > { %v692_v37 = vsel %vm349_vm1, %v672_v0, 0.0  ;;  %v699_v23 = vsel %vm349_vm1, %v673_v46, 0.0  ;;  %v614_v59 = vadd.f32 %v613_v31, %v612_v29  ;;  %v621_v35 = vadd.f32 %v620_v32, %v619_v21 }
  0xd6   : > { %v682_v53 = vadd.f32 %v681_v58, %v680_v6  ;;  %v689_v44 = vadd.f32 %v688_v60, %v687_v10  ;;  %v693_v22 = vrot.slane %v692_v37, 4  ;;  %v700_v19 = vrot.slane %v699_v23, 4 }
  0xd7   : > { %v709_v39 = vrot.slane %v708_v16, 2  ;;  %v716_v34 = vrot.slane %v715_v13, 2  ;;  %v4055_v1 = vrot.slane %v3030_v42, 1  ;;  %v4056_v3 = vrot.slane %v3032_v48, 1 }
  0xd8   : > { %v694_v43 = vadd.f32 %v693_v22, %v692_v37  ;;  %v701_v61 = vadd.f32 %v700_v19, %v699_v23  ;;  %v572_v10 = vadd.f32 %v571_v47, %v570_v15  ;;  %v579_v57 = vadd.f32 %v578_v30, %v577_v20 }
  0xd9   : > { %v460_v27 = vadd.f32 %v4055_v1, %v3030_v42  ;;  %v467_v12 = vadd.f32 %v4056_v3, %v3032_v48  ;;  %v710_v6 = vadd.f32 %v709_v39, %v708_v16  ;;  %v717_v60 = vadd.f32 %v716_v34, %v715_v13  ;;  %v769_v16 = vpop.permute.xlu1 %768 }
  0xda   : > { %v695_v29 = vrot.slane %v694_v43, 2  ;;  %v702_v21 = vrot.slane %v701_v61, 2  ;;  %v683_v31 = vrot.slane %v682_v53, 1  ;;  %v690_v32 = vrot.slane %v689_v44, 1 }
  0xdb   : > { %v3096_v36 = vadd.f32 %v586_v14, %v3046_v52  ;;  %v3099_v0 = vadd.f32 %v593_v50, %v3049_v54  ;;  %v711_v46 = vrot.slane %v710_v6, 1  ;;  %v718_v42 = vrot.slane %v717_v60, 1  ;;  %v764_v54 = vpop.permute.xlu0 %763 }
  0xdc   : > { %v696_v58 = vadd.f32 %v695_v29, %v694_v43  ;;  %v703_v37 = vadd.f32 %v702_v21, %v701_v61  ;;  %v510_v48 = vadd.f32 %v460_v27, %v2991_v38  ;;  %v511_v34 = vadd.f32 %v467_v12, %v2993_v41 }
  0xdd   : > { %v3104_v39 = vadd.f32 %v614_v59, %v3060_v62  ;;  %v3107_v15 = vadd.f32 %v621_v35, %v3063_v45  ;;  %v779_v52 = vmul.f32 %v759_v33, %v2919_v40  ;;  %v780_v20 = vmul.f32 %v2949_v2, %v759_v33 }
  0xde   : > { %v622_v47 = vadd.f32 %v572_v10, %v510_v48  ;;  %v623_v30 = vadd.f32 %v579_v57, %v511_v34  ;;  %v684_v14 = vadd.f32 %v683_v31, %v682_v53  ;;  %v691_v50 = vadd.f32 %v690_v32, %v689_v44  ;;  %v852_v34 = vpop.permute.xlu1 %851 }
  0xdf   : > { %v3111_v13 = vadd.f32 %v711_v46, %v710_v6  ;;  %v3113_v38 = vadd.f32 %v718_v42, %v717_v60  ;;  %v787_v41 = vsel %vm349_vm1, %v779_v52, 0.0  ;;  %v794_v62 = vsel %vm349_vm1, %v780_v20, 0.0  ;;  %v774_v6 = vpop.permute.xlu0 %773 }
  0xe0   : > { %v697_v45 = vrot.slane %v696_v58, 1  ;;  %v704_v23 = vrot.slane %v703_v37, 1  ;;  %v788_v22 = vrot.slane %v787_v41, 4  ;;  %v795_v19 = vrot.slane %v794_v62, 4 }
  0xe1   : > { %v676_v59 = vmul.f32 %v668_v56, %v3066_v7  ;;  %v677_v35 = vmul.f32 %v668_v56, %v3069_v11  ;;  %v783_v53 = vmul.f32 %v769_v16, %v2919_v40  ;;  %v784_v44 = vmul.f32 %v2949_v2, %v769_v16 }
  0xe2   : > { %v3121_v43 = vadd.f32 %v684_v14, %v622_v47  ;;  %v3123_v61 = vadd.f32 %v691_v50, %v623_v30  ;;  %v789_v33 = vadd.f32 %v788_v22, %v787_v41  ;;  %v796_v1 = vadd.f32 %v795_v19, %v794_v62 }
  0xe3   : > { %v720_v27 = vsel %vm349_vm1, %v676_v59, 0.0  ;;  %v727_v3 = vsel %vm349_vm1, %v677_v35, 0.0  ;;  %v815_v12 = vsel %vm349_vm1, %v783_v53, 0.0  ;;  %v822_v7 = vsel %vm349_vm1, %v784_v44, 0.0  ;;  %v854_v59 = vpop.permute.xlu0 %853 }
  0xe4   : > { %v790_v56 = vrot.slane %v789_v33, 2  ;;  %v797_v11 = vrot.slane %v796_v1, 2  ;;  %v721_v60 = vrot.slane %v720_v27, 4  ;;  %v728_v10 = vrot.slane %v727_v3, 4 }
  0xe5   : > { %v816_v57 = vrot.slane %v815_v12, 4  ;;  %v823_v29 = vrot.slane %v822_v7, 4  ;;  %v781_v21 = vmul.f32 %v764_v54, %v2919_v40  ;;  %v782_v31 = vmul.f32 %v2949_v2, %v764_v54 }
  0xe6   : > { %v791_v32 = vadd.f32 %v790_v56, %v789_v33  ;;  %v798_v46 = vadd.f32 %v797_v11, %v796_v1  ;;  %v722_v42 = vadd.f32 %v721_v60, %v720_v27  ;;  %v729_v48 = vadd.f32 %v728_v10, %v727_v3  ;;  %v874_v10 = vpop.permute.xlu1 %873 }
  0xe7   : > { %v817_v52 = vadd.f32 %v816_v57, %v815_v12  ;;  %v824_v20 = vadd.f32 %v823_v29, %v822_v7  ;;  %v801_v47 = vsel %vm349_vm1, %v781_v21, 0.0  ;;  %v808_v30 = vsel %vm349_vm1, %v782_v31, 0.0 }
  0xe8   : > { %v792_v14 = vrot.slane %v791_v32, 1  ;;  %v799_v50 = vrot.slane %v798_v46, 1  ;;  %v723_v16 = vrot.slane %v722_v42, 2  ;;  %v730_v41 = vrot.slane %v729_v48, 2 }
  0xe9   : > { %v818_v62 = vrot.slane %v817_v52, 2  ;;  %v825_v22 = vrot.slane %v824_v20, 2  ;;  %v802_v54 = vrot.slane %v801_v47, 4  ;;  %v809_v19 = vrot.slane %v808_v30, 4 }
  0xea   : > { %v698_v35 = vadd.f32 %v697_v45, %v696_v58  ;;  %v705_v53 = vadd.f32 %v704_v23, %v703_v37  ;;  %v724_v44 = vadd.f32 %v723_v16, %v722_v42  ;;  %v731_v33 = vadd.f32 %v730_v41, %v729_v48  ;;  %v879_v48 = vpop.permute.xlu0 %878 }
  0xeb   : > { %v819_v1 = vadd.f32 %v818_v62, %v817_v52  ;;  %v826_v27 = vadd.f32 %v825_v22, %v824_v20  ;;  %v803_v3 = vadd.f32 %v802_v54, %v801_v47  ;;  %v810_v12 = vadd.f32 %v809_v19, %v808_v30  ;;  %v884_v30 = vpop.permute.xlu1 %883 }
  0xec   : > { %v793_v7 = vadd.f32 %v792_v14, %v791_v32  ;;  %v800_v56 = vadd.f32 %v799_v50, %v798_v46  ;;  %v725_v11 = vrot.slane %v724_v44, 1  ;;  %v732_v60 = vrot.slane %v731_v33, 1 }
  0xed   : > { %v820_v57 = vrot.slane %v819_v1, 1  ;;  %v827_v29 = vrot.slane %v826_v27, 1  ;;  %v804_v21 = vrot.slane %v803_v3, 2  ;;  %v811_v31 = vrot.slane %v810_v12, 2 }
  0xee   : > { %v738_v55 = vadd.f32 %v3111_v13, %v3078_v63  ;;  %v739_v58 = vadd.f32 %v3113_v38, %v3081_v24  ;;  %v785_v37 = vmul.f32 %v774_v6, %v2919_v40  ;;  %v786_v45 = vmul.f32 %v2949_v2, %v774_v6 }
  0xef   : > { %v3141_v23 = vadd.f32 %v698_v35, %v3096_v36  ;;  %v3144_v32 = vadd.f32 %v705_v53, %v3099_v0  ;;  %v726_v46 = vadd.f32 %v725_v11, %v724_v44  ;;  %v733_v42 = vadd.f32 %v732_v60, %v731_v33  ;;  %v964_v11 = vpop.permute.xlu1 %963 }
  0xf0   : > { %v821_v52 = vadd.f32 %v820_v57, %v819_v1  ;;  %v828_v20 = vadd.f32 %v827_v29, %v826_v27  ;;  %v829_v63 = vsel %vm349_vm1, %v785_v37, 0.0  ;;  %v836_v13 = vsel %vm349_vm1, %v786_v45, 0.0 }
  0xf1   : > { %v3149_v24 = vadd.f32 %v793_v7, %v3121_v43  ;;  %v3152_v40 = vadd.f32 %v800_v56, %v3123_v61  ;;  %v805_v2 = vadd.f32 %v804_v21, %v803_v3  ;;  %v812_v36 = vadd.f32 %v811_v31, %v810_v12 }
  0xf2   : > { %v830_v38 = vrot.slane %v829_v63, 4  ;;  %v837_v0 = vrot.slane %v836_v13, 4  ;;  %v856_v6 = vsel %vm855_vm5, %v852_v34, %v854_v59  ;;  %v857_v47 = vsel %vm855_vm5, %v854_v59, %v852_v34  ;;  %v889_v59 = vpop.permute.xlu0 %888 }
  0xf3   : > { %v3159_v14 = vadd.f32 %v726_v46, %v3104_v39  ;;  %v3162_v43 = vadd.f32 %v733_v42, %v3107_v15  ;;  %v869_v61 = vmul.f32 %v2952_v4, %v856_v6  ;;  %v870_v50 = vmul.f32 %v2955_v5, %v857_v47 }
  0xf4   : > { %v3167_v16 = vadd.f32 %v821_v52, %v738_v55  ;;  %v3169_v41 = vadd.f32 %v828_v20, %v739_v58  ;;  %v831_v62 = vadd.f32 %v830_v38, %v829_v63  ;;  %v838_v22 = vadd.f32 %v837_v0, %v836_v13 }
  0xf5   : > { %v806_v34 = vrot.slane %v805_v2, 1  ;;  %v813_v54 = vrot.slane %v812_v36, 1  ;;  %v891_v19 = vmul.f32 %v874_v10, %v869_v61  ;;  %v892_v39 = vmul.f32 %v874_v10, %v870_v50 }
  0xf6   : > { %v832_v35 = vrot.slane %v831_v62, 2  ;;  %v839_v15 = vrot.slane %v838_v22, 2  ;;  %v895_v53 = vmul.f32 %v884_v30, %v869_v61  ;;  %v896_v44 = vmul.f32 %v884_v30, %v870_v50  ;;  %v966_v52 = vpop.permute.xlu0 %965 }
  0xf7   : > { %v899_v33 = vsel %vm349_vm1, %v891_v19, 0.0  ;;  %v906_v1 = vsel %vm349_vm1, %v892_v39, 0.0  ;;  %v893_v27 = vmul.f32 %v879_v48, %v869_v61  ;;  %v894_v55 = vmul.f32 %v879_v48, %v870_v50  ;;  %v986_v19 = vpop.permute.xlu1 %985 }
  0xf8   : > { %v833_v3 = vadd.f32 %v832_v35, %v831_v62  ;;  %v840_v12 = vadd.f32 %v839_v15, %v838_v22  ;;  %v900_v7 = vrot.slane %v899_v33, 4  ;;  %v907_v56 = vrot.slane %v906_v1, 4 }
  0xf9   : > { %v927_v60 = vsel %vm349_vm1, %v895_v53, 0.0  ;;  %v934_v10 = vsel %vm349_vm1, %v896_v44, 0.0  ;;  %v913_v57 = vsel %vm349_vm1, %v893_v27, 0.0  ;;  %v920_v29 = vsel %vm349_vm1, %v894_v55, 0.0 }
  0xfa   : > { %v807_v21 = vadd.f32 %v806_v34, %v805_v2  ;;  %v814_v31 = vadd.f32 %v813_v54, %v812_v36  ;;  %v901_v58 = vadd.f32 %v900_v7, %v899_v33  ;;  %v908_v37 = vadd.f32 %v907_v56, %v906_v1 }
  0xfb   : > { %v928_v45 = vrot.slane %v927_v60, 4  ;;  %v935_v46 = vrot.slane %v934_v10, 4  ;;  %v914_v42 = vrot.slane %v913_v57, 4  ;;  %v921_v48 = vrot.slane %v920_v29, 4 }
  0xfc   : > { %v834_v20 = vrot.slane %v833_v3, 1  ;;  %v841_v63 = vrot.slane %v840_v12, 1  ;;  %v902_v13 = vrot.slane %v901_v58, 2  ;;  %v909_v38 = vrot.slane %v908_v37, 2 }
  0xfd   : > { %v929_v0 = vadd.f32 %v928_v45, %v927_v60  ;;  %v936_v6 = vadd.f32 %v935_v46, %v934_v10  ;;  %v915_v47 = vadd.f32 %v914_v42, %v913_v57  ;;  %v922_v30 = vadd.f32 %v921_v48, %v920_v29  ;;  %v996_v45 = vpop.permute.xlu1 %995 }
  0xfe   : > { %v903_v62 = vadd.f32 %v902_v13, %v901_v58  ;;  %v910_v22 = vadd.f32 %v909_v38, %v908_v37  ;;  %v968_v2 = vsel %vm967_vm6, %v964_v11, %v966_v52  ;;  %v969_v36 = vsel %vm967_vm6, %v966_v52, %v964_v11 }
  0xff   : > { %v930_v34 = vrot.slane %v929_v0, 2  ;;  %v937_v54 = vrot.slane %v936_v6, 2  ;;  %v916_v39 = vrot.slane %v915_v47, 2  ;;  %v923_v35 = vrot.slane %v922_v30, 2 }
 0x100   : > { %v835_v15 = vadd.f32 %v834_v20, %v833_v3  ;;  %v842_v53 = vadd.f32 %v841_v63, %v840_v12  ;;  %v897_v44 = vmul.f32 %v889_v59, %v869_v61  ;;  %v898_v33 = vmul.f32 %v889_v59, %v870_v50  ;;  %v991_v3 = vpop.permute.xlu0 %990 }
 0x101   : > { %v904_v1 = vrot.slane %v903_v62, 1  ;;  %v911_v27 = vrot.slane %v910_v22, 1  ;;  %v931_v55 = vadd.f32 %v930_v34, %v929_v0  ;;  %v938_v7 = vadd.f32 %v937_v54, %v936_v6 }
 0x102   : > { %v845_v56 = vadd.f32 %v807_v21, %v3141_v23  ;;  %v846_v60 = vadd.f32 %v814_v31, %v3144_v32  ;;  %v941_v10 = vsel %vm349_vm1, %v897_v44, 0.0  ;;  %v948_v11 = vsel %vm349_vm1, %v898_v33, 0.0 }
 0x103   : > { %v932_v57 = vrot.slane %v931_v55, 1  ;;  %v939_v29 = vrot.slane %v938_v7, 1  ;;  %v917_v58 = vadd.f32 %v916_v39, %v915_v47  ;;  %v924_v37 = vadd.f32 %v923_v35, %v922_v30  ;;  %v1076_v39 = vpop.permute.xlu1 %1075 }
 0x104   : > { %v942_v12 = vrot.slane %v941_v10, 4  ;;  %v949_v61 = vrot.slane %v948_v11, 4  ;;  %v981_v50 = vmul.f32 %v2966_v17, %v968_v2  ;;  %v982_v59 = vmul.f32 %v2969_v18, %v969_v36  ;;  %v1001_v2 = vpop.permute.xlu0 %1000 }
 0x105   : > { %v3188_v23 = vadd.f32 %v835_v15, %v3159_v14  ;;  %v3191_v32 = vadd.f32 %v842_v53, %v3162_v43  ;;  %v3193_v21 = vadd.f32 %v904_v1, %v903_v62  ;;  %v3195_v31 = vadd.f32 %v911_v27, %v910_v22 }
 0x106   : > { %v943_v46 = vadd.f32 %v942_v12, %v941_v10  ;;  %v950_v42 = vadd.f32 %v949_v61, %v948_v11  ;;  %v1003_v48 = vmul.f32 %v986_v19, %v981_v50  ;;  %v1004_v52 = vmul.f32 %v986_v19, %v982_v59 }
 0x107   : > { %v933_v20 = vadd.f32 %v932_v57, %v931_v55  ;;  %v940_v63 = vadd.f32 %v939_v29, %v938_v7  ;;  %v918_v13 = vrot.slane %v917_v58, 1  ;;  %v925_v38 = vrot.slane %v924_v37, 1 }
 0x108   : > { %v944_v0 = vrot.slane %v943_v46, 2  ;;  %v951_v6 = vrot.slane %v950_v42, 2  ;;  %v1011_v14 = vsel %vm349_vm1, %v1003_v48, 0.0  ;;  %v1018_v47 = vsel %vm349_vm1, %v1004_v52, 0.0 }
 0x109   : > { %v1012_v43 = vrot.slane %v1011_v14, 4  ;;  %v1019_v30 = vrot.slane %v1018_v47, 4  ;;  %v1007_v62 = vmul.f32 %v996_v45, %v981_v50  ;;  %v1008_v22 = vmul.f32 %v996_v45, %v982_v59 }
 0x10a   : > { %v945_v36 = vadd.f32 %v944_v0, %v943_v46  ;;  %v952_v34 = vadd.f32 %v951_v6, %v950_v42  ;;  %v1005_v19 = vmul.f32 %v991_v3, %v981_v50  ;;  %v1006_v54 = vmul.f32 %v991_v3, %v982_v59  ;;  %v1078_v42 = vpop.permute.xlu0 %1077  ;;  %v1098_v0 = vpop.permute.xlu1 %1097 }
 0x10b   : > { %v919_v35 = vadd.f32 %v918_v13, %v917_v58  ;;  %v926_v15 = vadd.f32 %v925_v38, %v924_v37  ;;  %v1039_v53 = vsel %vm349_vm1, %v1007_v62, 0.0  ;;  %v1046_v44 = vsel %vm349_vm1, %v1008_v22, 0.0 }
 0x10c   : > { %v1013_v33 = vadd.f32 %v1012_v43, %v1011_v14  ;;  %v1020_v1 = vadd.f32 %v1019_v30, %v1018_v47  ;;  %v1040_v27 = vrot.slane %v1039_v53, 4  ;;  %v1047_v55 = vrot.slane %v1046_v44, 4 }
 0x10d   : > { %v946_v7 = vrot.slane %v945_v36, 1  ;;  %v953_v10 = vrot.slane %v952_v34, 1  ;;  %v1025_v11 = vsel %vm349_vm1, %v1005_v19, 0.0  ;;  %v1032_v57 = vsel %vm349_vm1, %v1006_v54, 0.0 }
 0x10e   : > { %v3205_v29 = vadd.f32 %v933_v20, %v3167_v16  ;;  %v3208_v58 = vadd.f32 %v940_v63, %v3169_v41  ;;  %v1041_v37 = vadd.f32 %v1040_v27, %v1039_v53  ;;  %v1048_v3 = vadd.f32 %v1047_v55, %v1046_v44 }
 0x10f   : > { %v3210_v12 = vadd.f32 %v919_v35, %v845_v56  ;;  %v3212_v61 = vadd.f32 %v926_v15, %v846_v60  ;;  %v1026_v45 = vrot.slane %v1025_v11, 4  ;;  %v1033_v46 = vrot.slane %v1032_v57, 4 }
 0x110   : > { %v1014_v48 = vrot.slane %v1013_v33, 2  ;;  %v1021_v52 = vrot.slane %v1020_v1, 2  ;;  %v1042_v13 = vrot.slane %v1041_v37, 2  ;;  %v1049_v38 = vrot.slane %v1048_v3, 2 }
 0x111   : > { %v947_v6 = vadd.f32 %v946_v7, %v945_v36  ;;  %v954_v16 = vadd.f32 %v953_v10, %v952_v34  ;;  %v1027_v20 = vadd.f32 %v1026_v45, %v1025_v11  ;;  %v1034_v14 = vadd.f32 %v1033_v46, %v1032_v57 }
 0x112   : > { %v1043_v41 = vadd.f32 %v1042_v13, %v1041_v37  ;;  %v1050_v63 = vadd.f32 %v1049_v38, %v1048_v3  ;;  %v1009_v47 = vmul.f32 %v1001_v2, %v981_v50  ;;  %v1010_v43 = vmul.f32 %v1001_v2, %v982_v59  ;;  %v1103_v2 = vpop.permute.xlu0 %1102 }
 0x113   : > { %v1028_v56 = vrot.slane %v1027_v20, 2  ;;  %v1035_v30 = vrot.slane %v1034_v14, 2  ;;  %v1080_v60 = vsel %vm1079_vm7, %v1076_v39, %v1078_v42  ;;  %v1081_v62 = vsel %vm1079_vm7, %v1078_v42, %v1076_v39 }
 0x114   : > { %v3218_v22 = vadd.f32 %v1014_v48, %v1013_v33  ;;  %v3220_v19 = vadd.f32 %v1021_v52, %v1020_v1  ;;  %v1053_v36 = vsel %vm349_vm1, %v1009_v47, 0.0  ;;  %v1060_v34 = vsel %vm349_vm1, %v1010_v43, 0.0  ;;  %v1108_v33 = vpop.permute.xlu1 %1107 }
 0x115   : > { %v1029_v54 = vadd.f32 %v1028_v56, %v1027_v20  ;;  %v1036_v35 = vadd.f32 %v1035_v30, %v1034_v14  ;;  %v1054_v50 = vrot.slane %v1053_v36, 4  ;;  %v1061_v59 = vrot.slane %v1060_v34, 4 }
 0x116   : > { %v3225_v15 = vadd.f32 %v947_v6, %v3188_v23  ;;  %v3228_v53 = vadd.f32 %v954_v16, %v3191_v32  ;;  %v1093_v39 = vmul.f32 %v2977_v25, %v1080_v60  ;;  %v1094_v44 = vmul.f32 %v2980_v26, %v1081_v62  ;;  %v1113_v20 = vpop.permute.xlu0 %1112 }
 0x117   : > { %v1044_v1 = vrot.slane %v1043_v41, 1  ;;  %v1051_v27 = vrot.slane %v1050_v63, 1  ;;  %v1055_v55 = vadd.f32 %v1054_v50, %v1053_v36  ;;  %v1062_v7 = vadd.f32 %v1061_v59, %v1060_v34 }
 0x118   : > { %v1016_v10 = vrot.slane %v3218_v22, 1  ;;  %v1030_v11 = vrot.slane %v1029_v54, 1  ;;  %v1115_v57 = vmul.f32 %v1098_v0, %v1093_v39  ;;  %v1116_v37 = vmul.f32 %v1098_v0, %v1094_v44  ;;  %v1188_v56 = vpop.permute.xlu1 %1187 }
 0x119   : > { %v1023_v23 = vrot.slane %v3220_v19, 1  ;;  %v1037_v3 = vrot.slane %v1036_v35, 1  ;;  %v1056_v45 = vrot.slane %v1055_v55, 2  ;;  %v1063_v32 = vrot.slane %v1062_v7, 2 }
 0x11a   : > { %v1123_v46 = vsel %vm349_vm1, %v1115_v57, 0.0  ;;  %v1130_v42 = vsel %vm349_vm1, %v1116_v37, 0.0  ;;  %v1119_v48 = vmul.f32 %v1108_v33, %v1093_v39  ;;  %v1120_v52 = vmul.f32 %v1108_v33, %v1094_v44  ;;  %v1190_v37 = vpop.permute.xlu0 %1189 }
 0x11b   : > { %v1045_v13 = vadd.f32 %v1044_v1, %v1043_v41  ;;  %v1052_v38 = vadd.f32 %v1051_v27, %v1050_v63  ;;  %v1057_v6 = vadd.f32 %v1056_v45, %v1055_v55  ;;  %v1064_v16 = vadd.f32 %v1063_v32, %v1062_v7 }
 0x11c   : > { %v1031_v14 = vadd.f32 %v1030_v11, %v1029_v54  ;;  %v1124_v0 = vrot.slane %v1123_v46, 4  ;;  %v1151_v47 = vsel %vm349_vm1, %v1119_v48, 0.0  ;;  %v1158_v43 = vsel %vm349_vm1, %v1120_v52, 0.0  ;;  %v1210_v48 = vpop.permute.xlu1 %1209 }
 0x11d   : > { %v1038_v30 = vadd.f32 %v1037_v3, %v1036_v35  ;;  %v1131_v60 = vrot.slane %v1130_v42, 4  ;;  %v1152_v62 = vrot.slane %v1151_v47, 4  ;;  %v1159_v36 = vrot.slane %v1158_v43, 4 }
 0x11e   : > { %v1058_v34 = vrot.slane %v1057_v6, 1  ;;  %v1065_v50 = vrot.slane %v1064_v16, 1  ;;  %v1117_v59 = vmul.f32 %v1103_v2, %v1093_v39  ;;  %v1118_v33 = vmul.f32 %v1103_v2, %v1094_v44 }
 0x11f   : > { %v3240_v41 = vadd.f32 %v1045_v13, %v3205_v29  ;;  %v3243_v63 = vadd.f32 %v1052_v38, %v3208_v58  ;;  %v1153_v54 = vadd.f32 %v1152_v62, %v1151_v47  ;;  %v1160_v1 = vadd.f32 %v1159_v36, %v1158_v43 }
 0x120   : > { %v3246_v27 = vadd.f32 %v1031_v14, %v3210_v12  ;;  %v1125_v55 = vadd.f32 %v1124_v0, %v1123_v46  ;;  %v1137_v35 = vsel %vm349_vm1, %v1117_v59, 0.0  ;;  %v1144_v7 = vsel %vm349_vm1, %v1118_v33, 0.0 }
 0x121   : > { %v3251_v11 = vadd.f32 %v1038_v30, %v3212_v61  ;;  %v1132_v2 = vadd.f32 %v1131_v60, %v1130_v42  ;;  %v1154_v57 = vrot.slane %v1153_v54, 2  ;;  %v1161_v29 = vrot.slane %v1160_v1, 2 }
 0x122   : > { %v1059_v3 = vadd.f32 %v1058_v34, %v1057_v6  ;;  %v3253_v58 = vadd.f32 %v1065_v50, %v1064_v16  ;;  %v1138_v45 = vrot.slane %v1137_v35, 4  ;;  %v1145_v32 = vrot.slane %v1144_v7, 4  ;;  %v2488_v16 = vld [vmem:[%s4009_s1 + $0x10] sm:$0x3] }
 0x123   : > { %v1155_v12 = vadd.f32 %v1154_v57, %v1153_v54  ;;  %v1162_v52 = vadd.f32 %v1161_v29, %v1160_v1  ;;  %v1121_v46 = vmul.f32 %v1113_v20, %v1093_v39  ;;  %v1122_v13 = vmul.f32 %v1113_v20, %v1094_v44  ;;  %v1220_v1 = vpop.permute.xlu1 %1219 }
 0x124   : > { %v1126_v38 = vrot.slane %v1125_v55, 2  ;;  %v1139_v14 = vadd.f32 %v1138_v45, %v1137_v35  ;;  %v1146_v0 = vadd.f32 %v1145_v32, %v1144_v7  ;;  %v1192_v61 = vsel %vm1191_vm8, %v1188_v56, %v1190_v37 }
 0x125   : > { %v1156_v42 = vrot.slane %v1155_v12, 1  ;;  %v1165_v47 = vsel %vm349_vm1, %v1121_v46, 0.0  ;;  %v1172_v6 = vsel %vm349_vm1, %v1122_v13, 0.0  ;;  %v3263_v43 = vrot.slane %v2488_v16, %v2829_v51  ;;  %v1215_v16 = vpop.permute.xlu0 %1214 }
 0x126   : > { %v1140_v39 = vrot.slane %v1139_v14, 2  ;;  %v1147_v44 = vrot.slane %v1146_v0, 2  ;;  %v1166_v20 = vrot.slane %v1165_v47, 4  ;;  %v1173_v30 = vrot.slane %v1172_v6, 4 }
 0x127   : > { %4057 = vst [vmem:[#allocation18_spill] sm:$0xff] %v3263_v43  ;;  %v1133_v60 = vrot.slane %v1132_v2, 2  ;;  %v1163_v62 = vrot.slane %v1162_v52, 1  ;;  %v1193_v36 = vsel %vm1191_vm8, %v1190_v37, %v1188_v56  ;;  %v3268_v34 = vmul.f32 %v3014_v28, %v1192_v61 }
 0x128   : > { %v1141_v50 = vadd.f32 %v1140_v39, %v1139_v14  ;;  %v1148_v59 = vadd.f32 %v1147_v44, %v1146_v0  ;;  %v1167_v33 = vadd.f32 %v1166_v20, %v1165_v47  ;;  %v1174_v54 = vadd.f32 %v1173_v30, %v1172_v6 }
 0x129   : > { %v3271_v51 = vadd.f32 %v1059_v3, %v3225_v15  ;;  %v1157_v35 = vadd.f32 %v1156_v42, %v1155_v12  ;;  %v3274_v7 = vmul.f32 %v3263_v43, %v1193_v36  ;;  %v1227_v57 = vmul.f32 %v1210_v48, %v3268_v34 }
 0x12a   : > { %v1142_v29 = vrot.slane %v1141_v50, 1  ;;  %v1149_v45 = vrot.slane %v1148_v59, 1  ;;  %v1168_v56 = vrot.slane %v1167_v33, 2  ;;  %v1175_v37 = vrot.slane %v1174_v54, 2 }
 0x12b   : > { %v1228_v32 = vmul.f32 %v1210_v48, %v3274_v7  ;;  %v1235_v46 = vsel %vm349_vm1, %v1227_v57, 0.0  ;;  %v1231_v13 = vmul.f32 %v1220_v1, %v3268_v34  ;;  %v1232_v14 = vmul.f32 %v1220_v1, %v3274_v7 }
 0x12c   : > { %v1127_v15 = vadd.f32 %v1126_v38, %v1125_v55  ;;  %v1164_v3 = vadd.f32 %v1163_v62, %v1162_v52  ;;  %v1169_v12 = vadd.f32 %v1168_v56, %v1167_v33  ;;  %v1176_v0 = vadd.f32 %v1175_v37, %v1174_v54 }
 0x12d   : > { %v1236_v61 = vrot.slane %v1235_v46, 4  ;;  %v1242_v42 = vsel %vm349_vm1, %v1228_v32, 0.0  ;;  %v1263_v47 = vsel %vm349_vm1, %v1231_v13, 0.0  ;;  %v1270_v6 = vsel %vm349_vm1, %v1232_v14, 0.0 }
 0x12e   : > { %v1134_v39 = vadd.f32 %v1133_v60, %v1132_v2  ;;  %v1183_v48 = vadd.f32 %v1157_v35, %v3240_v41  ;;  %v1143_v44 = vadd.f32 %v1142_v29, %v1141_v50  ;;  %v1150_v20 = vadd.f32 %v1149_v45, %v1148_v59 }
 0x12f   : > { %v1170_v30 = vrot.slane %v1169_v12, 1  ;;  %v1243_v36 = vrot.slane %v1242_v42, 4  ;;  %v1264_v1 = vrot.slane %v1263_v47, 4  ;;  %v1271_v55 = vrot.slane %v1270_v6, 4 }
 0x130   : > { %v1177_v52 = vrot.slane %v1176_v0, 1  ;;  %v1237_v38 = vadd.f32 %v1236_v61, %v1235_v46  ;;  %v1229_v62 = vmul.f32 %v1215_v16, %v3268_v34  ;;  %v1230_v33 = vmul.f32 %v1215_v16, %v3274_v7 }
 0x131   : > { %v1184_v54 = vadd.f32 %v1164_v3, %v3243_v63  ;;  %v1244_v57 = vadd.f32 %v1243_v36, %v1242_v42  ;;  %v1265_v56 = vadd.f32 %v1264_v1, %v1263_v47  ;;  %v1272_v37 = vadd.f32 %v1271_v55, %v1270_v6 }
 0x132   : > { %v1181_v2 = vadd.f32 %v1143_v44, %v3246_v27  ;;  %v1182_v41 = vadd.f32 %v1150_v20, %v3251_v11  ;;  %v1249_v60 = vsel %vm349_vm1, %v1229_v62, 0.0  ;;  %v1256_v50 = vsel %vm349_vm1, %v1230_v33, 0.0  ;;  %v1225_v33 = vpop.permute.xlu0 %1224 }
 0x133   : > { %v3292_v59 = vadd.f32 %v1170_v30, %v1169_v12  ;;  %v1266_v35 = vrot.slane %v1265_v56, 2  ;;  %v1273_v29 = vrot.slane %v1272_v37, 2  ;;  %v1250_v45 = vrot.slane %v1249_v60, 4 }
 0x134   : > { %v3294_v32 = vadd.f32 %v1177_v52, %v1176_v0  ;;  %v1238_v46 = vrot.slane %v1237_v38, 2  ;;  %v1245_v63 = vrot.slane %v1244_v57, 2  ;;  %v1257_v13 = vrot.slane %v1256_v50, 4 }
 0x135   : > { %v1267_v14 = vadd.f32 %v1266_v35, %v1265_v56  ;;  %v1274_v3 = vadd.f32 %v1273_v29, %v1272_v37  ;;  %v1251_v61 = vadd.f32 %v1250_v45, %v1249_v60  ;;  %v955_v27 = vadd.f32 %v3193_v21, %v3149_v24 }
 0x136   : > { %v1258_v11 = vadd.f32 %v1257_v13, %v1256_v50  ;;  %v1017_v12 = vadd.f32 %v1016_v10, %v3218_v22  ;;  %v1024_v42 = vadd.f32 %v1023_v23, %v3220_v19  ;;  %v1128_v0 = vrot.slane %v1127_v15, 1  ;;  %v3306_v10 = vpop.permute.xlu1 %1302 }
 0x137   : > { %v1268_v47 = vrot.slane %v1267_v14, 1  ;;  %v1275_v6 = vrot.slane %v1274_v3, 1  ;;  %v1252_v16 = vrot.slane %v1251_v61, 2  ;;  %v1135_v44 = vrot.slane %v1134_v39, 1 }
 0x138   : > { %v1259_v20 = vrot.slane %v1258_v11, 2  ;;  %v956_v30 = vadd.f32 %v3195_v31, %v3152_v40  ;;  %v1067_v36 = vadd.f32 %v1017_v12, %v955_v27  ;;  %v1129_v24 = vadd.f32 %v1128_v0, %v1127_v15 }
 0x139   : > { %v1269_v21 = vadd.f32 %v1268_v47, %v1267_v14  ;;  %v1276_v1 = vadd.f32 %v1275_v6, %v1274_v3  ;;  %v1253_v55 = vadd.f32 %v1252_v16, %v1251_v61  ;;  %v1136_v52 = vadd.f32 %v1135_v44, %v1134_v39 }
 0x13a   : > { %v1260_v22 = vadd.f32 %v1259_v20, %v1258_v11  ;;  %v1068_v62 = vadd.f32 %v1024_v42, %v956_v30  ;;  %v1239_v19 = vadd.f32 %v1238_v46, %v1237_v38  ;;  %v1246_v23 = vadd.f32 %v1245_v63, %v1244_v57 }
 0x13b   : > { %v1295_v56 = vadd.f32 %v1269_v21, %v1183_v48  ;;  %v1296_v37 = vadd.f32 %v1276_v1, %v1184_v54  ;;  %v1254_v60 = vrot.slane %v1253_v55, 1  ;;  %v1179_v50 = vadd.f32 %v1129_v24, %v1067_v36 }
 0x13c   : > { %v1261_v35 = vrot.slane %v1260_v22, 1  ;;  %v1180_v40 = vadd.f32 %v1136_v52, %v1068_v62  ;;  %v1240_v31 = vrot.slane %v1239_v19, 1  ;;  %v1247_v15 = vrot.slane %v1246_v23, 1 }
 0x13d   : > { %v1255_v29 = vadd.f32 %v1254_v60, %v1253_v55  ;;  %v1304_v45 = vrot.slane %v3306_v10, 1  ;;  %v1305_v39 = vrot.slane %v3306_v10, 2  ;;  %v1233_v13 = vmul.f32 %v1225_v33, %v3268_v34 }
 0x13e   : > { %v1262_v14 = vadd.f32 %v1261_v35, %v1260_v22  ;;  %v1241_v38 = vadd.f32 %v1240_v31, %v1239_v19  ;;  %v1248_v57 = vadd.f32 %v1247_v15, %v1246_v23  ;;  %v1234_v48 = vmul.f32 %v1225_v33, %v3274_v7 }
 0x13f   : > { %v1293_v54 = vadd.f32 %v1255_v29, %v1181_v2  ;;  %v1315_v46 = vadd.f32 %v1305_v39, %v1295_v56  ;;  %v1316_v63 = vadd.f32 %v1305_v39, %v1296_v37  ;;  %v1277_v3 = vsel %vm349_vm1, %v1233_v13, 0.0 }
 0x140   : > { %v1294_v61 = vadd.f32 %v1262_v14, %v1182_v41  ;;  %v1291_v27 = vadd.f32 %v1241_v38, %v1179_v50  ;;  %v1292_v11 = vadd.f32 %v1248_v57, %v1180_v40  ;;  %v1278_v12 = vrot.slane %v1277_v3, 4 }
 0x141   : > { %v1313_v42 = vadd.f32 %v1304_v45, %v1293_v54  ;;  %v1323_v0 = vmax.f32 %v1315_v46, 0.0  ;;  %v1324_v47 = vmax.f32 %v1316_v63, 0.0  ;;  %v1284_v6 = vsel %vm349_vm1, %v1234_v48, 0.0 }
 0x142   : > { %v1311_v34 = vadd.f32 %v3306_v10, %v1291_v27  ;;  %v1312_v16 = vadd.f32 %v3306_v10, %v1292_v11  ;;  %v1314_v44 = vadd.f32 %v1304_v45, %v1294_v61  ;;  %v1279_v7 = vadd.f32 %v1278_v12, %v1277_v3 }
 0x143   : > { %v1321_v2 = vmax.f32 %v1313_v42, 0.0  ;;  %v1374_v20 = vrot.slane %v1323_v0, 6  ;;  %v1285_v30 = vrot.slane %v1284_v6, 4  ;;  %v1382_v55 = vrot.slane %v1324_v47, 6 }
 0x144   : > { %v1319_v36 = vmax.f32 %v1311_v34, 0.0  ;;  %v1320_v41 = vmax.f32 %v1312_v16, 0.0  ;;  %v1322_v24 = vmax.f32 %v1314_v44, 0.0  ;;  %v1280_v21 = vrot.slane %v1279_v7, 2 }
 0x145   : > { %v1371_v1 = vrot.slane %v1321_v2, 7  ;;  %v1782_v52 = vmul.f32 %v1321_v2, %v2875_v8  ;;  %v1286_v22 = vadd.f32 %v1285_v30, %v1284_v6  ;;  %v1784_v15 = vmul.f32 %v1323_v0, %v2875_v8 }
 0x146   : > { %v1380_v62 = vrot.slane %v1322_v24, 7  ;;  %v1780_v19 = vmul.f32 %v1319_v36, %v2875_v8  ;;  %v1781_v23 = vmul.f32 %v1320_v41, %v2878_v9  ;;  %v1783_v33 = vmul.f32 %v1322_v24, %v2878_v9  ;;  %v3369_v24 = vpop.permute.xlu0 %1398 }
 0x147   : > { %v1373_v56 = vsel %vm1372_vm9, %v1371_v1, %v1319_v36  ;;  %v1816_v37 = vrot.slane %v1782_v52, 7  ;;  %v1281_v60 = vadd.f32 %v1280_v21, %v1279_v7  ;;  %v1287_v50 = vrot.slane %v1286_v22, 2  ;;  %v1353_v36 = vld [vmem:[%s4012_s4 + $0x68] sm:$0xf]  ;;  %v1354_v21 = vld [vmem:[%s4012_s4 + $0x6c] sm:$0xf] }
 0x148   : > { %v1376_v35 = vsel %vm1375_vm10, %v1374_v20, %v1373_v56  ;;  %v1381_v40 = vsel %vm1372_vm9, %v1380_v62, %v1320_v41  ;;  %v1822_v31 = vrot.slane %v1783_v33, 7  ;;  %v1785_v13 = vmul.f32 %v1324_v47, %v2878_v9  ;;  %v1356_v41 = vld [vmem:[%s4012_s4 + $0x74] sm:$0xf]  ;;  %v1355_v1 = vld [vmem:[%s4012_s4 + $0x70] sm:$0xf]  ;;  %v3386_v62 = vpop.permute.xlu1 %1403 }
 0x149   : > { %v1383_v29 = vsel %vm1375_vm10, %v1382_v55, %v1381_v40  ;;  %v1282_v45 = vrot.slane %v1281_v60, 1  ;;  %v1288_v39 = vadd.f32 %v1287_v50, %v1286_v22  ;;  %v1074_v14 = vadd.f32 %v3253_v58, %v3228_v53  ;;  %v1357_v55 = vld [vmem:[%s4012_s4 + $0x78] sm:$0xf]  ;;  %v1360_v22 = vld [vmem:[%s4012_s4 + $0x84] sm:$0xf] }
 0x14a   : > { %v1817_v38 = vsel %vm1372_vm9, %v1816_v37, %v1780_v19  ;;  %v1818_v57 = vrot.slane %v1784_v15, 6  ;;  %v1823_v48 = vsel %vm1372_vm9, %v1822_v31, %v1781_v23  ;;  %v1185_v54 = vadd.f32 %v3292_v59, %v3271_v51  ;;  %v3381_v52 = vpop.permute.xlu0 %1408  ;;  %v1358_v23 = vld [vmem:[%s4012_s4 + $0x7c] sm:$0xf]  ;;  %v1359_v33 = vld [vmem:[%s4012_s4 + $0x80] sm:$0xf] }
 0x14b   : > { %v1283_v46 = vadd.f32 %v1282_v45, %v1281_v60  ;;  %v1289_v63 = vrot.slane %v1288_v39, 1  ;;  %v1824_v3 = vrot.slane %v1785_v13, 6  ;;  %v1186_v61 = vadd.f32 %v3294_v32, %v1074_v14  ;;  %v1361_v37 = vld [vmem:[%s4012_s4 + $0x88] sm:$0xf]  ;;  %v2302_v31 = vld [vmem:[%s4013_s5] sm:$0xf] }
 0x14c   : > { %v1819_v27 = vsel %vm1375_vm10, %v1818_v57, %v1817_v38  ;;  %v1306_v11 = vrot.slane %v3306_v10, 3  ;;  %v3398_v56 = vpop.permute.xlu1 %1413 }
 0x14d   : > { %v1290_v12 = vadd.f32 %v1289_v63, %v1288_v39  ;;  %v1297_v42 = vadd.f32 %v1283_v46, %v1185_v54  ;;  %v1825_v53 = vsel %vm1375_vm10, %v1824_v3, %v1823_v48 }
 0x14e   : > { %v3389_v19 = vpop.permute.xlu0 %1490 }
 0x14f   : > { %v1298_v58 = vadd.f32 %v1290_v12, %v1186_v61  ;;  %v1317_v0 = vadd.f32 %v1306_v11, %v1297_v42 }
 0x150   : > { %v3406_v50 = vpop.permute.xlu1 %1495 }
 0x151   : > { %v1318_v47 = vadd.f32 %v1306_v11, %v1298_v58  ;;  %v1325_v6 = vmax.f32 %v1317_v0, 0.0 }
 0x152   : > { %v3403_v60 = vpop.permute.xlu0 %1500 }
 0x153   : > { %v1326_v34 = vmax.f32 %v1318_v47, 0.0  ;;  %v1377_v51 = vrot.slane %v1325_v6, 5  ;;  %v1786_v59 = vmul.f32 %v1325_v6, %v2875_v8  ;;  %v1350_v8 = vld [vmem:[%s4012_s4 + $0x5c] sm:$0xf] }
 0x154   : > { %v3417_v15 = vpop.permute.xlu1 %1505 }
 0x155   : > { %v1384_v16 = vrot.slane %v1326_v34, 5  ;;  %v1379_v32 = vsel %vm1378_vm11, %v1377_v51, %v1376_v35  ;;  %v1787_v44 = vmul.f32 %v1326_v34, %v2878_v9  ;;  %v1820_v7 = vrot.slane %v1786_v59, 5  ;;  %v1351_v9 = vld [vmem:[%s4012_s4 + $0x60] sm:$0xf]  ;;  %v1362_v35 = vld [vmem:[%s4012_s4 + $0x8c] sm:$0xf] }
 0x156   : > { %1388 = vrot.lane.b32.xlu0 %v1379_v32, %s2555_s18  ;;  %v3412_v40 = vpop.permute.xlu0 %1590 }
 0x157   : > { %v1385_v10 = vsel %vm1378_vm11, %v1384_v16, %v1383_v29  ;;  %v3342_v2 = vsel %vm1378_vm11, %v1820_v7, %v1819_v27  ;;  %v1826_v20 = vrot.slane %v1787_v44, 5 }
 0x158   : > { %1390 = vrot.lane.b32.xlu1 %v1385_v10, %s2555_s18  ;;  %v3421_v45 = vpop.permute.xlu1 %1595  ;;  %s2427_s18 = sshll.u32 %s242_s9, 3 }
 0x159   : > { %v3346_v30 = vsel %vm1378_vm11, %v1826_v20, %v1825_v53 }
 0x15a   : > { %1480 = vrot.lane.b32.xlu0 %v1379_v32, %s2556_s29  ;;  %v3419_v29 = vpop.permute.xlu0 %1600 }
 0x15c   : > { %1482 = vrot.lane.b32.xlu1 %v1385_v10, %s2556_s29  ;;  %v3425_v13 = vpop.permute.xlu1 %1605  ;;  %s244_s29 = scalar_lea.vmem [#allocation2], %s2427_s18 }
 0x15d   : > { %s2364_s13 = sshll.u32 %s244_s29, 4  ;;  %s3966_s13 = int_to_ptr.vmem [resolvable:$true] %s2364_s13 }
 0x15e   : > { %1580 = vrot.lane.b32.xlu0 %v1379_v32, %s2557_s19  ;;  %v3423_v39 = vpop.permute.xlu0 %1690  ;;  %s2490_s16 = scalar_lea.vmem %s3966_s13, 128 }
 0x15f   : > { %p2491_p11 = scmp.ne.s32.totalorder %s3966_s13, %s2490_s16 }
 0x160   : > { %1582 = vrot.lane.b32.xlu1 %v1385_v10, %s2557_s19  ;;  %v3429_v38 = vpop.permute.xlu1 %1695 }
 0x161   : > { %p2492_p12 = pnand %p2491_p11, %p2637_p5 }
 0x162   : > { %1680 = vrot.lane.b32.xlu0 %v1379_v32, %s2558_s14  ;;  %v3427_v14 = vpop.permute.xlu0 %1700 }
 0x163   : > { %p2493_p13 = pneg %p2492_p12 }
 0x164   : > { %1682 = vrot.lane.b32.xlu1 %v1385_v10, %s2558_s14  ;;  %v1796_v48 = vpop.permute.xlu1 %1795 }
 0x165   : > { %v1832_v3 = vmul.f32 %v3342_v2, %v1796_v48  ;;  %v1833_v27 = vmul.f32 %v3346_v30, %v1796_v48 }
 0x166   : > { %1902 = vrot.lane.b32.xlu0 %v1379_v32, %s4058_s11  ;;  %v3431_v57 = vpop.permute.xlu0 %1705 }
 0x167   : > { %v1852_v58 = vsel %vm349_vm1, %v1832_v3, 0.0  ;;  %v1859_v47 = vsel %vm349_vm1, %v1833_v27, 0.0 }
 0x168   : > { %1904 = vrot.lane.b32.xlu1 %v1385_v10, %s4058_s11  ;;  %v1791_v46 = vpop.permute.xlu1 %1790  ;;  %v1860_v7 = vrot.slane %v1859_v47, 4 }
 0x169   : > { %v1830_v61 = vmul.f32 %v3342_v2, %v1791_v46  ;;  %v1831_v12 = vmul.f32 %v3346_v30, %v1791_v46 }
 0x16a   : > { %1927 = vperm.xlu0 %2486, %v1350_v8   ;;  %v1801_v54 = vpop.permute.xlu0 %1800 }
 0x16b   : > { %v1834_v11 = vmul.f32 %v3342_v2, %v1801_v54  ;;  %v1835_v42 = vmul.f32 %v3346_v30, %v1801_v54  ;;  %v1838_v0 = vsel %vm349_vm1, %v1830_v61, 0.0  ;;  %v1845_v34 = vsel %vm349_vm1, %v1831_v12, 0.0 }
 0x16c   : > { %2012 = vperm.xlu1 %2485, %v1351_v9   ;;  %v1839_v44 = vrot.slane %v1838_v0, 4  ;;  %v3448_v9 = vpop.permute.xlu1 %1917 }
 0x16d   : > { %v1866_v6 = vsel %vm349_vm1, %v1834_v11, 0.0  ;;  %v1873_v51 = vsel %vm349_vm1, %v1835_v42, 0.0 }
 0x16e   : > { %2022 = vperm.xlu0 %2486, %v1353_v36   ;;  %v1806_v63 = vpop.permute.xlu0 %1805  ;;  %v1874_v20 = vrot.slane %v1873_v51, 4 }
 0x16f   : > { %v1836_v53 = vmul.f32 %v3342_v2, %v1806_v63  ;;  %v1837_v59 = vmul.f32 %v3346_v30, %v1806_v63  ;;  %v1846_v2 = vrot.slane %v1845_v34, 4 }
 0x170   : > { %2117 = vperm.xlu1 %2485, %v1356_v41   ;;  %v3451_v54 = vpop.permute.xlu1 %1912 }
 0x171   : > { %v1880_v16 = vsel %vm349_vm1, %v1836_v53, 0.0  ;;  %v1887_v36 = vsel %vm349_vm1, %v1837_v59, 0.0 }
 0x172   : > { %2002 = vrot.lane.b32.xlu0 %v1379_v32, %s4059_s15  ;;  %v1881_v8 = vrot.slane %v1880_v16, 4  ;;  %v3453_v53 = vpop.permute.xlu0 %1922 }
 0x173   : > { %4062 = vst [vmem:[#allocation19_spill] sm:$0xff] %v3453_v53 }
 0x174   : > { %2004 = vrot.lane.b32.xlu1 %v1385_v10, %s4059_s15  ;;  %v1882_v30 = vadd.f32 %v1881_v8, %v1880_v16 }
 0x176   : > { %2027 = vperm.xlu0 %2486, %v1354_v21   ;;  %v1840_v21 = vadd.f32 %v1839_v44, %v1838_v0  ;;  %v1883_v3 = vrot.slane %v1882_v30, 2 }
 0x178   : > { %2112 = vperm.xlu1 %2485, %v1355_v1   ;;  %v1861_v1 = vadd.f32 %v1860_v7, %v1859_v47  ;;  %v1884_v47 = vadd.f32 %v1883_v3, %v1882_v30 }
 0x17a   : > { %2122 = vperm.xlu0 %2486, %v1357_v55  }
 0x17c   : > { %2217 = vperm.xlu1 %2485, %v1360_v22   ;;  %v1847_v22 = vadd.f32 %v1846_v2, %v1845_v34  ;;  %v3455_v34 = vpop.permute.xlu1 %2017  ;;  %v1885_v2 = vrot.slane %v1884_v47, 1 }
 0x17d   : > { %4063 = vst [vmem:[#allocation20_spill] sm:$0xff] %v3455_v34 }
 0x17e   : > { %2102 = vrot.lane.b32.xlu0 %v1379_v32, %s4060_s12  ;;  %v1848_v46 = vrot.slane %v1847_v22, 2 }
 0x180   : > { %2104 = vrot.lane.b32.xlu1 %v1385_v10, %s4060_s12  ;;  %s2436_s12 = sshll.u32 %s2620_s25, 7  ;;  %s2350_s25 = scalar_lea.sflag [#allocation3], %s242_s9 }
 0x181   : > { %s3964_s15 = scalar_lea.hbm %s4014_s6, %s2436_s12 }
 0x182   : > { %2127 = vperm.xlu0 %2486, %v1358_v23   ;;  %v1875_v23 = vadd.f32 %v1874_v20, %v1873_v51 }
 0x184   : > { %2212 = vperm.xlu1 %2485, %v1359_v33   ;;  %v1888_v33 = vrot.slane %v1887_v36, 4  ;;  %v1876_v63 = vrot.slane %v1875_v23, 2 }
 0x186   : > { %2222 = vperm.xlu0 %2486, %v1361_v37   ;;  %v1889_v61 = vadd.f32 %v1888_v33, %v1887_v36  ;;  %v1877_v0 = vadd.f32 %v1876_v63, %v1875_v23  ;;  %v4068_v23 = vld [vmem:[#allocation5_spill] sm:$0xff]  ;;  %v4069_v33 = vld [vmem:[#allocation6_spill] sm:$0xff] }
 0x188   : > { %2202 = vrot.lane.b32.xlu1 %v1379_v32, %s4061_s20  ;;  %v1853_v32 = vrot.slane %v1852_v58, 4 }
 0x18a   : > { %2204 = vrot.lane.b32.xlu0 %v1385_v10, %s4061_s20  ;;  %v1867_v10 = vrot.slane %v1866_v6, 4  ;;  %v1854_v41 = vadd.f32 %v1853_v32, %v1852_v58  ;;  %v1849_v58 = vadd.f32 %v1848_v46, %v1847_v22  ;;  %v3479_v46 = vadd.f32 %v1885_v2, %v1884_v47 }
 0x18c   : > { %2227 = vperm.xlu1 %2485, %v1362_v35   ;;  %v1868_v55 = vadd.f32 %v1867_v10, %v1866_v6  ;;  %v1855_v37 = vrot.slane %v1854_v41, 2  ;;  %v1841_v35 = vrot.slane %v1840_v21, 2  ;;  %v1890_v6 = vrot.slane %v1889_v61, 2  ;;  %4072 = vst [vmem:[#allocation25_spill] sm:$0xff] %v3479_v46 }
 0x18d   : > { %v1850_v7 = vrot.slane %v1849_v58, 1  ;;  %v1878_v10 = vrot.slane %v1877_v0, 1 }
 0x18e   : > { %2305 = vperm.xlu0 %2486, %v2302_v31   ;;  %v1862_v31 = vrot.slane %v1861_v1, 2  ;;  %v1869_v48 = vrot.slane %v1868_v55, 2  ;;  %v1856_v27 = vadd.f32 %v1855_v37, %v1854_v41  ;;  %v1842_v11 = vadd.f32 %v1841_v35, %v1840_v21 }
 0x18f   : > { %v3457_v20 = vadd.f32 %v1890_v6, %v1889_v61 }
 0x190   : > { %v1863_v12 = vadd.f32 %v1862_v31, %v1861_v1  ;;  %v1870_v42 = vadd.f32 %v1869_v48, %v1868_v55  ;;  %v1857_v51 = vrot.slane %v1856_v27, 1  ;;  %v1843_v59 = vrot.slane %v1842_v11, 1 }
 0x191   : > { %v3475_v31 = vadd.f32 %v1850_v7, %v1849_v58  ;;  %v3477_v48 = vadd.f32 %v1878_v10, %v1877_v0  ;;  %v1892_v63 = vrot.slane %v3457_v20, 1 }
 0x192   : > { %v1864_v16 = vrot.slane %v1863_v12, 1  ;;  %v1871_v32 = vrot.slane %v1870_v42, 1  ;;  %v3459_v36 = vadd.f32 %v1857_v51, %v1856_v27  ;;  %v3461_v41 = vadd.f32 %v1843_v59, %v1842_v11 }
 0x193   : > { %4070 = vst [vmem:[#allocation5_spill] sm:$0xff] %v3475_v31  ;;  %4071 = vst [vmem:[#allocation6_spill] sm:$0xff] %v3477_v48 }
 0x194   : > { %4064 = vst [vmem:[#allocation21_spill] sm:$0xff] %v3459_v36  ;;  %4065 = vst [vmem:[#allocation22_spill] sm:$0xff] %v3461_v41  ;;  %v3467_v55 = vadd.f32 %v1864_v16, %v1863_v12  ;;  %v3469_v22 = vadd.f32 %v1871_v32, %v1870_v42 }
 0x196   : > { %4066 = vst [vmem:[#allocation23_spill] sm:$0xff] %v3467_v55  ;;  %4067 = vst [vmem:[#allocation24_spill] sm:$0xff] %v3469_v22 }
 0x1c8   : > { %v1389_v44 = vpop.permute.xlu0 %1388 }
 0x1ca   : > { %v1391_v8 = vpop.permute.xlu1 %1390 }
 0x1cb   : > { %v1392_v21 = vsel %vm305_vm0, %v1389_v44, %v1391_v8  ;;  %v1393_v1 = vsel %vm305_vm0, %v1391_v8, %v1389_v44 }
 0x1cc   : > { %v1394_v30 = vmul.f32 %v1393_v1, %v4068_v23  ;;  %v1395_v37 = vmul.f32 %v1392_v21, %v4069_v33  ;;  %v3473_v35 = vpop.permute.xlu0 %1480 }
 0x1ce   : > { %v1416_v3 = vmul.f32 %v3369_v24, %v1394_v30  ;;  %v1417_v61 = vmul.f32 %v3369_v24, %v1395_v37  ;;  %v1418_v27 = vmul.f32 %v3386_v62, %v1394_v30  ;;  %v1419_v11 = vmul.f32 %v3386_v62, %v1395_v37  ;;  %v3486_v12 = vpop.permute.xlu1 %1482 }
 0x1cf   : > { %v1420_v42 = vmul.f32 %v3381_v52, %v1394_v30  ;;  %v1421_v58 = vmul.f32 %v3381_v52, %v1395_v37  ;;  %v1422_v0 = vmul.f32 %v3398_v56, %v1394_v30  ;;  %v1423_v47 = vmul.f32 %v3398_v56, %v1395_v37 }
 0x1d0   : > { %v1424_v6 = vsel %vm349_vm1, %v1416_v3, 0.0  ;;  %v1431_v51 = vsel %vm349_vm1, %v1417_v61, 0.0  ;;  %v1438_v24 = vsel %vm349_vm1, %v1418_v27, 0.0  ;;  %v1445_v59 = vsel %vm349_vm1, %v1419_v11, 0.0  ;;  %v1581_v7 = vpop.permute.xlu0 %1580 }
 0x1d1   : > { %v1425_v16 = vrot.slane %v1424_v6, 4  ;;  %v1432_v62 = vrot.slane %v1431_v51, 4  ;;  %v1439_v32 = vrot.slane %v1438_v24, 4  ;;  %v1446_v44 = vrot.slane %v1445_v59, 4 }
 0x1d2   : > { %v1452_v10 = vsel %vm349_vm1, %v1420_v42, 0.0  ;;  %v1459_v52 = vsel %vm349_vm1, %v1421_v58, 0.0  ;;  %v1466_v2 = vsel %vm349_vm1, %v1422_v0, 0.0  ;;  %v1473_v56 = vsel %vm349_vm1, %v1423_v47, 0.0  ;;  %v1583_v8 = vpop.permute.xlu1 %1582 }
 0x1d3   : > { %v1426_v21 = vadd.f32 %v1425_v16, %v1424_v6  ;;  %v1433_v1 = vadd.f32 %v1432_v62, %v1431_v51  ;;  %v1440_v23 = vadd.f32 %v1439_v32, %v1438_v24  ;;  %v1447_v30 = vadd.f32 %v1446_v44, %v1445_v59 }
 0x1d4   : > { %v1453_v33 = vrot.slane %v1452_v10, 4  ;;  %v1460_v37 = vrot.slane %v1459_v52, 4  ;;  %v1467_v3 = vrot.slane %v1466_v2, 4  ;;  %v1474_v61 = vrot.slane %v1473_v56, 4  ;;  %v1681_v51 = vpop.permute.xlu0 %1680 }
 0x1d5   : > { %v1427_v27 = vrot.slane %v1426_v21, 2  ;;  %v1434_v11 = vrot.slane %v1433_v1, 2  ;;  %v1441_v31 = vrot.slane %v1440_v23, 2  ;;  %v1448_v48 = vrot.slane %v1447_v30, 2 }
 0x1d6   : > { %v1454_v42 = vadd.f32 %v1453_v33, %v1452_v10  ;;  %v1461_v22 = vadd.f32 %v1460_v37, %v1459_v52  ;;  %v1468_v58 = vadd.f32 %v1467_v3, %v1466_v2  ;;  %v1475_v41 = vadd.f32 %v1474_v61, %v1473_v56  ;;  %v1683_v6 = vpop.permute.xlu1 %1682 }
 0x1d7   : > { %v1428_v0 = vadd.f32 %v1427_v27, %v1426_v21  ;;  %v1435_v55 = vadd.f32 %v1434_v11, %v1433_v1  ;;  %v1442_v47 = vadd.f32 %v1441_v31, %v1440_v23  ;;  %v1449_v36 = vadd.f32 %v1448_v48, %v1447_v30  ;;  %v4075_v11 = vld [vmem:[#allocation8_spill] sm:$0xff] }
 0x1d8   : > { %v1455_v24 = vrot.slane %v1454_v42, 2  ;;  %v1462_v59 = vrot.slane %v1461_v22, 2  ;;  %v1469_v16 = vrot.slane %v1468_v58, 2  ;;  %v1476_v62 = vrot.slane %v1475_v41, 2 }
 0x1d9   : > { %v1429_v32 = vrot.slane %v1428_v0, 1  ;;  %v1436_v44 = vrot.slane %v1435_v55, 1  ;;  %v1443_v43 = vrot.slane %v1442_v47, 1  ;;  %v1450_v28 = vrot.slane %v1449_v36, 1 }
 0x1da   : > { %v1456_v26 = vadd.f32 %v1455_v24, %v1454_v42  ;;  %v1463_v25 = vadd.f32 %v1462_v59, %v1461_v22  ;;  %v1470_v10 = vadd.f32 %v1469_v16, %v1468_v58  ;;  %v1477_v52 = vadd.f32 %v1476_v62, %v1475_v41  ;;  %v4076_v58 = vld [vmem:[#allocation9_spill] sm:$0xff] }
 0x1db   : > { %v3501_v2 = vadd.f32 %v1892_v63, %v3457_v20  ;;  %v3503_v56 = vadd.f32 %v1429_v32, %v1428_v0  ;;  %v3505_v31 = vadd.f32 %v1436_v44, %v1435_v55  ;;  %v3507_v48 = vadd.f32 %v1443_v43, %v1442_v47  ;;  %v3521_v55 = vpop.permute.xlu1 %1904  ;;  %v3523_v63 = vpop.permute.xlu0 %1902 }
 0x1dc   : > { %v1457_v21 = vrot.slane %v1456_v26, 1  ;;  %v1464_v1 = vrot.slane %v1463_v25, 1  ;;  %v1471_v23 = vrot.slane %v1470_v10, 1  ;;  %v1478_v30 = vrot.slane %v1477_v52, 1 }
 0x1dd   : > { %4073 = vst [vmem:[#allocation26_spill] sm:$0xff] %v3501_v2  ;;  %v1484_v22 = vsel %vm410_vm2, %v3473_v35, %v3486_v12  ;;  %v1485_v20 = vsel %vm410_vm2, %v3486_v12, %v3473_v35  ;;  %v1584_v41 = vsel %vm522_vm3, %v1581_v7, %v1583_v8  ;;  %v1585_v43 = vsel %vm522_vm3, %v1583_v8, %v1581_v7  ;;  %v4074_v35 = vld [vmem:[#allocation7_spill] sm:$0xff]  ;;  %v4077_v8 = vld [vmem:[#allocation10_spill] sm:$0xff] }
 0x1de   : > { %v3525_v33 = vadd.f32 %v1450_v28, %v1449_v36  ;;  %v3527_v37 = vadd.f32 %v1457_v21, %v1456_v26  ;;  %v3529_v3 = vadd.f32 %v1464_v1, %v1463_v25  ;;  %v3531_v61 = vadd.f32 %v1471_v23, %v1470_v10 }
 0x1df   : > { %v3533_v27 = vadd.f32 %v1478_v30, %v1477_v52  ;;  %v1486_v12 = vmul.f32 %v1485_v20, %v4074_v35  ;;  %v1487_v42 = vmul.f32 %v1484_v22, %v4075_v11  ;;  %v3538_v7 = vmul.f32 %v1585_v43, %v4076_v58 }
 0x1e0   : > { %v3541_v0 = vmul.f32 %v1584_v41, %v4077_v8  ;;  %v3545_v26 = vsel %vm634_vm4, %v1681_v51, %v1683_v6  ;;  %v3549_v25 = vsel %vm634_vm4, %v1683_v6, %v1681_v51  ;;  %v3555_v28 = vsel %vm855_vm5, %v3523_v63, %v3521_v55 }
 0x1e1   : > { %v1508_v36 = vmul.f32 %v3389_v19, %v1486_v12  ;;  %v1509_v47 = vmul.f32 %v3389_v19, %v1487_v42  ;;  %v1510_v24 = vmul.f32 %v3406_v50, %v1486_v12  ;;  %v1511_v59 = vmul.f32 %v3406_v50, %v1487_v42 }
 0x1e2   : > { %v1512_v16 = vmul.f32 %v3403_v60, %v1486_v12  ;;  %v1513_v62 = vmul.f32 %v3403_v60, %v1487_v42  ;;  %v1514_v6 = vmul.f32 %v3417_v15, %v1486_v12  ;;  %v1515_v51 = vmul.f32 %v3417_v15, %v1487_v42 }
 0x1e3   : > { %v1516_v32 = vsel %vm349_vm1, %v1508_v36, 0.0  ;;  %v1523_v44 = vsel %vm349_vm1, %v1509_v47, 0.0  ;;  %v1530_v10 = vsel %vm349_vm1, %v1510_v24, 0.0  ;;  %v1537_v19 = vsel %vm349_vm1, %v1511_v59, 0.0 }
 0x1e4   : > { %v1517_v52 = vrot.slane %v1516_v32, 4  ;;  %v1524_v21 = vrot.slane %v1523_v44, 4  ;;  %v1531_v1 = vrot.slane %v1530_v10, 4  ;;  %v1538_v50 = vrot.slane %v1537_v19, 4 }
 0x1e5   : > { %v1544_v23 = vsel %vm349_vm1, %v1512_v16, 0.0  ;;  %v1551_v60 = vsel %vm349_vm1, %v1513_v62, 0.0  ;;  %v1558_v30 = vsel %vm349_vm1, %v1514_v6, 0.0  ;;  %v1565_v15 = vsel %vm349_vm1, %v1515_v51, 0.0 }
 0x1e6   : > { %v1518_v22 = vadd.f32 %v1517_v52, %v1516_v32  ;;  %v1525_v20 = vadd.f32 %v1524_v21, %v1523_v44  ;;  %v1532_v41 = vadd.f32 %v1531_v1, %v1530_v10  ;;  %v1539_v43 = vadd.f32 %v1538_v50, %v1537_v19 }
 0x1e7   : > { %v1545_v35 = vrot.slane %v1544_v23, 4  ;;  %v1552_v12 = vrot.slane %v1551_v60, 4  ;;  %v1559_v11 = vrot.slane %v1558_v30, 4  ;;  %v1566_v42 = vrot.slane %v1565_v15, 4 }
 0x1e8   : > { %v1519_v58 = vrot.slane %v1518_v22, 2  ;;  %v1526_v8 = vrot.slane %v1525_v20, 2  ;;  %v1533_v36 = vrot.slane %v1532_v41, 2  ;;  %v1540_v47 = vrot.slane %v1539_v43, 2 }
 0x1e9   : > { %v1546_v24 = vadd.f32 %v1545_v35, %v1544_v23  ;;  %v1553_v59 = vadd.f32 %v1552_v12, %v1551_v60  ;;  %v1560_v16 = vadd.f32 %v1559_v11, %v1558_v30  ;;  %v1567_v62 = vadd.f32 %v1566_v42, %v1565_v15 }
 0x1ea   : > { %v1520_v34 = vadd.f32 %v1519_v58, %v1518_v22  ;;  %v1527_v6 = vadd.f32 %v1526_v8, %v1525_v20  ;;  %v1534_v18 = vadd.f32 %v1533_v36, %v1532_v41  ;;  %v1541_v51 = vadd.f32 %v1540_v47, %v1539_v43 }
 0x1eb   : > { %v1547_v32 = vrot.slane %v1546_v24, 2  ;;  %v1554_v44 = vrot.slane %v1553_v59, 2  ;;  %v1561_v10 = vrot.slane %v1560_v16, 2  ;;  %v1568_v19 = vrot.slane %v1567_v62, 2 }
 0x1ec   : > { %v1521_v52 = vrot.slane %v1520_v34, 1  ;;  %v1528_v21 = vrot.slane %v1527_v6, 1  ;;  %v1535_v1 = vrot.slane %v1534_v18, 1  ;;  %v1542_v50 = vrot.slane %v1541_v51, 1 }
 0x1ed   : > { %v1548_v17 = vadd.f32 %v1547_v32, %v1546_v24  ;;  %v1555_v2 = vadd.f32 %v1554_v44, %v1553_v59  ;;  %v1562_v46 = vadd.f32 %v1561_v10, %v1560_v16  ;;  %v1569_v53 = vadd.f32 %v1568_v19, %v1567_v62 }
 0x1ee   : > { %v1522_v23 = vadd.f32 %v1521_v52, %v1520_v34  ;;  %v1529_v60 = vadd.f32 %v1528_v21, %v1527_v6  ;;  %v1536_v30 = vadd.f32 %v1535_v1, %v1534_v18  ;;  %v1543_v15 = vadd.f32 %v1542_v50, %v1541_v51 }
 0x1ef   : > { %v1549_v22 = vrot.slane %v1548_v17, 1  ;;  %v1556_v20 = vrot.slane %v1555_v2, 1  ;;  %v1563_v41 = vrot.slane %v1562_v46, 1  ;;  %v1570_v43 = vrot.slane %v1569_v53, 1 }
 0x1f0   : > { %v3574_v35 = vadd.f32 %v1522_v23, %v3503_v56  ;;  %v3577_v12 = vadd.f32 %v1529_v60, %v3505_v31  ;;  %v3580_v11 = vadd.f32 %v1536_v30, %v3507_v48  ;;  %v3586_v34 = vsel %vm855_vm5, %v3521_v55, %v3523_v63 }
 0x1f1   : > { %v1550_v18 = vadd.f32 %v1549_v22, %v1548_v17  ;;  %v1557_v42 = vadd.f32 %v1556_v20, %v1555_v2  ;;  %v3588_v58 = vadd.f32 %v1563_v41, %v1562_v46  ;;  %v3591_v8 = vadd.f32 %v1543_v15, %v3525_v33 }
 0x1f2   : > { %v1608_v56 = vmul.f32 %v3412_v40, %v3538_v7  ;;  %v1609_v31 = vmul.f32 %v3412_v40, %v3541_v0  ;;  %v1610_v48 = vmul.f32 %v3421_v45, %v3538_v7  ;;  %v1611_v55 = vmul.f32 %v3421_v45, %v3541_v0 }
 0x1f3   : > { %v3601_v63 = vadd.f32 %v1570_v43, %v1569_v53  ;;  %v3604_v17 = vadd.f32 %v1550_v18, %v3527_v37  ;;  %v1612_v46 = vmul.f32 %v3419_v29, %v3538_v7  ;;  %v1613_v2 = vmul.f32 %v3419_v29, %v3541_v0 }
 0x1f4   : > { %v1614_v40 = vmul.f32 %v3425_v13, %v3538_v7  ;;  %v1615_v33 = vmul.f32 %v3425_v13, %v3541_v0  ;;  %v1616_v36 = vsel %vm349_vm1, %v1608_v56, 0.0  ;;  %v1623_v45 = vsel %vm349_vm1, %v1609_v31, 0.0 }
 0x1f5   : > { %v1617_v53 = vrot.slane %v1616_v36, 4  ;;  %v1624_v47 = vrot.slane %v1623_v45, 4  ;;  %v1630_v37 = vsel %vm349_vm1, %v1610_v48, 0.0  ;;  %v1637_v24 = vsel %vm349_vm1, %v1611_v55, 0.0 }
 0x1f6   : > { %v1631_v59 = vrot.slane %v1630_v37, 4  ;;  %v1638_v16 = vrot.slane %v1637_v24, 4  ;;  %v1644_v29 = vsel %vm349_vm1, %v1612_v46, 0.0  ;;  %v1651_v62 = vsel %vm349_vm1, %v1613_v2, 0.0 }
 0x1f7   : > { %v1618_v7 = vadd.f32 %v1617_v53, %v1616_v36  ;;  %v1625_v6 = vadd.f32 %v1624_v47, %v1623_v45  ;;  %v1645_v51 = vrot.slane %v1644_v29, 4  ;;  %v1652_v13 = vrot.slane %v1651_v62, 4 }
 0x1f8   : > { %v1632_v0 = vadd.f32 %v1631_v59, %v1630_v37  ;;  %v1639_v32 = vadd.f32 %v1638_v16, %v1637_v24  ;;  %v1658_v44 = vsel %vm349_vm1, %v1614_v40, 0.0  ;;  %v1665_v10 = vsel %vm349_vm1, %v1615_v33, 0.0 }
 0x1f9   : > { %v1619_v19 = vrot.slane %v1618_v7, 2  ;;  %v1626_v52 = vrot.slane %v1625_v6, 2  ;;  %v1646_v21 = vadd.f32 %v1645_v51, %v1644_v29  ;;  %v1653_v1 = vadd.f32 %v1652_v13, %v1651_v62  ;;  %v4078_v51 = vld [vmem:[#allocation11_spill] sm:$0xff] }
 0x1fa   : > { %v1633_v50 = vrot.slane %v1632_v0, 2  ;;  %v1640_v23 = vrot.slane %v1639_v32, 2  ;;  %v1659_v60 = vrot.slane %v1658_v44, 4  ;;  %v1666_v30 = vrot.slane %v1665_v10, 4 }
 0x1fb   : > { %v1620_v15 = vadd.f32 %v1619_v19, %v1618_v7  ;;  %v1627_v22 = vadd.f32 %v1626_v52, %v1625_v6  ;;  %v1647_v20 = vrot.slane %v1646_v21, 2  ;;  %v1654_v41 = vrot.slane %v1653_v1, 2  ;;  %v3637_v19 = vpop.permute.xlu1 %2012  ;;  %v3639_v52 = vpop.permute.xlu0 %1927 }
 0x1fc   : > { %v1634_v43 = vadd.f32 %v1633_v50, %v1632_v0  ;;  %v1641_v18 = vadd.f32 %v1640_v23, %v1639_v32  ;;  %v1660_v56 = vadd.f32 %v1659_v60, %v1658_v44  ;;  %v1667_v31 = vadd.f32 %v1666_v30, %v1665_v10  ;;  %v4079_v0 = vld [vmem:[#allocation12_spill] sm:$0xff] }
 0x1fd   : > { %v1621_v48 = vrot.slane %v1620_v15, 1  ;;  %v1628_v55 = vrot.slane %v1627_v22, 1  ;;  %v1648_v46 = vadd.f32 %v1647_v20, %v1646_v21  ;;  %v1655_v2 = vadd.f32 %v1654_v41, %v1653_v1 }
 0x1fe   : > { %v1635_v40 = vrot.slane %v1634_v43, 1  ;;  %v1642_v33 = vrot.slane %v1641_v18, 1  ;;  %v1661_v36 = vrot.slane %v1660_v56, 2  ;;  %v1668_v45 = vrot.slane %v1667_v31, 2 }
 0x1ff   : > { %v1577_v53 = vadd.f32 %v1557_v42, %v3529_v3  ;;  %v3623_v47 = vadd.f32 %v1621_v48, %v1620_v15  ;;  %v1649_v37 = vrot.slane %v1648_v46, 1  ;;  %v1656_v24 = vrot.slane %v1655_v2, 1 }
 0x200   : > { %v1636_v59 = vadd.f32 %v1635_v40, %v1634_v43  ;;  %v1643_v16 = vadd.f32 %v1642_v33, %v1641_v18  ;;  %v1662_v29 = vadd.f32 %v1661_v36, %v1660_v56  ;;  %v3625_v62 = vadd.f32 %v1668_v45, %v1667_v31 }
 0x201   : > { %v1650_v7 = vadd.f32 %v1649_v37, %v1648_v46  ;;  %v1657_v6 = vadd.f32 %v1656_v24, %v1655_v2  ;;  %v1686_v13 = vmul.f32 %v3549_v25, %v4078_v51  ;;  %v1687_v32 = vmul.f32 %v3545_v26, %v4079_v0  ;;  %v3669_v46 = vpop.permute.xlu0 %2022 }
 0x202   : > { %v3631_v44 = vadd.f32 %v1628_v55, %v1627_v22  ;;  %v1663_v3 = vrot.slane %v1662_v29, 1  ;;  %v1670_v42 = vrot.slane %v3625_v62, 1  ;;  %v3635_v10 = vadd.f32 %v1636_v59, %v3580_v11  ;;  %v3667_v55 = vpop.permute.xlu1 %2117 }
 0x203   : > { %v3642_v21 = vadd.f32 %v1643_v16, %v3591_v8  ;;  %v3645_v25 = vadd.f32 %v1650_v7, %v3604_v17  ;;  %v1708_v26 = vmul.f32 %v3423_v39, %v1686_v13  ;;  %v1709_v1 = vmul.f32 %v3423_v39, %v1687_v32 }
 0x204   : > { %v3649_v50 = vadd.f32 %v1663_v3, %v1662_v29  ;;  %v3651_v23 = vadd.f32 %v1657_v6, %v1577_v53  ;;  %v1710_v11 = vmul.f32 %v3429_v38, %v1686_v13  ;;  %v1711_v60 = vmul.f32 %v3429_v38, %v1687_v32 }
 0x205   : > { %v1712_v30 = vmul.f32 %v3427_v14, %v1686_v13  ;;  %v1713_v8 = vmul.f32 %v3427_v14, %v1687_v32  ;;  %v1714_v15 = vmul.f32 %v3431_v57, %v1686_v13  ;;  %v1715_v17 = vmul.f32 %v3431_v57, %v1687_v32 }
 0x206   : > { %v1716_v22 = vsel %vm349_vm1, %v1708_v26, 0.0  ;;  %v1723_v39 = vsel %vm349_vm1, %v1709_v1, 0.0  ;;  %v1730_v20 = vsel %vm349_vm1, %v1710_v11, 0.0  ;;  %v1737_v41 = vsel %vm349_vm1, %v1711_v60, 0.0 }
 0x207   : > { %v1717_v43 = vrot.slane %v1716_v22, 4  ;;  %v1724_v18 = vrot.slane %v1723_v39, 4  ;;  %v1731_v56 = vrot.slane %v1730_v20, 4  ;;  %v1738_v38 = vrot.slane %v1737_v41, 4 }
 0x208   : > { %v1744_v31 = vsel %vm349_vm1, %v1712_v30, 0.0  ;;  %v1751_v14 = vsel %vm349_vm1, %v1713_v8, 0.0  ;;  %v1758_v48 = vsel %vm349_vm1, %v1714_v15, 0.0  ;;  %v1765_v57 = vsel %vm349_vm1, %v1715_v17, 0.0  ;;  %v3671_v15 = vpop.permute.xlu1 %2004  ;;  %v3673_v17 = vpop.permute.xlu0 %2002 }
 0x209   : > { %v1718_v2 = vadd.f32 %v1717_v43, %v1716_v22  ;;  %v1725_v40 = vadd.f32 %v1724_v18, %v1723_v39  ;;  %v1732_v33 = vadd.f32 %v1731_v56, %v1730_v20  ;;  %v1739_v36 = vadd.f32 %v1738_v38, %v1737_v41 }
 0x20a   : > { %v1745_v45 = vrot.slane %v1744_v31, 4  ;;  %v1752_v53 = vrot.slane %v1751_v14, 4  ;;  %v1759_v37 = vrot.slane %v1758_v48, 4  ;;  %v1766_v24 = vrot.slane %v1765_v57, 4 }
 0x20b   : > { %v1719_v59 = vrot.slane %v1718_v2, 2  ;;  %v1726_v16 = vrot.slane %v1725_v40, 2  ;;  %v1733_v29 = vrot.slane %v1732_v33, 2  ;;  %v1740_v7 = vrot.slane %v1739_v36, 2 }
 0x20c   : > { %v1746_v6 = vadd.f32 %v1745_v45, %v1744_v31  ;;  %v1753_v51 = vadd.f32 %v1752_v53, %v1751_v14  ;;  %v1760_v13 = vadd.f32 %v1759_v37, %v1758_v48  ;;  %v1767_v0 = vadd.f32 %v1766_v24, %v1765_v57 }
 0x20d   : > { %v1720_v32 = vadd.f32 %v1719_v59, %v1718_v2  ;;  %v1727_v3 = vadd.f32 %v1726_v16, %v1725_v40  ;;  %v1734_v26 = vadd.f32 %v1733_v29, %v1732_v33  ;;  %v1741_v1 = vadd.f32 %v1740_v7, %v1739_v36  ;;  %v3696_v29 = vpop.permute.xlu1 %2112  ;;  %v3698_v7 = vpop.permute.xlu0 %2027 }
 0x20e   : > { %v1747_v11 = vrot.slane %v1746_v6, 2  ;;  %v1754_v60 = vrot.slane %v1753_v51, 2  ;;  %v1761_v30 = vrot.slane %v1760_v13, 2  ;;  %v1768_v8 = vrot.slane %v1767_v0, 2 }
 0x20f   : > { %v1721_v22 = vrot.slane %v1720_v32, 1  ;;  %v1728_v39 = vrot.slane %v1727_v3, 1  ;;  %v1735_v20 = vrot.slane %v1734_v26, 1  ;;  %v1742_v41 = vrot.slane %v1741_v1, 1 }
 0x210   : > { %v1748_v43 = vadd.f32 %v1747_v11, %v1746_v6  ;;  %v1755_v18 = vadd.f32 %v1754_v60, %v1753_v51  ;;  %v1762_v56 = vadd.f32 %v1761_v30, %v1760_v13  ;;  %v1769_v38 = vadd.f32 %v1768_v8, %v1767_v0 }
 0x211   : > { %v1671_v31 = vadd.f32 %v1670_v42, %v3625_v62  ;;  %v3678_v14 = vadd.f32 %v1721_v22, %v1720_v32  ;;  %v3680_v48 = vadd.f32 %v1728_v39, %v1727_v3  ;;  %v3682_v57 = vadd.f32 %v1735_v20, %v1734_v26  ;;  %v3713_v20 = vpop.permute.xlu1 %2217 }
 0x212   : > { %v3684_v2 = vadd.f32 %v1742_v41, %v1741_v1  ;;  %v1749_v40 = vrot.slane %v1748_v43, 1  ;;  %v1763_v33 = vrot.slane %v1762_v56, 1  ;;  %v1770_v36 = vrot.slane %v1769_v38, 1  ;;  %v3715_v41 = vpop.permute.xlu0 %2122 }
 0x213   : > { %v1756_v45 = vrot.slane %v1755_v18, 1  ;;  %v1908_v53 = vmul.f32 %v3555_v28, %v2952_v4  ;;  %v1909_v37 = vmul.f32 %v3586_v34, %v2955_v5  ;;  %v1578_v62 = vadd.f32 %v3588_v58, %v3531_v61  ;;  %v4080_v61 = vld [vmem:[#allocation19_spill] sm:$0xff] }
 0x214   : > { %v3692_v42 = vadd.f32 %v1749_v40, %v1748_v43  ;;  %v1579_v24 = vadd.f32 %v3601_v63, %v3533_v27  ;;  %v1764_v59 = vadd.f32 %v1763_v33, %v1762_v56  ;;  %v1771_v16 = vadd.f32 %v1770_v36, %v1769_v38  ;;  %v4081_v38 = vld [vmem:[#allocation25_spill] sm:$0xff]  ;;  %v4082_v40 = vld [vmem:[#allocation26_spill] sm:$0xff] }
 0x215   : > { %v1930_v6 = vmul.f32 %v3451_v54, %v1908_v53  ;;  %v1931_v4 = vmul.f32 %v3451_v54, %v1909_v37  ;;  %v1932_v5 = vmul.f32 %v3448_v9, %v1908_v53  ;;  %v1933_v28 = vmul.f32 %v3448_v9, %v1909_v37 }
 0x216   : > { %v1934_v34 = vmul.f32 %v4080_v61, %v1908_v53  ;;  %v1935_v58 = vmul.f32 %v4080_v61, %v1909_v37  ;;  %v1678_v27 = vadd.f32 %v3649_v50, %v1578_v62  ;;  %v1679_v63 = vadd.f32 %v1671_v31, %v1579_v24 }
 0x217   : > { %v1938_v51 = vsel %vm349_vm1, %v1930_v6, 0.0  ;;  %v1945_v13 = vsel %vm349_vm1, %v1931_v4, 0.0  ;;  %v1952_v0 = vsel %vm349_vm1, %v1932_v5, 0.0  ;;  %v1959_v32 = vsel %vm349_vm1, %v1933_v28, 0.0 }
 0x218   : > { %v1939_v54 = vrot.slane %v1938_v51, 4  ;;  %v1946_v3 = vrot.slane %v1945_v13, 4  ;;  %v1953_v26 = vrot.slane %v1952_v0, 4  ;;  %v1960_v1 = vrot.slane %v1959_v32, 4 }
 0x219   : > { %v1966_v9 = vsel %vm349_vm1, %v1934_v34, 0.0  ;;  %v1973_v11 = vsel %vm349_vm1, %v1935_v58, 0.0  ;;  %v1778_v60 = vadd.f32 %v1764_v59, %v1678_v27  ;;  %v1779_v30 = vadd.f32 %v1771_v16, %v1679_v63 }
 0x21a   : > { %v1940_v50 = vadd.f32 %v1939_v54, %v1938_v51  ;;  %v1947_v8 = vadd.f32 %v1946_v3, %v1945_v13  ;;  %v1954_v22 = vadd.f32 %v1953_v26, %v1952_v0  ;;  %v1961_v39 = vadd.f32 %v1960_v1, %v1959_v32 }
 0x21b   : > { %v1967_v43 = vrot.slane %v1966_v9, 4  ;;  %v1974_v56 = vrot.slane %v1973_v11, 4  ;;  %v3718_v31 = vadd.f32 %v4081_v38, %v1778_v60  ;;  %v3721_v33 = vadd.f32 %v4082_v40, %v1779_v30  ;;  %v4084_v30 = vld [vmem:[#allocation14_spill] sm:$0xff] }
 0x21c   : > { %v1941_v36 = vrot.slane %v1940_v50, 2  ;;  %v1948_v62 = vrot.slane %v1947_v8, 2  ;;  %v1955_v24 = vrot.slane %v1954_v22, 2  ;;  %v1962_v59 = vrot.slane %v1961_v39, 2 }
 0x21d   : > { %v1968_v16 = vadd.f32 %v1967_v43, %v1966_v9  ;;  %v1975_v6 = vadd.f32 %v1974_v56, %v1973_v11  ;;  %v1936_v4 = vmul.f32 %v3639_v52, %v1908_v53  ;;  %v1937_v5 = vmul.f32 %v3639_v52, %v1909_v37  ;;  %v4083_v11 = vld [vmem:[#allocation13_spill] sm:$0xff] }
 0x21e   : > { %v3725_v28 = vadd.f32 %v1756_v45, %v1755_v18  ;;  %v3727_v61 = vadd.f32 %v1941_v36, %v1940_v50  ;;  %v3729_v34 = vadd.f32 %v1955_v24, %v1954_v22  ;;  %v3731_v58 = vadd.f32 %v1962_v59, %v1961_v39  ;;  %v2105_v18 = vpop.permute.xlu1 %2104  ;;  %v2103_v45 = vpop.permute.xlu0 %2102 }
 0x21f   : > { %v1969_v27 = vrot.slane %v1968_v16, 2  ;;  %v1976_v63 = vrot.slane %v1975_v6, 2  ;;  %v1980_v51 = vsel %vm349_vm1, %v1936_v4, 0.0  ;;  %v1987_v13 = vsel %vm349_vm1, %v1937_v5, 0.0 }
 0x220   : > { %v3735_v0 = vadd.f32 %v1948_v62, %v1947_v8  ;;  %v1981_v32 = vrot.slane %v1980_v51, 4  ;;  %v1988_v52 = vrot.slane %v1987_v13, 4  ;;  %v2006_v3 = vsel %vm967_vm6, %v3673_v17, %v3671_v15 }
 0x221   : > { %v3738_v37 = vadd.f32 %v1969_v27, %v1968_v16  ;;  %v3740_v54 = vadd.f32 %v1976_v63, %v1975_v6  ;;  %v2007_v26 = vsel %vm967_vm6, %v3671_v15, %v3673_v17  ;;  %v2008_v60 = vmul.f32 %v2006_v3, %v4083_v11  ;;  %v4085_v17 = vld [vmem:[#allocation20_spill] sm:$0xff] }
 0x222   : > { %v1982_v1 = vadd.f32 %v1981_v32, %v1980_v51  ;;  %v1989_v9 = vadd.f32 %v1988_v52, %v1987_v13  ;;  %v2009_v50 = vmul.f32 %v2007_v26, %v4084_v30  ;;  %v2106_v43 = vsel %vm1079_vm7, %v2103_v45, %v2105_v18 }
 0x223   : > { %v2030_v40 = vmul.f32 %v3637_v19, %v2008_v60  ;;  %v2032_v36 = vmul.f32 %v4085_v17, %v2008_v60  ;;  %v2034_v24 = vmul.f32 %v3669_v46, %v2008_v60 }
 0x224   : > { %v1983_v56 = vrot.slane %v1982_v1, 2  ;;  %v1990_v38 = vrot.slane %v1989_v9, 2  ;;  %v2031_v15 = vmul.f32 %v3637_v19, %v2009_v50  ;;  %v2033_v62 = vmul.f32 %v4085_v17, %v2009_v50 }
 0x225   : > { %v2035_v59 = vmul.f32 %v3669_v46, %v2009_v50  ;;  %v2038_v4 = vsel %vm349_vm1, %v2030_v40, 0.0  ;;  %v2052_v51 = vsel %vm349_vm1, %v2032_v36, 0.0  ;;  %v2066_v46 = vsel %vm349_vm1, %v2034_v24, 0.0 }
 0x226   : > { %v1984_v16 = vadd.f32 %v1983_v56, %v1982_v1  ;;  %v1991_v6 = vadd.f32 %v1990_v38, %v1989_v9  ;;  %v2045_v5 = vsel %vm349_vm1, %v2031_v15, 0.0  ;;  %v2039_v27 = vrot.slane %v2038_v4, 4 }
 0x227   : > { %v2046_v63 = vrot.slane %v2045_v5, 4  ;;  %v2059_v19 = vsel %vm349_vm1, %v2033_v62, 0.0  ;;  %v2053_v52 = vrot.slane %v2052_v51, 4  ;;  %v2073_v1 = vsel %vm349_vm1, %v2035_v59, 0.0 }
 0x228   : > { %v1985_v13 = vrot.slane %v1984_v16, 1  ;;  %v1992_v32 = vrot.slane %v1991_v6, 1  ;;  %v2060_v3 = vrot.slane %v2059_v19, 4  ;;  %v3767_v26 = vadd.f32 %v2039_v27, %v2038_v4 }
 0x229   : > { %v3769_v11 = vadd.f32 %v2046_v63, %v2045_v5  ;;  %v2054_v56 = vadd.f32 %v2053_v52, %v2052_v51  ;;  %v2067_v15 = vrot.slane %v2066_v46, 4  ;;  %v2074_v17 = vrot.slane %v2073_v1, 4  ;;  %v2128_v63 = vpop.permute.xlu0 %2127 }
 0x22a   : > { %v1986_v9 = vadd.f32 %v1985_v13, %v1984_v16  ;;  %v1993_v30 = vadd.f32 %v1992_v32, %v1991_v6  ;;  %v2061_v38 = vadd.f32 %v2060_v3, %v2059_v19  ;;  %v2107_v36 = vsel %vm1079_vm7, %v2105_v18, %v2103_v45  ;;  %v4086_v18 = vld [vmem:[#allocation15_spill] sm:$0xff] }
 0x22b   : > { %v2055_v5 = vrot.slane %v2054_v56, 2  ;;  %v2068_v27 = vadd.f32 %v2067_v15, %v2066_v46  ;;  %v2075_v59 = vadd.f32 %v2074_v17, %v2073_v1  ;;  %v2036_v16 = vmul.f32 %v3698_v7, %v2008_v60 }
 0x22c   : > { %v3777_v62 = vadd.f32 %v1986_v9, %v3718_v31  ;;  %v2062_v24 = vrot.slane %v2061_v38, 2  ;;  %v2037_v6 = vmul.f32 %v3698_v7, %v2009_v50  ;;  %v3783_v51 = vadd.f32 %v1993_v30, %v3721_v33  ;;  %v4087_v31 = vld [vmem:[#allocation16_spill] sm:$0xff] }
 0x22d   : > { %v3785_v19 = vadd.f32 %v2055_v5, %v2054_v56  ;;  %v2108_v45 = vmul.f32 %v2106_v43, %v4086_v18  ;;  %v2109_v13 = vmul.f32 %v2107_v36, %v4087_v31  ;;  %v2069_v52 = vrot.slane %v2068_v27, 2 }
 0x22e   : > { %v3789_v32 = vadd.f32 %v2062_v24, %v2061_v38  ;;  %v2080_v3 = vsel %vm349_vm1, %v2036_v16, 0.0  ;;  %v2087_v46 = vsel %vm349_vm1, %v2037_v6, 0.0  ;;  %v2076_v9 = vrot.slane %v2075_v59, 2 }
 0x22f   : > { %v2081_v60 = vrot.slane %v2080_v3, 4  ;;  %v2088_v1 = vrot.slane %v2087_v46, 4  ;;  %v2130_v7 = vmul.f32 %v3696_v29, %v2108_v45  ;;  %v2131_v33 = vmul.f32 %v3696_v29, %v2109_v13 }
 0x230   : > { %v3795_v50 = vadd.f32 %v2069_v52, %v2068_v27  ;;  %v2132_v43 = vmul.f32 %v3667_v55, %v2108_v45  ;;  %v2133_v30 = vmul.f32 %v3667_v55, %v2109_v13  ;;  %v2134_v15 = vmul.f32 %v3715_v41, %v2108_v45  ;;  %v2223_v27 = vpop.permute.xlu0 %2222  ;;  %v2213_v55 = vpop.permute.xlu1 %2212 }
 0x231   : > { %v2082_v56 = vadd.f32 %v2081_v60, %v2080_v3  ;;  %v2089_v38 = vadd.f32 %v2088_v1, %v2087_v46  ;;  %v2135_v17 = vmul.f32 %v3715_v41, %v2109_v13  ;;  %v2138_v36 = vsel %vm349_vm1, %v2130_v7, 0.0 }
 0x232   : > { %4088 = vst [vmem:[#allocation7_spill] sm:$0xff] %v3795_v50  ;;  %v2145_v5 = vsel %vm349_vm1, %v2131_v33, 0.0  ;;  %v2152_v24 = vsel %vm349_vm1, %v2132_v43, 0.0  ;;  %v2159_v29 = vsel %vm349_vm1, %v2133_v30, 0.0  ;;  %v2139_v18 = vrot.slane %v2138_v36, 4 }
 0x233   : > { %v2083_v16 = vrot.slane %v2082_v56, 2  ;;  %v2090_v6 = vrot.slane %v2089_v38, 2  ;;  %v2146_v31 = vrot.slane %v2145_v5, 4  ;;  %v2153_v52 = vrot.slane %v2152_v24, 4 }
 0x234   : > { %v2160_v3 = vrot.slane %v2159_v29, 4  ;;  %v2166_v46 = vsel %vm349_vm1, %v2134_v15, 0.0  ;;  %v2173_v41 = vsel %vm349_vm1, %v2135_v17, 0.0  ;;  %v3807_v60 = vadd.f32 %v2076_v9, %v2075_v59 }
 0x235   : > { %v2084_v1 = vadd.f32 %v2083_v16, %v2082_v56  ;;  %v2091_v7 = vadd.f32 %v2090_v6, %v2089_v38  ;;  %v3809_v33 = vadd.f32 %v2139_v18, %v2138_v36  ;;  %v3811_v43 = vadd.f32 %v2153_v52, %v2152_v24  ;;  %v2205_v56 = vpop.permute.xlu0 %2204  ;;  %v4090_v18 = vld [vmem:[#allocation18_spill] sm:$0xff] }
 0x236   : > { %v3813_v30 = vadd.f32 %v2160_v3, %v2159_v29  ;;  %v2167_v4 = vrot.slane %v2166_v46, 4  ;;  %v2174_v40 = vrot.slane %v2173_v41, 4  ;;  %v2136_v8 = vmul.f32 %v2128_v63, %v2108_v45  ;;  %v2203_v29 = vpop.permute.xlu1 %2202 }
 0x237   : > { %v2085_v39 = vrot.slane %v2084_v1, 1  ;;  %v2092_v22 = vrot.slane %v2091_v7, 1  ;;  %v2137_v53 = vmul.f32 %v2128_v63, %v2109_v13  ;;  %v3815_v50 = vadd.f32 %v2146_v31, %v2145_v5 }
 0x238   : > { %v2155_v15 = vrot.slane %v3811_v43, 2  ;;  %v3818_v59 = vadd.f32 %v2167_v4, %v2166_v46  ;;  %v3820_v9 = vadd.f32 %v2174_v40, %v2173_v41  ;;  %v2180_v36 = vsel %vm349_vm1, %v2136_v8, 0.0 }
 0x239   : > { %v2086_v38 = vadd.f32 %v2085_v39, %v2084_v1  ;;  %v2093_v17 = vadd.f32 %v2092_v22, %v2091_v7  ;;  %v2187_v24 = vsel %vm349_vm1, %v2137_v53, 0.0  ;;  %v2162_v16 = vrot.slane %v3813_v30, 2  ;;  %v4089_v53 = vld [vmem:[#allocation17_spill] sm:$0xff] }
 0x23a   : > { %v2169_v63 = vrot.slane %v3818_v59, 2  ;;  %v2181_v45 = vrot.slane %v2180_v36, 4  ;;  %v2188_v13 = vrot.slane %v2187_v24, 4  ;;  %v2176_v4 = vrot.slane %v3820_v9, 2 }
 0x23b   : > { %v2100_v5 = vadd.f32 %v2086_v38, %v3777_v62  ;;  %v2206_v40 = vsel %vm1191_vm8, %v2203_v29, %v2205_v56  ;;  %v2207_v22 = vsel %vm1191_vm8, %v2205_v56, %v2203_v29  ;;  %v2101_v52 = vadd.f32 %v2093_v17, %v3783_v51  ;;  %v2228_v56 = vpop.permute.xlu1 %2227 }
 0x23c   : > { %v2182_v8 = vadd.f32 %v2181_v45, %v2180_v36  ;;  %v2189_v39 = vadd.f32 %v2188_v13, %v2187_v24  ;;  %v2208_v6 = vmul.f32 %v2206_v40, %v4089_v53  ;;  %v2209_v31 = vmul.f32 %v2207_v22, %v4090_v18 }
 0x23d   : > { %v1672_v3 = vadd.f32 %v3623_v47, %v3574_v35  ;;  %v1673_v62 = vadd.f32 %v3631_v44, %v3577_v12  ;;  %v1774_v46 = vadd.f32 %v3682_v57, %v3635_v10 }
 0x23e   : > { %v2183_v41 = vrot.slane %v2182_v8, 2  ;;  %v2190_v49 = vrot.slane %v2189_v39, 2  ;;  %v2230_v1 = vmul.f32 %v2213_v55, %v2208_v6  ;;  %v2231_v7 = vmul.f32 %v2213_v55, %v2209_v31 }
 0x23f   : > { %v2232_v38 = vmul.f32 %v3713_v20, %v2208_v6  ;;  %v2233_v36 = vmul.f32 %v3713_v20, %v2209_v31  ;;  %v2234_v24 = vmul.f32 %v2223_v27, %v2208_v6  ;;  %v2235_v51 = vmul.f32 %v2223_v27, %v2209_v31 }
 0x240   : > { %v2184_v17 = vadd.f32 %v2183_v41, %v2182_v8  ;;  %v2191_v29 = vadd.f32 %v2190_v49, %v2189_v39  ;;  %v2236_v35 = vmul.f32 %v2228_v56, %v2208_v6  ;;  %v2237_v47 = vmul.f32 %v2228_v56, %v2209_v31 }
 0x241   : > { %v3844_v12 = vsel %vm349_vm1, %v2230_v1, 0.0  ;;  %v3847_v44 = vsel %vm349_vm1, %v2231_v7, 0.0  ;;  %v2252_v10 = vsel %vm349_vm1, %v2232_v38, 0.0  ;;  %v2259_v57 = vsel %vm349_vm1, %v2233_v36, 0.0 }
 0x242   : > { %v2185_v55 = vrot.slane %v2184_v17, 1  ;;  %v2192_v45 = vrot.slane %v2191_v29, 1  ;;  %v2239_v20 = vrot.slane %v3844_v12, 4  ;;  %v1775_v27 = vadd.f32 %v3684_v2, %v3642_v21 }
 0x243   : > { %v2253_v13 = vrot.slane %v2252_v10, 4  ;;  %v2260_v40 = vrot.slane %v2259_v57, 4  ;;  %v2266_v22 = vsel %vm349_vm1, %v2234_v24, 0.0  ;;  %v2273_v8 = vsel %vm349_vm1, %v2235_v51, 0.0 }
 0x244   : > { %v2186_v39 = vadd.f32 %v2185_v55, %v2184_v17  ;;  %v2193_v53 = vadd.f32 %v2192_v45, %v2191_v29  ;;  %v2246_v6 = vrot.slane %v3847_v44, 4  ;;  %v2267_v18 = vrot.slane %v2266_v22, 4  ;;  %v4093_v45 = vld [vmem:[#allocation22_spill] sm:$0xff] }
 0x245   : > { %v3857_v31 = vadd.f32 %v2253_v13, %v2252_v10  ;;  %v2274_v41 = vrot.slane %v2273_v8, 4  ;;  %v2280_v49 = vsel %vm349_vm1, %v2236_v35, 0.0  ;;  %v2287_v1 = vsel %vm349_vm1, %v2237_v47, 0.0 }
 0x246   : > { %v3861_v7 = vadd.f32 %v2186_v39, %v2100_v5  ;;  %v3863_v21 = vadd.f32 %v2193_v53, %v2101_v52  ;;  %v3865_v2 = vadd.f32 %v2260_v40, %v2259_v57  ;;  %v3867_v56 = vadd.f32 %v2267_v18, %v2266_v22  ;;  %v4091_v5 = vld [vmem:[#allocation21_spill] sm:$0xff]  ;;  %v4092_v52 = vld [vmem:[#allocation23_spill] sm:$0xff] }
 0x247   : > { %v2281_v38 = vrot.slane %v2280_v49, 4  ;;  %v2288_v36 = vrot.slane %v2287_v1, 4  ;;  %v1772_v24 = vadd.f32 %v3678_v14, %v1672_v3  ;;  %v1773_v51 = vadd.f32 %v3680_v48, %v1673_v62  ;;  %v4094_v3 = vld [vmem:[#allocation24_spill] sm:$0xff]  ;;  %v4095_v62 = vld [vmem:[#allocation6_spill] sm:$0xff]  ;;  %v4100_v53 = vld [vmem:[#allocation5_spill] sm:$0xff] }
 0x248   : > { %v1776_v17 = vadd.f32 %v3692_v42, %v3645_v25  ;;  %v1777_v29 = vadd.f32 %v3725_v28, %v3651_v23  ;;  %v1896_v35 = vadd.f32 %v4091_v5, %v1774_v46  ;;  %v1897_v47 = vadd.f32 %v4092_v52, %v1775_v27  ;;  %v4103_v52 = vld [vmem:[#allocation7_spill] sm:$0xff] }
 0x249   : > { %v3877_v10 = vadd.f32 %v2274_v41, %v2273_v8  ;;  %v3879_v57 = vadd.f32 %v2281_v38, %v2280_v49  ;;  %v3881_v55 = vadd.f32 %v2288_v36, %v2287_v1  ;;  %v1894_v14 = vadd.f32 %v4093_v45, %v1772_v24 }
 0x24a   : > { %v1898_v48 = vadd.f32 %v4094_v3, %v1776_v17  ;;  %v1899_v13 = vadd.f32 %v4095_v62, %v1777_v29  ;;  %v1943_v25 = vrot.slane %v3727_v61, 1  ;;  %v1950_v23 = vrot.slane %v3735_v0, 1 }
 0x24b   : > { %v4096_v42 = vrot.slane %v3729_v34, 1  ;;  %v4097_v46 = vrot.slane %v3731_v58, 1  ;;  %v4098_v40 = vrot.slane %v3738_v37, 1  ;;  %v4099_v8 = vrot.slane %v3740_v54, 1 }
 0x24c   : > { %v1895_v18 = vadd.f32 %v4100_v53, %v1773_v51  ;;  %v1944_v41 = vadd.f32 %v1943_v25, %v3727_v61  ;;  %v4101_v49 = vrot.slane %v3767_v26, 2  ;;  %v4102_v1 = vrot.slane %v3769_v11, 2 }
 0x24d   : > { %v1958_v28 = vadd.f32 %v4096_v42, %v3729_v34  ;;  %v1965_v27 = vadd.f32 %v4097_v46, %v3731_v58  ;;  %v1972_v22 = vadd.f32 %v4098_v40, %v3738_v37  ;;  %v1979_v39 = vadd.f32 %v4099_v8, %v3740_v54 }
 0x24e   : > { %v2042_v34 = vadd.f32 %v4101_v49, %v3767_v26  ;;  %v2049_v58 = vadd.f32 %v4102_v1, %v3769_v11  ;;  %v1951_v38 = vadd.f32 %v1950_v23, %v3735_v0  ;;  %v1994_v17 = vadd.f32 %v1944_v41, %v1894_v14 }
 0x24f   : > { %v1996_v36 = vadd.f32 %v1958_v28, %v1896_v35  ;;  %v1997_v37 = vadd.f32 %v1965_v27, %v1897_v47  ;;  %v1998_v24 = vadd.f32 %v1972_v22, %v1898_v48  ;;  %v1999_v29 = vadd.f32 %v1979_v39, %v1899_v13 }
 0x250   : > { %v2043_v54 = vrot.slane %v2042_v34, 1  ;;  %v2050_v5 = vrot.slane %v2049_v58, 1  ;;  %v2057_v51 = vrot.slane %v3785_v19, 1  ;;  %v2064_v61 = vrot.slane %v3789_v32, 1 }
 0x251   : > { %v2071_v45 = vrot.slane %v4103_v52, 1  ;;  %v2078_v26 = vrot.slane %v3807_v60, 1  ;;  %v2141_v11 = vrot.slane %v3809_v33, 2  ;;  %v2148_v0 = vrot.slane %v3815_v50, 2 }
 0x252   : > { %v2044_v3 = vadd.f32 %v2043_v54, %v2042_v34  ;;  %v2051_v62 = vadd.f32 %v2050_v5, %v2049_v58  ;;  %v1995_v35 = vadd.f32 %v1951_v38, %v1895_v18  ;;  %v2058_v47 = vadd.f32 %v2057_v51, %v3785_v19 }
 0x253   : > { %v2065_v14 = vadd.f32 %v2064_v61, %v3789_v32  ;;  %v2072_v48 = vadd.f32 %v2071_v45, %v4103_v52  ;;  %v2079_v13 = vadd.f32 %v2078_v26, %v3807_v60  ;;  %v2142_v23 = vadd.f32 %v2141_v11, %v3809_v33 }
 0x254   : > { %v2094_v25 = vadd.f32 %v2044_v3, %v1994_v17  ;;  %v2149_v42 = vadd.f32 %v2148_v0, %v3815_v50  ;;  %v2095_v28 = vadd.f32 %v2051_v62, %v1995_v35  ;;  %v2096_v46 = vadd.f32 %v2058_v47, %v1996_v36  ;;  %v2306_v35 = vpop.permute.xlu0 %2305 }
 0x255   : > { %v2097_v27 = vadd.f32 %v2065_v14, %v1997_v37  ;;  %v2098_v40 = vadd.f32 %v2072_v48, %v1998_v24  ;;  %v2143_v22 = vrot.slane %v2142_v23, 1  ;;  %v2156_v19 = vadd.f32 %v2155_v15, %v3811_v43 }
 0x256   : > { %v2150_v8 = vrot.slane %v2149_v42, 1  ;;  %v2163_v32 = vadd.f32 %v2162_v16, %v3813_v30  ;;  %v2170_v60 = vadd.f32 %v2169_v63, %v3818_v59  ;;  %v2177_v50 = vadd.f32 %v2176_v4, %v3820_v9 }
 0x257   : > { %v2240_v33 = vadd.f32 %v2239_v20, %v3844_v12  ;;  %v2247_v43 = vadd.f32 %v2246_v6, %v3847_v44  ;;  %v2144_v15 = vadd.f32 %v2143_v22, %v2142_v23  ;;  %v2157_v53 = vrot.slane %v2156_v19, 1 }
 0x258   : > { %v2151_v39 = vadd.f32 %v2150_v8, %v2149_v42  ;;  %v2164_v30 = vrot.slane %v2163_v32, 1  ;;  %v2171_v16 = vrot.slane %v2170_v60, 1  ;;  %v2178_v18 = vrot.slane %v2177_v50, 1 }
 0x259   : > { %v2241_v41 = vrot.slane %v2240_v33, 2  ;;  %v2248_v59 = vrot.slane %v2247_v43, 2  ;;  %v2099_v63 = vadd.f32 %v2079_v13, %v1999_v29  ;;  %v2158_v49 = vadd.f32 %v2157_v53, %v2156_v19 }
 0x25a   : > { %v2165_v34 = vadd.f32 %v2164_v30, %v2163_v32  ;;  %v2194_v9 = vadd.f32 %v2144_v15, %v2094_v25  ;;  %v2172_v4 = vadd.f32 %v2171_v16, %v2170_v60  ;;  %v2195_v1 = vadd.f32 %v2151_v39, %v2095_v28 }
 0x25b   : > { %v2242_v58 = vadd.f32 %v2241_v41, %v2240_v33  ;;  %v2249_v12 = vadd.f32 %v2248_v59, %v2247_v43  ;;  %v2179_v20 = vadd.f32 %v2178_v18, %v2177_v50  ;;  %v2196_v38 = vadd.f32 %v2158_v49, %v2096_v46 }
 0x25c   : > { %v2255_v44 = vrot.slane %v3857_v31, 2  ;;  %v2262_v6 = vrot.slane %v3865_v2, 2  ;;  %v2197_v36 = vadd.f32 %v2165_v34, %v2097_v27  ;;  %v2198_v37 = vadd.f32 %v2172_v4, %v2098_v40 }
 0x25d   : > { %v2243_v24 = vrot.slane %v2242_v58, 1  ;;  %v2250_v17 = vrot.slane %v2249_v12, 1  ;;  %v2269_v5 = vrot.slane %v3867_v56, 2  ;;  %v2276_v51 = vrot.slane %v3877_v10, 2 }
 0x25e   : > { %v2256_v54 = vadd.f32 %v2255_v44, %v3857_v31  ;;  %v2263_v29 = vadd.f32 %v2262_v6, %v3865_v2  ;;  %v2283_v45 = vrot.slane %v3879_v57, 2  ;;  %v2290_v26 = vrot.slane %v3881_v55, 2  ;;  %v2489_v44 = vld [vmem:[%s2658_s17] sm:$0xff]  ;;  %s2563_s17 = smov [#allocation2]  }
 0x25f   : > { %v2244_v61 = vadd.f32 %v2243_v24, %v2242_v58  ;;  %v2251_v52 = vadd.f32 %v2250_v17, %v2249_v12  ;;  %v2270_v11 = vadd.f32 %v2269_v5, %v3867_v56  ;;  %v2277_v0 = vadd.f32 %v2276_v51, %v3877_v10  ;;  %s2494_s20 = sshll.u32 %s2563_s17, 4  ;;  %s2495_s20 = int_to_ptr.vmem [resolvable:$false] %s2494_s20 }
 0x260   : > { %v2257_v3 = vrot.slane %v2256_v54, 1  ;;  %v2264_v62 = vrot.slane %v2263_v29, 1  ;;  %v2284_v31 = vadd.f32 %v2283_v45, %v3879_v57  ;;  %v2291_v2 = vadd.f32 %v2290_v26, %v3881_v55  ;;  %s2496_s26 = scalar_lea.vmem %s2495_s20, 256  ;;  %p2497_p0 = scmp.lt.s32.totalorder %s3966_s13, %s2495_s20 }
 0x261   : > { %v2294_v47 = vadd.f32 %v2244_v61, %v2194_v9  ;;  %v2295_v14 = vadd.f32 %v2251_v52, %v2195_v1  ;;  %v2271_v25 = vrot.slane %v2270_v11, 1  ;;  %v2278_v23 = vrot.slane %v2277_v0, 1  ;;  %p2498_p1 = scmp.lt.s32.totalorder %s2496_s26, %s2490_s16 }
 0x262   : > { %v2258_v48 = vadd.f32 %v2257_v3, %v2256_v54  ;;  %v2265_v13 = vadd.f32 %v2264_v62, %v2263_v29  ;;  %v2199_v42 = vadd.f32 %v2179_v20, %v2099_v63  ;;  %v2285_v28 = vrot.slane %v2284_v31, 1 }
 0x263   : > { %v2292_v46 = vrot.slane %v2291_v2, 1  ;;  %v2307_v27 = vrot.slane %v2306_v35, 1  ;;  %v2272_v40 = vadd.f32 %v2271_v25, %v2270_v11  ;;  %v2279_v56 = vadd.f32 %v2278_v23, %v2277_v0  ;;  %p2499_p2 = por %p2498_p1, %p2497_p0 }
 0x264   : > { %v2296_v22 = vadd.f32 %v2258_v48, %v2196_v38  ;;  %v2297_v10 = vadd.f32 %v2265_v13, %v2197_v36  ;;  %v2286_v8 = vadd.f32 %v2285_v28, %v2284_v31  ;;  %v2308_v57 = vrot.slane %v2306_v35, 2 }
 0x265   : > { %v2293_v19 = vadd.f32 %v2292_v46, %v2291_v2  ;;  %v2309_v32 = vrot.slane %v2306_v35, 3  ;;  %v2298_v55 = vadd.f32 %v2272_v40, %v2198_v37  ;;  %v2299_v60 = vadd.f32 %v2279_v56, %v2199_v42  ;;  %p2500_p3 = pnand %p2499_p2, %p2493_p13 }
 0x266   : > { %v2314_v50 = vadd.f32 %v2306_v35, %v2294_v47  ;;  %v2315_v33 = vadd.f32 %v2306_v35, %v2295_v14  ;;  %v2300_v43 = vadd.f32 %v2286_v8, %v3861_v7  ;;  %v2316_v39 = vadd.f32 %v2307_v27, %v2296_v22 }
 0x267   : > { %v2301_v15 = vadd.f32 %v2293_v19, %v3863_v21  ;;  %v2317_v53 = vadd.f32 %v2307_v27, %v2297_v10  ;;  %v2318_v30 = vadd.f32 %v2308_v57, %v2298_v55  ;;  %v2319_v16 = vadd.f32 %v2308_v57, %v2299_v60 }
 0x268   : > { %v2330_v18 = vcombine.low %v2314_v50, %v2315_v33  ;;  %v2320_v41 = vadd.f32 %v2309_v32, %v2300_v43 }
 0x269   : > { %v2321_v59 = vadd.f32 %v2309_v32, %v2301_v15  ;;  %v2331_v63 = vcombine.low %v2316_v39, %v2317_v53  ;;  %v2332_v49 = vcombine.low %v2318_v30, %v2319_v16 }
 0x26b   : > { %v2333_v34 = vcombine.low %v2320_v41, %v2321_v59  ;;  %v2334_v9 = vrot.slane %v2331_v63, 7  ;;  %v2338_v21 = vrot.slane %v2332_v49, 6 }
 0x26d   : > { %v2335_v7 = vsel %vm1372_vm9, %v2334_v9, %v2330_v18  ;;  %v2342_v1 = vrot.slane %v2333_v34, 5 }
 0x26e   : > { %v2337_v4 = vsel %vm2336_vm12, %v2334_v9, %v2335_v7 }
 0x26f   : > { %v2339_v58 = vsel %vm1375_vm10, %v2338_v21, %v2337_v4 }
 0x270   : > { %v2341_v12 = vsel %vm2340_vm13, %v2338_v21, %v2339_v58 }
 0x271   : > { %v2343_v20 = vsel %vm1378_vm11, %v2342_v1, %v2341_v12 }
 0x272   : > { %v2345_v38 = vsel %vm2344_vm14, %v2342_v1, %v2343_v20 }
 0x273   : > { %v2347_v6 = vadd.f32 %v2489_v44, %v2345_v38 }
 0x275   : > { %2348 = vst [vmem:[%s244_s29] sm:$0xff] %v2347_v6 }
 0x276   : > { %2503 = shalt.err (!%p2500_p3)
}
 0x277   : > { %s2504_s28 = scalar_lea.hbm %s3964_s15, 128  ;;  %s2508_s9 = scalar_lea.hbm %s4014_s6, 256 }
 0x278   : > { %p2505_p4 = scmp.ne.s32.totalorder %s3964_s15, %s2504_s28  ;;  %p2509_p9 = scmp.lt.u32.totalorder %s3964_s15, %s4014_s6 }
 0x279   : > { %p2510_p10 = scmp.lt.u32.totalorder %s2508_s9, %s2504_s28  ;;  %p2512_p12 = scmp.lt.u32.totalorder %s2504_s28, %s3964_s15 }
 0x27a   : > { %p2506_p7 = pnand %p2505_p4, %p2637_p5 }
 0x27b   : > { %p2511_p11 = por %p2510_p10, %p2509_p9 }
 0x27c   : > { %p2507_p8 = pneg %p2506_p7 }
 0x27d   : > { %p2513_p13 = por %p2512_p12, %p2511_p11 }
 0x27f   : > { %p2514_p0 = pnand %p2513_p13, %p2507_p8 }
 0x281   : > { %2517 = shalt.err (!%p2514_p0)
}
 0x282   : > { %2437 = dma.vmem_to_hbm [thread:$0]  (%p2637_p5), %s3966_s13, 128, %s3964_s15, %s2350_s25  }
 0x283 PF: > { %p2443_p1 = scmp.ge.s32.totalorder %s2552_s24, 2  ;;  %s2376_s29 = sand.u32 1, %s2540_s21  }
 0x284   : > { %s2377_s19 = scalar_lea.sflag [#allocation3], %s2376_s29 }
 0x285   : > { %p2440_p2 = pnand %p2443_p1, %p2641_p6 }
 0x287   : > { %2535 = dma.done.wait (!%p2440_p2), %s2377_s19, 128  }
 0x288   : > { %2537 = vsyncadd (!%p2440_p2), %s2377_s19, 4294967168  ;;  %p16_p3 = scmp.ge.s32.totalorder %s2624_s27, 4   ;;  %s4104_s21 = smov %s2544_s22 }
 0x289   : > { %s4105_s22 = smov %s2548_s23  ;;  %s4106_s23 = smov %s2635_s30 }
 0x28a   : > { %s4107_s24 = smov %s2624_s27  ;;  %18 = sbr.rel (!%p16_p3) target bundleno = 3 (0x3), region = 79 }
 0x291   :  { %2382 = vsyncpa [#allocation3], 1 }
 0x292   :  { %2384 = vsyncpa [#allocation3 + $0x1], 1 }

</bundles_post_ra>
